<compile_context>
chip_gen: v6e
topology: v6e:2x2x1
jax: 0.10.0
libtpu: 0.0.40
codegen_flags: <defaults>
</compile_context>

<pallas_src>
import math

import jax
import jax.numpy as jnp
from jax import lax
from jax.experimental import pallas as pl
from jax.experimental.pallas import tpu as pltpu


# ----------------------------------------------------------------------------
# Kernel 1: conv stack + self-attention for one batch element.
#   x_ref   : (1, T*D, Cin)   rows ordered t*D + d, channel-last (Cin zero-padded to F)
#   w*_ref  : (fs, Cin, Cout) per conv layer, b*_ref: (1, Cout)
#   wsa_ref : (F, 2*Fd + F)   fused [Wq | Wk | Wv] 1x1-conv weights (bias-free)
#   gamma   : (1, 1)
#   o_ref   : (1, T', D, F)   refined activations (channel-last)
# ----------------------------------------------------------------------------
def conv_sa_kernel(x_ref, w1_ref, b1_ref, w2_ref, b2_ref, w3_ref, b3_ref,
                   w4_ref, b4_ref, wsa_ref, gamma_ref, o_ref):
    D = o_ref.shape[2]
    h = x_ref[0]                                  # (T*D, Cin), stays VMEM/vreg resident
    Tin = h.shape[0] // D

    # --- conv stack: y[t,d,:] = relu(b + sum_k x[t+k,d,:] @ w[k]) -------------
    for w_ref, b_ref in ((w1_ref, b1_ref), (w2_ref, b2_ref),
                         (w3_ref, b3_ref), (w4_ref, b4_ref)):
        fs, Cin, Cout = w_ref.shape
        Tout = Tin - fs + 1
        acc = jnp.zeros((Tout * D, Cout), jnp.float32)
        for k in range(fs):                       # accumulate taps on the MXU
            acc = acc + jnp.dot(h[k * D:(k + Tout) * D, :], w_ref[k],
                                preferred_element_type=jnp.float32)
        h = jnp.maximum(acc + b_ref[...], 0.0)    # ReLU, (Tout*D, Cout)
        Tin = Tout

    T4 = Tin
    F = h.shape[1]
    Fd = (wsa_ref.shape[1] - F) // 2

    # --- SelfAttention (SAGAN style) over the D axis, per time step -----------
    # fused q|k|v projection: one MXU call over all (t, d) positions
    proj = jnp.dot(h, wsa_ref[...], preferred_element_type=jnp.float32)   # (T4*D, 2Fd+F)
    proj = proj.reshape(T4, D, 2 * Fd + F)
    x3 = h.reshape(T4, D, F)
    f = proj[:, :, 0:Fd]
    g = proj[:, :, Fd:2 * Fd]
    hv = proj[:, :, 2 * Fd:2 * Fd + F]
    # torch: beta = softmax(f^T g, dim=1); o = gamma * (h @ beta) + x
    # channel-last: A[t,j,i] = <g[t,j,:], f[t,i,:]>, softmax over i (last axis)
    A = jnp.einsum('tjk,tik->tji', g, f, preferred_element_type=jnp.float32)   # (T4, D, D)
    A = A - jnp.max(A, axis=-1, keepdims=True)
    A = jnp.exp(A)
    A = A / jnp.sum(A, axis=-1, keepdims=True)
    o = gamma_ref[...] * jnp.einsum('tji,tic->tjc', A, hv,
                                    preferred_element_type=jnp.float32) + x3
    o_ref[0] = o


# ----------------------------------------------------------------------------
# Kernel 2: GRU + TemporalAttention + L2-norm + classifier (all fused).
#   x_ref: (T, Bp, I) time-major, batch zero-padded to Bp (multiple of 8).
#   Outputs: z (B, H) unit-normalized feature, logits (B, C).
# ----------------------------------------------------------------------------
def gru_head_kernel(x_ref, wih_ref, whh_ref, bih_ref, bhh_ref,
                    taw_ref, tab_ref, wcls_ref, bcls_ref,
                    z_ref, logits_ref, gi_ref):
    T, Bp, I = x_ref.shape
    H = whh_ref.shape[0]
    B = z_ref.shape[0]

    # Hoisted GRU input projection: one big MXU matmul for all timesteps.
    gi = jnp.dot(x_ref[...].reshape(T * Bp, I), wih_ref[...],
                 preferred_element_type=jnp.float32) + bih_ref[...]
    gi_ref[...] = gi.reshape(T, Bp, 3 * H)

    whh = whh_ref[...]
    bhh = bhh_ref[...]
    taw = taw_ref[...]        # (1, H)
    tab = tab_ref[...]        # (1, 1)

    def step(t, carry):
        h, m, l, acc = carry
        gi_t = gi_ref[t]                                                   # (Bp, 3H)
        gh = jnp.dot(h, whh, preferred_element_type=jnp.float32) + bhh     # (Bp, 3H)
        r = jax.nn.sigmoid(gi_t[:, 0:H] + gh[:, 0:H])
        u = jax.nn.sigmoid(gi_t[:, H:2 * H] + gh[:, H:2 * H])
        n = jnp.tanh(gi_t[:, 2 * H:3 * H] + r * gh[:, 2 * H:3 * H])
        h_new = (1.0 - u) * n + u * h
        # TemporalAttention folded in as an online softmax over time
        # (feature = sum_t softmax_t(score_t) * h_t, no (T,B,H) writeback needed).
        s = jnp.sum(h_new * taw, axis=-1, keepdims=True) + tab             # (Bp, 1)
        m_new = jnp.maximum(m, s)
        alpha = jnp.exp(m - m_new)
        p = jnp.exp(s - m_new)
        l_new = alpha * l + p
        acc_new = alpha * acc + p * h_new
        return h_new, m_new, l_new, acc_new

    init = (jnp.zeros((Bp, H), jnp.float32),
            jnp.full((Bp, 1), -jnp.inf, jnp.float32),
            jnp.zeros((Bp, 1), jnp.float32),
            jnp.zeros((Bp, H), jnp.float32))
    _, _, l, acc = lax.fori_loop(0, T, step, init)

    feature = acc / l                                        # (Bp, H)
    norm = jnp.sqrt(jnp.sum(feature * feature, axis=-1, keepdims=True))
    zval = feature / jnp.maximum(norm, 1e-12)                # F.normalize w/ eps
    logits = jnp.dot(feature, wcls_ref[...],
                     preferred_element_type=jnp.float32) + bcls_ref[...]
    z_ref[...] = zval[0:B, :]
    logits_ref[...] = logits[0:B, :]


# ----------------------------------------------------------------------------
# Full AttendDiscriminate forward (eval mode; dropouts are identity).
# ----------------------------------------------------------------------------
def attend_discriminate_forward(x, p):
    B, T, D = x.shape
    w1 = p['conv_w'][0]
    fs, _, F = w1.shape
    T4 = T - 4 * (fs - 1)
    H = p['gru_whh'].shape[0]
    C = p['cls_w'].shape[1]
    I = F * D

    # Zero-pad the single input channel up to F so all four conv layers share one
    # uniform in-kernel matmul path; rows are laid out as t*D + d (2-D, no im2col).
    x_cl = jnp.pad(x.astype(jnp.float32)[..., None],
                   ((0, 0), (0, 0), (0, 0), (0, F - 1))).reshape(B, T * D, F)

    conv_args, conv_specs = [], []
    for w, b in zip(p['conv_w'], p['conv_b']):
        conv_args += [w, b]
        conv_specs += [pl.BlockSpec(w.shape, lambda i: (0, 0, 0)),
                       pl.BlockSpec(b.shape, lambda i: (0, 0))]

    refined = pl.pallas_call(
        conv_sa_kernel,
        out_shape=jax.ShapeDtypeStruct((B, T4, D, F), jnp.float32),
        grid=(B,),
        in_specs=([pl.BlockSpec((1, T * D, F), lambda i: (i, 0, 0))]
                  + conv_specs
                  + [pl.BlockSpec(p['sa_w'].shape, lambda i: (0, 0)),
                     pl.BlockSpec((1, 1), lambda i: (0, 0))]),
        out_specs=pl.BlockSpec((1, T4, D, F), lambda i: (i, 0, 0, 0)),
        compiler_params=pltpu.CompilerParams(dimension_semantics=("parallel",)),
    )(x_cl, *conv_args, p['sa_w'], p['sa_gamma'])

    # torch: permute(3,0,1,2).reshape(T', B, F*D)   (tiny XLA glue; F*D is lane-dense)
    rnn_in = jnp.transpose(refined, (1, 0, 3, 2)).reshape(T4, B, I)
    Bp = ((B + 7) // 8) * 8      # pad batch to a sublane multiple for aligned reshapes
    rnn_in = jnp.pad(rnn_in, ((0, 0), (0, Bp - B), (0, 0)))

    vmem = pl.BlockSpec(memory_space=pltpu.MemorySpace.VMEM)
    z, logits = pl.pallas_call(
        gru_head_kernel,
        out_shape=(jax.ShapeDtypeStruct((B, H), jnp.float32),
                   jax.ShapeDtypeStruct((B, C), jnp.float32)),
        in_specs=[vmem] * 9,
        out_specs=(vmem, vmem),
        scratch_shapes=[pltpu.VMEM((T4, Bp, 3 * H), jnp.float32)],
    )(rnn_in, p['gru_wih'], p['gru_whh'], p['gru_bih'], p['gru_bhh'],
      p['ta_w'], p['ta_b'], p['cls_w'], p['cls_b'])
    return z, logits


forward = jax.jit(attend_discriminate_forward)


# ----------------------------------------------------------------------------
# Deterministic parameter init (shapes follow the PyTorch __init__).
# TODO(synk): stacked (enc_num_layers>1) / bidirectional GRU not implemented in
#             the fused kernel; single unidirectional layer only.
# ----------------------------------------------------------------------------
def init_params(key, D, F, fs, H, num_class, sa_div):
    keys = iter(jax.random.split(key, 32))

    def nrm(shape, scale):
        return jax.random.normal(next(keys), shape, jnp.float32) * scale

    Fd = max(F // sa_div, 1)
    p = {}
    # conv stack: weights stored (fs, Cin, Cout); conv1's Cin zero-padded 1 -> F
    conv_w, conv_b = [], []
    w1 = nrm((fs, 1, F), 1.0 / math.sqrt(fs * 1))
    conv_w.append(jnp.pad(w1, ((0, 0), (0, F - 1), (0, 0))))
    conv_b.append(nrm((1, F), 0.1))
    for _ in range(3):
        conv_w.append(nrm((fs, F, F), 1.0 / math.sqrt(fs * F)))
        conv_b.append(nrm((1, F), 0.1))
    p['conv_w'], p['conv_b'] = conv_w, conv_b
    # SelfAttention: q/k/v 1x1-conv weights (bias-free) fused into one matrix
    wq = nrm((F, Fd), 1.0 / math.sqrt(F))
    wk = nrm((F, Fd), 1.0 / math.sqrt(F))
    wv = nrm((F, F), 1.0 / math.sqrt(F))
    p['sa_w'] = jnp.concatenate([wq, wk, wv], axis=1)            # (F, 2*Fd+F)
    p['sa_gamma'] = jnp.full((1, 1), 0.5, jnp.float32)  # torch inits 0 (identity); nonzero exercises path
    # single-layer unidirectional GRU (PyTorch gate order r, z, n), input dim F*D
    I = F * D
    p['gru_wih'] = nrm((I, 3 * H), 1.0 / math.sqrt(I))
    p['gru_whh'] = nrm((H, 3 * H), 1.0 / math.sqrt(H))
    p['gru_bih'] = nrm((1, 3 * H), 0.1)
    p['gru_bhh'] = nrm((1, 3 * H), 0.1)
    # TemporalAttention Linear(H, 1) + classifier Linear(H, num_class)
    p['ta_w'] = nrm((1, H), 1.0 / math.sqrt(H))
    p['ta_b'] = nrm((1, 1), 0.1)
    p['cls_w'] = nrm((H, num_class), 1.0 / math.sqrt(H))
    p['cls_b'] = nrm((1, num_class), 0.1)
    # NOTE: `centers` buffer, n_head, d_feedforward, path/makedir are unused in forward.
    return p


if __name__ == "__main__":
    # Small, forward-consistent shapes:
    B, T, D = 2, 16, 16          # batch, window length, input_dim (sensor channels)
    F, fs = 8, 3                 # filter_num, filter_size  -> T' = 16 - 4*(fs-1) = 8
    H = 32                       # hidden_dim
    num_class = 6
    sa_div = 1                   # enc_num_layers = 1, enc_is_bidirectional = False

    key = jax.random.PRNGKey(0)
    kx, kp = jax.random.split(key)
    x = jax.random.normal(kx, (B, T, D), jnp.float32)
    params = init_params(kp, D, F, fs, H, num_class, sa_div)

    z, logits = forward(x, params)
    jax.block_until_ready((z, logits))

    assert z.shape == (B, H) and logits.shape == (B, num_class)
    assert bool(jnp.all(jnp.isfinite(z))) and bool(jnp.all(jnp.isfinite(logits)))
    # z rows are L2-normalized features
    assert bool(jnp.all(jnp.abs(jnp.sum(z * z, axis=1) - 1.0) < 1e-3))
    print("KERNEL_OK")
</pallas_src>

<mosaic_0001>
module attributes {stable_mosaic.version = 11 : i64} {
  func.func @conv_sa_kernel(%arg0: i32, %arg1: memref<1x256x8xf32, #tpu.memory_space<vmem>>, %arg2: memref<3x8x8xf32, #tpu.memory_space<vmem>>, %arg3: memref<1x8xf32, #tpu.memory_space<vmem>>, %arg4: memref<3x8x8xf32, #tpu.memory_space<vmem>>, %arg5: memref<1x8xf32, #tpu.memory_space<vmem>>, %arg6: memref<3x8x8xf32, #tpu.memory_space<vmem>>, %arg7: memref<1x8xf32, #tpu.memory_space<vmem>>, %arg8: memref<3x8x8xf32, #tpu.memory_space<vmem>>, %arg9: memref<1x8xf32, #tpu.memory_space<vmem>>, %arg10: memref<8x24xf32, #tpu.memory_space<vmem>>, %arg11: memref<1x1xf32, #tpu.memory_space<vmem>>, %arg12: memref<1x8x16x8xf32, #tpu.memory_space<vmem>>) attributes {dimension_semantics = [#tpu.dimension_semantics<parallel>], iteration_bounds = array<i64: 2>, scalar_prefetch = 0 : i64, scratch_operands = 0 : i64, tpu.core_type = #tpu.core_type<tc>, window_params = [{transform_indices = @transform_0, window_bounds = array<i64: 1, 256, 8>}, {pipeline_mode = #tpu.pipeline_mode<synchronous>, transform_indices = @transform_1, window_bounds = array<i64: 3, 8, 8>}, {pipeline_mode = #tpu.pipeline_mode<synchronous>, transform_indices = @transform_2, window_bounds = array<i64: 1, 8>}, {pipeline_mode = #tpu.pipeline_mode<synchronous>, transform_indices = @transform_3, window_bounds = array<i64: 3, 8, 8>}, {pipeline_mode = #tpu.pipeline_mode<synchronous>, transform_indices = @transform_4, window_bounds = array<i64: 1, 8>}, {pipeline_mode = #tpu.pipeline_mode<synchronous>, transform_indices = @transform_5, window_bounds = array<i64: 3, 8, 8>}, {pipeline_mode = #tpu.pipeline_mode<synchronous>, transform_indices = @transform_6, window_bounds = array<i64: 1, 8>}, {pipeline_mode = #tpu.pipeline_mode<synchronous>, transform_indices = @transform_7, window_bounds = array<i64: 3, 8, 8>}, {pipeline_mode = #tpu.pipeline_mode<synchronous>, transform_indices = @transform_8, window_bounds = array<i64: 1, 8>}, {pipeline_mode = #tpu.pipeline_mode<synchronous>, transform_indices = @transform_9, window_bounds = array<i64: 8, 24>}, {pipeline_mode = #tpu.pipeline_mode<synchronous>, transform_indices = @transform_10, window_bounds = array<i64: 1, 1>}, {transform_indices = @transform_11, window_bounds = array<i64: 1, 8, 16, 8>}]} {
    %c0 = arith.constant 0 : index
    %c0_0 = arith.constant 0 : index
    %c0_1 = arith.constant 0 : index
    %0 = vector.load %arg1[%c0, %c0_0, %c0_1] : memref<1x256x8xf32, #tpu.memory_space<vmem>>, vector<1x256x8xf32>
    %1 = vector.shape_cast %0 : vector<1x256x8xf32> to vector<256x8xf32>
    %cst = arith.constant 0.000000e+00 : f32
    %2 = vector.broadcast %cst : f32 to vector<224x8xf32>
    %3 = vector.extract_strided_slice %1 {offsets = [0, 0], sizes = [224, 8], strides = [1, 1]} : vector<256x8xf32> to vector<224x8xf32>
    %c0_2 = arith.constant 0 : index
    %c0_3 = arith.constant 0 : index
    %c0_4 = arith.constant 0 : index
    %4 = vector.load %arg2[%c0_2, %c0_3, %c0_4] : memref<3x8x8xf32, #tpu.memory_space<vmem>>, vector<1x8x8xf32>
    %5 = vector.shape_cast %4 : vector<1x8x8xf32> to vector<8x8xf32>
    %cst_5 = arith.constant dense<0.000000e+00> : vector<224x8xf32>
    %6 = tpu.matmul %3, %5, %cst_5 {dimension_numbers = #tpu.dot_dimension_numbers<[1], [0], [0], [1], [0, 0, 1, 1], [], []>} : vector<224x8xf32>, vector<8x8xf32>, vector<224x8xf32> -> vector<224x8xf32>
    %7 = arith.addf %2, %6 : vector<224x8xf32>
    %8 = vector.extract_strided_slice %1 {offsets = [16, 0], sizes = [224, 8], strides = [1, 1]} : vector<256x8xf32> to vector<224x8xf32>
    %c1 = arith.constant 1 : index
    %c0_6 = arith.constant 0 : index
    %c0_7 = arith.constant 0 : index
    %9 = vector.load %arg2[%c1, %c0_6, %c0_7] : memref<3x8x8xf32, #tpu.memory_space<vmem>>, vector<1x8x8xf32>
    %10 = vector.shape_cast %9 : vector<1x8x8xf32> to vector<8x8xf32>
    %cst_8 = arith.constant dense<0.000000e+00> : vector<224x8xf32>
    %11 = tpu.matmul %8, %10, %cst_8 {dimension_numbers = #tpu.dot_dimension_numbers<[1], [0], [0], [1], [0, 0, 1, 1], [], []>} : vector<224x8xf32>, vector<8x8xf32>, vector<224x8xf32> -> vector<224x8xf32>
    %12 = arith.addf %7, %11 : vector<224x8xf32>
    %13 = vector.extract_strided_slice %1 {offsets = [32, 0], sizes = [224, 8], strides = [1, 1]} : vector<256x8xf32> to vector<224x8xf32>
    %c2 = arith.constant 2 : index
    %c0_9 = arith.constant 0 : index
    %c0_10 = arith.constant 0 : index
    %14 = vector.load %arg2[%c2, %c0_9, %c0_10] : memref<3x8x8xf32, #tpu.memory_space<vmem>>, vector<1x8x8xf32>
    %15 = vector.shape_cast %14 : vector<1x8x8xf32> to vector<8x8xf32>
    %cst_11 = arith.constant dense<0.000000e+00> : vector<224x8xf32>
    %16 = tpu.matmul %13, %15, %cst_11 {dimension_numbers = #tpu.dot_dimension_numbers<[1], [0], [0], [1], [0, 0, 1, 1], [], []>} : vector<224x8xf32>, vector<8x8xf32>, vector<224x8xf32> -> vector<224x8xf32>
    %17 = arith.addf %12, %16 : vector<224x8xf32>
    %c0_12 = arith.constant 0 : index
    %c0_13 = arith.constant 0 : index
    %18 = vector.load %arg3[%c0_12, %c0_13] : memref<1x8xf32, #tpu.memory_space<vmem>>, vector<1x8xf32>
    %19 = vector.broadcast %18 : vector<1x8xf32> to vector<224x8xf32>
    %20 = arith.addf %17, %19 : vector<224x8xf32>
    %cst_14 = arith.constant 0.000000e+00 : f32
    %21 = vector.broadcast %cst_14 : f32 to vector<224x8xf32>
    %22 = arith.maximumf %20, %21 : vector<224x8xf32>
    %cst_15 = arith.constant 0.000000e+00 : f32
    %23 = vector.broadcast %cst_15 : f32 to vector<192x8xf32>
    %24 = vector.extract_strided_slice %22 {offsets = [0, 0], sizes = [192, 8], strides = [1, 1]} : vector<224x8xf32> to vector<192x8xf32>
    %c0_16 = arith.constant 0 : index
    %c0_17 = arith.constant 0 : index
    %c0_18 = arith.constant 0 : index
    %25 = vector.load %arg4[%c0_16, %c0_17, %c0_18] : memref<3x8x8xf32, #tpu.memory_space<vmem>>, vector<1x8x8xf32>
    %26 = vector.shape_cast %25 : vector<1x8x8xf32> to vector<8x8xf32>
    %cst_19 = arith.constant dense<0.000000e+00> : vector<192x8xf32>
    %27 = tpu.matmul %24, %26, %cst_19 {dimension_numbers = #tpu.dot_dimension_numbers<[1], [0], [0], [1], [0, 0, 1, 1], [], []>} : vector<192x8xf32>, vector<8x8xf32>, vector<192x8xf32> -> vector<192x8xf32>
    %28 = arith.addf %23, %27 : vector<192x8xf32>
    %29 = vector.extract_strided_slice %22 {offsets = [16, 0], sizes = [192, 8], strides = [1, 1]} : vector<224x8xf32> to vector<192x8xf32>
    %c1_20 = arith.constant 1 : index
    %c0_21 = arith.constant 0 : index
    %c0_22 = arith.constant 0 : index
    %30 = vector.load %arg4[%c1_20, %c0_21, %c0_22] : memref<3x8x8xf32, #tpu.memory_space<vmem>>, vector<1x8x8xf32>
    %31 = vector.shape_cast %30 : vector<1x8x8xf32> to vector<8x8xf32>
    %cst_23 = arith.constant dense<0.000000e+00> : vector<192x8xf32>
    %32 = tpu.matmul %29, %31, %cst_23 {dimension_numbers = #tpu.dot_dimension_numbers<[1], [0], [0], [1], [0, 0, 1, 1], [], []>} : vector<192x8xf32>, vector<8x8xf32>, vector<192x8xf32> -> vector<192x8xf32>
    %33 = arith.addf %28, %32 : vector<192x8xf32>
    %34 = vector.extract_strided_slice %22 {offsets = [32, 0], sizes = [192, 8], strides = [1, 1]} : vector<224x8xf32> to vector<192x8xf32>
    %c2_24 = arith.constant 2 : index
    %c0_25 = arith.constant 0 : index
    %c0_26 = arith.constant 0 : index
    %35 = vector.load %arg4[%c2_24, %c0_25, %c0_26] : memref<3x8x8xf32, #tpu.memory_space<vmem>>, vector<1x8x8xf32>
    %36 = vector.shape_cast %35 : vector<1x8x8xf32> to vector<8x8xf32>
    %cst_27 = arith.constant dense<0.000000e+00> : vector<192x8xf32>
    %37 = tpu.matmul %34, %36, %cst_27 {dimension_numbers = #tpu.dot_dimension_numbers<[1], [0], [0], [1], [0, 0, 1, 1], [], []>} : vector<192x8xf32>, vector<8x8xf32>, vector<192x8xf32> -> vector<192x8xf32>
    %38 = arith.addf %33, %37 : vector<192x8xf32>
    %c0_28 = arith.constant 0 : index
    %c0_29 = arith.constant 0 : index
    %39 = vector.load %arg5[%c0_28, %c0_29] : memref<1x8xf32, #tpu.memory_space<vmem>>, vector<1x8xf32>
    %40 = vector.broadcast %39 : vector<1x8xf32> to vector<192x8xf32>
    %41 = arith.addf %38, %40 : vector<192x8xf32>
    %cst_30 = arith.constant 0.000000e+00 : f32
    %42 = vector.broadcast %cst_30 : f32 to vector<192x8xf32>
    %43 = arith.maximumf %41, %42 : vector<192x8xf32>
    %cst_31 = arith.constant 0.000000e+00 : f32
    %44 = vector.broadcast %cst_31 : f32 to vector<160x8xf32>
    %45 = vector.extract_strided_slice %43 {offsets = [0, 0], sizes = [160, 8], strides = [1, 1]} : vector<192x8xf32> to vector<160x8xf32>
    %c0_32 = arith.constant 0 : index
    %c0_33 = arith.constant 0 : index
    %c0_34 = arith.constant 0 : index
    %46 = vector.load %arg6[%c0_32, %c0_33, %c0_34] : memref<3x8x8xf32, #tpu.memory_space<vmem>>, vector<1x8x8xf32>
    %47 = vector.shape_cast %46 : vector<1x8x8xf32> to vector<8x8xf32>
    %cst_35 = arith.constant dense<0.000000e+00> : vector<160x8xf32>
    %48 = tpu.matmul %45, %47, %cst_35 {dimension_numbers = #tpu.dot_dimension_numbers<[1], [0], [0], [1], [0, 0, 1, 1], [], []>} : vector<160x8xf32>, vector<8x8xf32>, vector<160x8xf32> -> vector<160x8xf32>
    %49 = arith.addf %44, %48 : vector<160x8xf32>
    %50 = vector.extract_strided_slice %43 {offsets = [16, 0], sizes = [160, 8], strides = [1, 1]} : vector<192x8xf32> to vector<160x8xf32>
    %c1_36 = arith.constant 1 : index
    %c0_37 = arith.constant 0 : index
    %c0_38 = arith.constant 0 : index
    %51 = vector.load %arg6[%c1_36, %c0_37, %c0_38] : memref<3x8x8xf32, #tpu.memory_space<vmem>>, vector<1x8x8xf32>
    %52 = vector.shape_cast %51 : vector<1x8x8xf32> to vector<8x8xf32>
    %cst_39 = arith.constant dense<0.000000e+00> : vector<160x8xf32>
    %53 = tpu.matmul %50, %52, %cst_39 {dimension_numbers = #tpu.dot_dimension_numbers<[1], [0], [0], [1], [0, 0, 1, 1], [], []>} : vector<160x8xf32>, vector<8x8xf32>, vector<160x8xf32> -> vector<160x8xf32>
    %54 = arith.addf %49, %53 : vector<160x8xf32>
    %55 = vector.extract_strided_slice %43 {offsets = [32, 0], sizes = [160, 8], strides = [1, 1]} : vector<192x8xf32> to vector<160x8xf32>
    %c2_40 = arith.constant 2 : index
    %c0_41 = arith.constant 0 : index
    %c0_42 = arith.constant 0 : index
    %56 = vector.load %arg6[%c2_40, %c0_41, %c0_42] : memref<3x8x8xf32, #tpu.memory_space<vmem>>, vector<1x8x8xf32>
    %57 = vector.shape_cast %56 : vector<1x8x8xf32> to vector<8x8xf32>
    %cst_43 = arith.constant dense<0.000000e+00> : vector<160x8xf32>
    %58 = tpu.matmul %55, %57, %cst_43 {dimension_numbers = #tpu.dot_dimension_numbers<[1], [0], [0], [1], [0, 0, 1, 1], [], []>} : vector<160x8xf32>, vector<8x8xf32>, vector<160x8xf32> -> vector<160x8xf32>
    %59 = arith.addf %54, %58 : vector<160x8xf32>
    %c0_44 = arith.constant 0 : index
    %c0_45 = arith.constant 0 : index
    %60 = vector.load %arg7[%c0_44, %c0_45] : memref<1x8xf32, #tpu.memory_space<vmem>>, vector<1x8xf32>
    %61 = vector.broadcast %60 : vector<1x8xf32> to vector<160x8xf32>
    %62 = arith.addf %59, %61 : vector<160x8xf32>
    %cst_46 = arith.constant 0.000000e+00 : f32
    %63 = vector.broadcast %cst_46 : f32 to vector<160x8xf32>
    %64 = arith.maximumf %62, %63 : vector<160x8xf32>
    %cst_47 = arith.constant 0.000000e+00 : f32
    %65 = vector.broadcast %cst_47 : f32 to vector<128x8xf32>
    %66 = vector.extract_strided_slice %64 {offsets = [0, 0], sizes = [128, 8], strides = [1, 1]} : vector<160x8xf32> to vector<128x8xf32>
    %c0_48 = arith.constant 0 : index
    %c0_49 = arith.constant 0 : index
    %c0_50 = arith.constant 0 : index
    %67 = vector.load %arg8[%c0_48, %c0_49, %c0_50] : memref<3x8x8xf32, #tpu.memory_space<vmem>>, vector<1x8x8xf32>
    %68 = vector.shape_cast %67 : vector<1x8x8xf32> to vector<8x8xf32>
    %cst_51 = arith.constant dense<0.000000e+00> : vector<128x8xf32>
    %69 = tpu.matmul %66, %68, %cst_51 {dimension_numbers = #tpu.dot_dimension_numbers<[1], [0], [0], [1], [0, 0, 1, 1], [], []>} : vector<128x8xf32>, vector<8x8xf32>, vector<128x8xf32> -> vector<128x8xf32>
    %70 = arith.addf %65, %69 : vector<128x8xf32>
    %71 = vector.extract_strided_slice %64 {offsets = [16, 0], sizes = [128, 8], strides = [1, 1]} : vector<160x8xf32> to vector<128x8xf32>
    %c1_52 = arith.constant 1 : index
    %c0_53 = arith.constant 0 : index
    %c0_54 = arith.constant 0 : index
    %72 = vector.load %arg8[%c1_52, %c0_53, %c0_54] : memref<3x8x8xf32, #tpu.memory_space<vmem>>, vector<1x8x8xf32>
    %73 = vector.shape_cast %72 : vector<1x8x8xf32> to vector<8x8xf32>
    %cst_55 = arith.constant dense<0.000000e+00> : vector<128x8xf32>
    %74 = tpu.matmul %71, %73, %cst_55 {dimension_numbers = #tpu.dot_dimension_numbers<[1], [0], [0], [1], [0, 0, 1, 1], [], []>} : vector<128x8xf32>, vector<8x8xf32>, vector<128x8xf32> -> vector<128x8xf32>
    %75 = arith.addf %70, %74 : vector<128x8xf32>
    %76 = vector.extract_strided_slice %64 {offsets = [32, 0], sizes = [128, 8], strides = [1, 1]} : vector<160x8xf32> to vector<128x8xf32>
    %c2_56 = arith.constant 2 : index
    %c0_57 = arith.constant 0 : index
    %c0_58 = arith.constant 0 : index
    %77 = vector.load %arg8[%c2_56, %c0_57, %c0_58] : memref<3x8x8xf32, #tpu.memory_space<vmem>>, vector<1x8x8xf32>
    %78 = vector.shape_cast %77 : vector<1x8x8xf32> to vector<8x8xf32>
    %cst_59 = arith.constant dense<0.000000e+00> : vector<128x8xf32>
    %79 = tpu.matmul %76, %78, %cst_59 {dimension_numbers = #tpu.dot_dimension_numbers<[1], [0], [0], [1], [0, 0, 1, 1], [], []>} : vector<128x8xf32>, vector<8x8xf32>, vector<128x8xf32> -> vector<128x8xf32>
    %80 = arith.addf %75, %79 : vector<128x8xf32>
    %c0_60 = arith.constant 0 : index
    %c0_61 = arith.constant 0 : index
    %81 = vector.load %arg9[%c0_60, %c0_61] : memref<1x8xf32, #tpu.memory_space<vmem>>, vector<1x8xf32>
    %82 = vector.broadcast %81 : vector<1x8xf32> to vector<128x8xf32>
    %83 = arith.addf %80, %82 : vector<128x8xf32>
    %cst_62 = arith.constant 0.000000e+00 : f32
    %84 = vector.broadcast %cst_62 : f32 to vector<128x8xf32>
    %85 = arith.maximumf %83, %84 : vector<128x8xf32>
    %c0_63 = arith.constant 0 : index
    %c0_64 = arith.constant 0 : index
    %86 = vector.load %arg10[%c0_63, %c0_64] : memref<8x24xf32, #tpu.memory_space<vmem>>, vector<8x24xf32>
    %cst_65 = arith.constant dense<0.000000e+00> : vector<128x24xf32>
    %87 = tpu.matmul %85, %86, %cst_65 {dimension_numbers = #tpu.dot_dimension_numbers<[1], [0], [0], [1], [0, 0, 1, 1], [], []>} : vector<128x8xf32>, vector<8x24xf32>, vector<128x24xf32> -> vector<128x24xf32>
    %88 = vector.shape_cast %87 : vector<128x24xf32> to vector<8x16x24xf32>
    %89 = vector.shape_cast %85 : vector<128x8xf32> to vector<8x16x8xf32>
    %90 = vector.extract_strided_slice %88 {offsets = [0, 0, 0], sizes = [8, 16, 8], strides = [1, 1, 1]} : vector<8x16x24xf32> to vector<8x16x8xf32>
    %91 = vector.extract_strided_slice %88 {offsets = [0, 0, 8], sizes = [8, 16, 8], strides = [1, 1, 1]} : vector<8x16x24xf32> to vector<8x16x8xf32>
    %92 = vector.extract_strided_slice %88 {offsets = [0, 0, 16], sizes = [8, 16, 8], strides = [1, 1, 1]} : vector<8x16x24xf32> to vector<8x16x8xf32>
    "tpu.trace_start"() <{level = 10 : i32, message = "tjk,tik->tji"}> : () -> ()
    %cst_66 = arith.constant dense<0.000000e+00> : vector<8x16x16xf32>
    %93 = tpu.matmul %91, %90, %cst_66 {dimension_numbers = #tpu.dot_dimension_numbers<[2], [2], [1], [1], [0, 0, 0, 1, 1, 1], [0], [0]>} : vector<8x16x8xf32>, vector<8x16x8xf32>, vector<8x16x16xf32> -> vector<8x16x16xf32>
    "tpu.trace_stop"() : () -> ()
    %cst_67 = arith.constant dense<0xFF800000> : vector<8x16xf32>
    %94 = vector.multi_reduction <maximumf>, %93, %cst_67 [2] : vector<8x16x16xf32> to vector<8x16xf32>
    %95 = vector.shape_cast %94 : vector<8x16xf32> to vector<8x16x1xf32>
    %96 = vector.broadcast %95 : vector<8x16x1xf32> to vector<8x16x16xf32>
    %97 = arith.subf %93, %96 : vector<8x16x16xf32>
    %98 = math.exp %97 : vector<8x16x16xf32>
    %cst_68 = arith.constant dense<0.000000e+00> : vector<8x16xf32>
    %99 = vector.multi_reduction <add>, %98, %cst_68 [2] : vector<8x16x16xf32> to vector<8x16xf32>
    %100 = vector.shape_cast %99 : vector<8x16xf32> to vector<8x16x1xf32>
    %101 = vector.broadcast %100 : vector<8x16x1xf32> to vector<8x16x16xf32>
    %102 = arith.divf %98, %101 : vector<8x16x16xf32>
    %c0_69 = arith.constant 0 : index
    %c0_70 = arith.constant 0 : index
    %103 = vector.load %arg11[%c0_69, %c0_70] : memref<1x1xf32, #tpu.memory_space<vmem>>, vector<1x1xf32>
    "tpu.trace_start"() <{level = 10 : i32, message = "tji,tic->tjc"}> : () -> ()
    %cst_71 = arith.constant dense<0.000000e+00> : vector<8x16x8xf32>
    %104 = tpu.matmul %102, %92, %cst_71 {dimension_numbers = #tpu.dot_dimension_numbers<[2], [1], [1], [2], [0, 0, 0, 1, 1, 2], [0], [0]>} : vector<8x16x16xf32>, vector<8x16x8xf32>, vector<8x16x8xf32> -> vector<8x16x8xf32>
    "tpu.trace_stop"() : () -> ()
    %105 = vector.shape_cast %103 : vector<1x1xf32> to vector<1x1x1xf32>
    %106 = vector.broadcast %105 : vector<1x1x1xf32> to vector<8x16x8xf32>
    %107 = arith.mulf %106, %104 : vector<8x16x8xf32>
    %108 = arith.addf %107, %89 : vector<8x16x8xf32>
    %c0_72 = arith.constant 0 : index
    %c0_73 = arith.constant 0 : index
    %c0_74 = arith.constant 0 : index
    %c0_75 = arith.constant 0 : index
    %109 = vector.load %arg12[%c0_72, %c0_73, %c0_74, %c0_75] : memref<1x8x16x8xf32, #tpu.memory_space<vmem>>, vector<1x8x16x8xf32>
    %110 = vector.shape_cast %109 : vector<1x8x16x8xf32> to vector<8x16x8xf32>
    %111 = vector.shape_cast %108 : vector<8x16x8xf32> to vector<1x8x16x8xf32>
    tpu.vector_store %arg12[%c0_72, %c0_73, %c0_74, %c0_75], %111 {strides = array<i32>} : memref<1x8x16x8xf32, #tpu.memory_space<vmem>>, vector<1x8x16x8xf32>,
    return
  }
  func.func @transform_0(%arg0: i32) -> (i32, i32, i32) {
    %c0_i32 = arith.constant 0 : i32
    %c0_i32_0 = arith.constant 0 : i32
    %c0_i32_1 = arith.constant 0 : i32
    return %arg0, %c0_i32, %c0_i32_0 : i32, i32, i32
  }
  func.func @transform_1(%arg0: i32) -> (i32, i32, i32) {
    %c0_i32 = arith.constant 0 : i32
    %c0_i32_0 = arith.constant 0 : i32
    %c0_i32_1 = arith.constant 0 : i32
    %c0_i32_2 = arith.constant 0 : i32
    return %c0_i32, %c0_i32_0, %c0_i32_1 : i32, i32, i32
  }
  func.func @transform_2(%arg0: i32) -> (i32, i32) {
    %c0_i32 = arith.constant 0 : i32
    %c0_i32_0 = arith.constant 0 : i32
    %c0_i32_1 = arith.constant 0 : i32
    return %c0_i32, %c0_i32_0 : i32, i32
  }
  func.func @transform_3(%arg0: i32) -> (i32, i32, i32) {
    %c0_i32 = arith.constant 0 : i32
    %c0_i32_0 = arith.constant 0 : i32
    %c0_i32_1 = arith.constant 0 : i32
    %c0_i32_2 = arith.constant 0 : i32
    return %c0_i32, %c0_i32_0, %c0_i32_1 : i32, i32, i32
  }
  func.func @transform_4(%arg0: i32) -> (i32, i32) {
    %c0_i32 = arith.constant 0 : i32
    %c0_i32_0 = arith.constant 0 : i32
    %c0_i32_1 = arith.constant 0 : i32
    return %c0_i32, %c0_i32_0 : i32, i32
  }
  func.func @transform_5(%arg0: i32) -> (i32, i32, i32) {
    %c0_i32 = arith.constant 0 : i32
    %c0_i32_0 = arith.constant 0 : i32
    %c0_i32_1 = arith.constant 0 : i32
    %c0_i32_2 = arith.constant 0 : i32
    return %c0_i32, %c0_i32_0, %c0_i32_1 : i32, i32, i32
  }
  func.func @transform_6(%arg0: i32) -> (i32, i32) {
    %c0_i32 = arith.constant 0 : i32
    %c0_i32_0 = arith.constant 0 : i32
    %c0_i32_1 = arith.constant 0 : i32
    return %c0_i32, %c0_i32_0 : i32, i32
  }
  func.func @transform_7(%arg0: i32) -> (i32, i32, i32) {
    %c0_i32 = arith.constant 0 : i32
    %c0_i32_0 = arith.constant 0 : i32
    %c0_i32_1 = arith.constant 0 : i32
    %c0_i32_2 = arith.constant 0 : i32
    return %c0_i32, %c0_i32_0, %c0_i32_1 : i32, i32, i32
  }
  func.func @transform_8(%arg0: i32) -> (i32, i32) {
    %c0_i32 = arith.constant 0 : i32
    %c0_i32_0 = arith.constant 0 : i32
    %c0_i32_1 = arith.constant 0 : i32
    return %c0_i32, %c0_i32_0 : i32, i32
  }
  func.func @transform_9(%arg0: i32) -> (i32, i32) {
    %c0_i32 = arith.constant 0 : i32
    %c0_i32_0 = arith.constant 0 : i32
    %c0_i32_1 = arith.constant 0 : i32
    return %c0_i32, %c0_i32_0 : i32, i32
  }
  func.func @transform_10(%arg0: i32) -> (i32, i32) {
    %c0_i32 = arith.constant 0 : i32
    %c0_i32_0 = arith.constant 0 : i32
    %c0_i32_1 = arith.constant 0 : i32
    return %c0_i32, %c0_i32_0 : i32, i32
  }
  func.func @transform_11(%arg0: i32) -> (i32, i32, i32, i32) {
    %c0_i32 = arith.constant 0 : i32
    %c0_i32_0 = arith.constant 0 : i32
    %c0_i32_1 = arith.constant 0 : i32
    %c0_i32_2 = arith.constant 0 : i32
    return %arg0, %c0_i32, %c0_i32_0, %c0_i32_1 : i32, i32, i32, i32
  }
}

module attributes {stable_mosaic.version = 11 : i64} {
  func.func @gru_head_kernel(%arg0: memref<8x8x128xf32, #tpu.memory_space<vmem>>, %arg1: memref<128x96xf32, #tpu.memory_space<vmem>>, %arg2: memref<32x96xf32, #tpu.memory_space<vmem>>, %arg3: memref<1x96xf32, #tpu.memory_space<vmem>>, %arg4: memref<1x96xf32, #tpu.memory_space<vmem>>, %arg5: memref<1x32xf32, #tpu.memory_space<vmem>>, %arg6: memref<1x1xf32, #tpu.memory_space<vmem>>, %arg7: memref<32x6xf32, #tpu.memory_space<vmem>>, %arg8: memref<1x6xf32, #tpu.memory_space<vmem>>, %arg9: memref<2x32xf32, #tpu.memory_space<vmem>>, %arg10: memref<2x6xf32, #tpu.memory_space<vmem>>, %arg11: memref<8x8x96xf32, #tpu.memory_space<vmem>>) attributes {dimension_semantics = [], scalar_prefetch = 0 : i64, scratch_operands = 1 : i64, tpu.core_type = #tpu.core_type<tc>} {
    %c0 = arith.constant 0 : index
    %c0_0 = arith.constant 0 : index
    %c0_1 = arith.constant 0 : index
    %0 = vector.load %arg0[%c0, %c0_0, %c0_1] : memref<8x8x128xf32, #tpu.memory_space<vmem>>, vector<8x8x128xf32>
    %1 = vector.shape_cast %0 : vector<8x8x128xf32> to vector<64x128xf32>
    %c0_2 = arith.constant 0 : index
    %c0_3 = arith.constant 0 : index
    %2 = vector.load %arg1[%c0_2, %c0_3] : memref<128x96xf32, #tpu.memory_space<vmem>>, vector<128x96xf32>
    %cst = arith.constant dense<0.000000e+00> : vector<64x96xf32>
    %3 = tpu.matmul %1, %2, %cst {dimension_numbers = #tpu.dot_dimension_numbers<[1], [0], [0], [1], [0, 0, 1, 1], [], []>} : vector<64x128xf32>, vector<128x96xf32>, vector<64x96xf32> -> vector<64x96xf32>
    %c0_4 = arith.constant 0 : index
    %c0_5 = arith.constant 0 : index
    %4 = vector.load %arg3[%c0_4, %c0_5] : memref<1x96xf32, #tpu.memory_space<vmem>>, vector<1x96xf32>
    %5 = vector.broadcast %4 : vector<1x96xf32> to vector<64x96xf32>
    %6 = arith.addf %3, %5 : vector<64x96xf32>
    %7 = vector.shape_cast %6 : vector<64x96xf32> to vector<8x8x96xf32>
    %c0_6 = arith.constant 0 : index
    %c0_7 = arith.constant 0 : index
    %c0_8 = arith.constant 0 : index
    %8 = vector.load %arg11[%c0_6, %c0_7, %c0_8] : memref<8x8x96xf32, #tpu.memory_space<vmem>>, vector<8x8x96xf32>
    tpu.vector_store %arg11[%c0_6, %c0_7, %c0_8], %7 {strides = array<i32>} : memref<8x8x96xf32, #tpu.memory_space<vmem>>, vector<8x8x96xf32>,
    %c0_9 = arith.constant 0 : index
    %c0_10 = arith.constant 0 : index
    %9 = vector.load %arg2[%c0_9, %c0_10] : memref<32x96xf32, #tpu.memory_space<vmem>>, vector<32x96xf32>
    %c0_11 = arith.constant 0 : index
    %c0_12 = arith.constant 0 : index
    %10 = vector.load %arg4[%c0_11, %c0_12] : memref<1x96xf32, #tpu.memory_space<vmem>>, vector<1x96xf32>
    %c0_13 = arith.constant 0 : index
    %c0_14 = arith.constant 0 : index
    %11 = vector.load %arg5[%c0_13, %c0_14] : memref<1x32xf32, #tpu.memory_space<vmem>>, vector<1x32xf32>
    %c0_15 = arith.constant 0 : index
    %c0_16 = arith.constant 0 : index
    %12 = vector.load %arg6[%c0_15, %c0_16] : memref<1x1xf32, #tpu.memory_space<vmem>>, vector<1x1xf32>
    %cst_17 = arith.constant 0.000000e+00 : f32
    %13 = vector.broadcast %cst_17 : f32 to vector<8x32xf32>
    %cst_18 = arith.constant 0xFF800000 : f32
    %14 = vector.broadcast %cst_18 : f32 to vector<8x1xf32>
    %cst_19 = arith.constant 0.000000e+00 : f32
    %15 = vector.broadcast %cst_19 : f32 to vector<8x1xf32>
    %cst_20 = arith.constant 0.000000e+00 : f32
    %16 = vector.broadcast %cst_20 : f32 to vector<8x32xf32>
    %c0_i32 = arith.constant 0 : i32
    %c8_i32 = arith.constant 8 : i32
    %17 = arith.addi %c0_i32, %c8_i32 : i32
    %c1_i32 = arith.constant 1 : i32
    %18:4 = scf.for %arg12 = %c0_i32 to %17 step %c1_i32 iter_args(%arg13 = %13, %arg14 = %14, %arg15 = %15, %arg16 = %16) -> (vector<8x32xf32>, vector<8x1xf32>, vector<8x1xf32>, vector<8x32xf32>)  : i32 {
      %38 = arith.index_cast %arg12 : i32 to index
      %c0_33 = arith.constant 0 : index
      %c0_34 = arith.constant 0 : index
      %39 = vector.load %arg11[%38, %c0_33, %c0_34] : memref<8x8x96xf32, #tpu.memory_space<vmem>>, vector<1x8x96xf32>
      %40 = vector.shape_cast %39 : vector<1x8x96xf32> to vector<8x96xf32>
      %cst_35 = arith.constant dense<0.000000e+00> : vector<8x96xf32>
      %41 = tpu.matmul %arg13, %9, %cst_35 {dimension_numbers = #tpu.dot_dimension_numbers<[1], [0], [0], [1], [0, 0, 1, 1], [], []>} : vector<8x32xf32>, vector<32x96xf32>, vector<8x96xf32> -> vector<8x96xf32>
      %42 = vector.broadcast %10 : vector<1x96xf32> to vector<8x96xf32>
      %43 = arith.addf %41, %42 : vector<8x96xf32>
      %44 = vector.extract_strided_slice %40 {offsets = [0, 0], sizes = [8, 32], strides = [1, 1]} : vector<8x96xf32> to vector<8x32xf32>
      %45 = vector.extract_strided_slice %43 {offsets = [0, 0], sizes = [8, 32], strides = [1, 1]} : vector<8x96xf32> to vector<8x32xf32>
      %46 = arith.addf %44, %45 : vector<8x32xf32>
      %47 = arith.negf %46 : vector<8x32xf32>
      %48 = math.exp %47 : vector<8x32xf32>
      %cst_36 = arith.constant 1.000000e+00 : f32
      %49 = vector.broadcast %cst_36 : f32 to vector<8x32xf32>
      %50 = arith.addf %49, %48 : vector<8x32xf32>
      %51 = arith.divf %49, %50 : vector<8x32xf32>
      %52 = vector.extract_strided_slice %40 {offsets = [0, 32], sizes = [8, 32], strides = [1, 1]} : vector<8x96xf32> to vector<8x32xf32>
      %53 = vector.extract_strided_slice %43 {offsets = [0, 32], sizes = [8, 32], strides = [1, 1]} : vector<8x96xf32> to vector<8x32xf32>
      %54 = arith.addf %52, %53 : vector<8x32xf32>
      %55 = arith.negf %54 : vector<8x32xf32>
      %56 = math.exp %55 : vector<8x32xf32>
      %cst_37 = arith.constant 1.000000e+00 : f32
      %57 = vector.broadcast %cst_37 : f32 to vector<8x32xf32>
      %58 = arith.addf %57, %56 : vector<8x32xf32>
      %59 = arith.divf %57, %58 : vector<8x32xf32>
      %60 = vector.extract_strided_slice %40 {offsets = [0, 64], sizes = [8, 32], strides = [1, 1]} : vector<8x96xf32> to vector<8x32xf32>
      %61 = vector.extract_strided_slice %43 {offsets = [0, 64], sizes = [8, 32], strides = [1, 1]} : vector<8x96xf32> to vector<8x32xf32>
      %62 = arith.mulf %51, %61 : vector<8x32xf32>
      %63 = arith.addf %60, %62 : vector<8x32xf32>
      %64 = math.tanh %63 : vector<8x32xf32>
      %cst_38 = arith.constant 1.000000e+00 : f32
      %65 = vector.broadcast %cst_38 : f32 to vector<8x32xf32>
      %66 = arith.subf %65, %59 : vector<8x32xf32>
      %67 = arith.mulf %66, %64 : vector<8x32xf32>
      %68 = arith.mulf %59, %arg13 : vector<8x32xf32>
      %69 = arith.addf %67, %68 : vector<8x32xf32>
      %70 = vector.broadcast %11 : vector<1x32xf32> to vector<8x32xf32>
      %71 = arith.mulf %69, %70 : vector<8x32xf32>
      %cst_39 = arith.constant dense<0.000000e+00> : vector<8xf32>
      %72 = vector.multi_reduction <add>, %71, %cst_39 [1] : vector<8x32xf32> to vector<8xf32>
      %73 = vector.shape_cast %72 : vector<8xf32> to vector<8x1xf32>
      %74 = vector.broadcast %12 : vector<1x1xf32> to vector<8x1xf32>
      %75 = arith.addf %73, %74 : vector<8x1xf32>
      %76 = arith.maximumf %arg14, %75 : vector<8x1xf32>
      %77 = arith.subf %arg14, %76 : vector<8x1xf32>
      %78 = math.exp %77 : vector<8x1xf32>
      %79 = arith.subf %75, %76 : vector<8x1xf32>
      %80 = math.exp %79 : vector<8x1xf32>
      %81 = arith.mulf %78, %arg15 : vector<8x1xf32>
      %82 = arith.addf %81, %80 : vector<8x1xf32>
      %83 = vector.broadcast %78 : vector<8x1xf32> to vector<8x32xf32>
      %84 = arith.mulf %83, %arg16 : vector<8x32xf32>
      %85 = vector.broadcast %80 : vector<8x1xf32> to vector<8x32xf32>
      %86 = arith.mulf %85, %69 : vector<8x32xf32>
      %87 = arith.addf %84, %86 : vector<8x32xf32>
      scf.yield %69, %76, %82, %87 : vector<8x32xf32>, vector<8x1xf32>, vector<8x1xf32>, vector<8x32xf32>
    }
    %c8_i32_21 = arith.constant 8 : i32
    %19 = vector.broadcast %18#2 : vector<8x1xf32> to vector<8x32xf32>
    %20 = arith.divf %18#3, %19 : vector<8x32xf32>
    %21 = arith.mulf %20, %20 : vector<8x32xf32>
    %cst_22 = arith.constant dense<0.000000e+00> : vector<8xf32>
    %22 = vector.multi_reduction <add>, %21, %cst_22 [1] : vector<8x32xf32> to vector<8xf32>
    %23 = vector.shape_cast %22 : vector<8xf32> to vector<8x1xf32>
    %24 = math.sqrt %23 : vector<8x1xf32>
    %cst_23 = arith.constant 9.99999996E-13 : f32
    %25 = vector.broadcast %cst_23 : f32 to vector<8x1xf32>
    %26 = arith.maximumf %24, %25 : vector<8x1xf32>
    %27 = vector.broadcast %26 : vector<8x1xf32> to vector<8x32xf32>
    %28 = arith.divf %20, %27 : vector<8x32xf32>
    %c0_24 = arith.constant 0 : index
    %c0_25 = arith.constant 0 : index
    %29 = vector.load %arg7[%c0_24, %c0_25] : memref<32x6xf32, #tpu.memory_space<vmem>>, vector<32x6xf32>
    %cst_26 = arith.constant dense<0.000000e+00> : vector<8x6xf32>
    %30 = tpu.matmul %20, %29, %cst_26 {dimension_numbers = #tpu.dot_dimension_numbers<[1], [0], [0], [1], [0, 0, 1, 1], [], []>} : vector<8x32xf32>, vector<32x6xf32>, vector<8x6xf32> -> vector<8x6xf32>
    %c0_27 = arith.constant 0 : index
    %c0_28 = arith.constant 0 : index
    %31 = vector.load %arg8[%c0_27, %c0_28] : memref<1x6xf32, #tpu.memory_space<vmem>>, vector<1x6xf32>
    %32 = vector.broadcast %31 : vector<1x6xf32> to vector<8x6xf32>
    %33 = arith.addf %30, %32 : vector<8x6xf32>
    %34 = vector.extract_strided_slice %28 {offsets = [0, 0], sizes = [2, 32], strides = [1, 1]} : vector<8x32xf32> to vector<2x32xf32>
    %c0_29 = arith.constant 0 : index
    %c0_30 = arith.constant 0 : index
    %35 = vector.load %arg9[%c0_29, %c0_30] : memref<2x32xf32, #tpu.memory_space<vmem>>, vector<2x32xf32>
    tpu.vector_store %arg9[%c0_29, %c0_30], %34 {strides = array<i32>} : memref<2x32xf32, #tpu.memory_space<vmem>>, vector<2x32xf32>,
    %36 = vector.extract_strided_slice %33 {offsets = [0, 0], sizes = [2, 6], strides = [1, 1]} : vector<8x6xf32> to vector<2x6xf32>
    %c0_31 = arith.constant 0 : index
    %c0_32 = arith.constant 0 : index
    %37 = vector.load %arg10[%c0_31, %c0_32] : memref<2x6xf32, #tpu.memory_space<vmem>>, vector<2x6xf32>
    tpu.vector_store %arg10[%c0_31, %c0_32], %36 {strides = array<i32>} : memref<2x6xf32, #tpu.memory_space<vmem>>, vector<2x6xf32>,
    return
  }
}

</mosaic_0001>

<bundles_post_ra>
// kernel: attend_discriminate_forward.3
= control target key start
LH: loop header
LB: loop body
LE: loop exit
PB: predicated region body
PF: predicated region fallthrough
CT: control target
= control target key end

     0   :  { %s1078_s0 = inlined_call_operand.vmem [shape: f32[8,8,128], index: 0, kind: input, shape index: {}]   ;;  %s1079_s1 = inlined_call_operand.vmem [shape: f32[128,96], index: 1, kind: input, shape index: {}]   ;;  %s1080_s2 = inlined_call_operand.vmem [shape: f32[32,96], index: 2, kind: input, shape index: {}]   ;;  %s1081_s3 = inlined_call_operand.vmem [shape: f32[1,96], index: 3, kind: input, shape index: {}]   ;;  %s1082_s4 = inlined_call_operand.vmem [shape: f32[1,96], index: 4, kind: input, shape index: {}]   ;;  %s1083_s5 = inlined_call_operand.vmem [shape: f32[1,32], index: 5, kind: input, shape index: {}]   ;;  %s1084_s6 = inlined_call_operand.<no memory space> [shape: f32[1,1], index: 6, kind: input, shape index: {}]   ;;  %s1085_s7 = inlined_call_operand.vmem [shape: f32[32,6], index: 7, kind: input, shape index: {}]   ;;  %s1086_s8 = inlined_call_operand.vmem [shape: f32[1,6], index: 8, kind: input, shape index: {}]   ;;  %s1087_s9 = inlined_call_operand.hbm [shape: f32[2,32], index: 9, kind: output, shape index: {0}]   ;;  %s1088_s10 = inlined_call_operand.hbm [shape: f32[2,6], index: 10, kind: output, shape index: {1}]  }
   0x1   :  { %v16_v0 = vstv %s1084_s6 }
   0x2   :  { %17 = vst [vmem:[#allocation3] sm:$0x1] %v16_v0 }
   0x3   :  { %18 = vsyncpa [#allocation5], 0 }
   0x4   :  { %19 = vsyncpa [#allocation7], 0  ;;  %v61_v1 = vld [vmem:[%s1079_s1 + $0x78] sm:$0xff]  ;;  %v60_v2 = vld [vmem:[%s1079_s1 + $0x70] sm:$0xff]  ;;  %vm174_vm0 = vcmask 785408   ;;  %v1004_v49 = vmov 0.0  }
   0x5   :  { %566 = vmatprep.subr.mxu0 %v61_v1  ;;  %632 = vmatprep.subr.mxu1 %v61_v1  ;;  %v59_v3 = vld [vmem:[%s1079_s1 + $0x68] sm:$0xff]  ;;  %v58_v4 = vld [vmem:[%s1079_s1 + $0x60] sm:$0xff]  ;;  %v57_v5 = vld [vmem:[%s1079_s1 + $0x58] sm:$0xff]  ;;  %v1006_v50 = vmov 0.0   ;;  %v1008_v51 = vmov -inf   ;;  %v1010_v52 = vmov 0.0  }
   0x6   :  { %567 = vmatpush3.msra.mxu0 %v61_v1  ;;  %648 = vmatpush3.msra.mxu1 %v61_v1  ;;  %v56_v6 = vld [vmem:[%s1079_s1 + $0x50] sm:$0xff]  ;;  %v55_v7 = vld [vmem:[%s1079_s1 + $0x48] sm:$0xff]  ;;  %v54_v8 = vld [vmem:[%s1079_s1 + $0x40] sm:$0xff] }
   0x7   :  { %568 = vmatprep.subr.mxu0 %v60_v2  ;;  %633 = vmatprep.subr.mxu1 %v60_v2  ;;  %v53_v9 = vld [vmem:[%s1079_s1 + $0x38] sm:$0xff]  ;;  %v52_v10 = vld [vmem:[%s1079_s1 + $0x30] sm:$0xff]  ;;  %v51_v11 = vld [vmem:[%s1079_s1 + $0x28] sm:$0xff] }
   0x8   :  { %569 = vmatpush3.msra.mxu0 %v60_v2  ;;  %649 = vmatpush3.msra.mxu1 %v60_v2  ;;  %v50_v12 = vld [vmem:[%s1079_s1 + $0x20] sm:$0xff]  ;;  %v49_v13 = vld [vmem:[%s1079_s1 + $0x18] sm:$0xff]  ;;  %v48_v14 = vld [vmem:[%s1079_s1 + $0x10] sm:$0xff] }
   0x9   :  { %570 = vmatprep.subr.mxu0 %v59_v3  ;;  %634 = vmatprep.subr.mxu1 %v59_v3  ;;  %v47_v15 = vld [vmem:[%s1079_s1 + $0x8] sm:$0xff]  ;;  %v46_v16 = vld [vmem:[%s1079_s1] sm:$0xff]  ;;  %v40_v21 = vld [vmem:[%s1078_s0 + $0x10] sm:$0xff] }
   0xa   :  { %571 = vmatpush3.msra.mxu0 %v59_v3  ;;  %650 = vmatpush3.msra.mxu1 %v59_v3  ;;  %v38_v17 = vld [vmem:[%s1078_s0] sm:$0xff]  ;;  %v39_v19 = vld [vmem:[%s1078_s0 + $0x8] sm:$0xff]  ;;  %v44_v22 = vld [vmem:[%s1078_s0 + $0x30] sm:$0xff] }
   0xb   :  { %572 = vmatprep.subr.mxu0 %v58_v4  ;;  %635 = vmatprep.subr.mxu1 %v58_v4  ;;  %v42_v18 = vld [vmem:[%s1078_s0 + $0x20] sm:$0xff]  ;;  %v43_v20 = vld [vmem:[%s1078_s0 + $0x28] sm:$0xff]  ;;  %v41_v23 = vld [vmem:[%s1078_s0 + $0x18] sm:$0xff] }
   0xc   :  { %573 = vmatpush3.msra.mxu0 %v58_v4  ;;  %651 = vmatpush3.msra.mxu1 %v58_v4  ;;  %v45_v24 = vld [vmem:[%s1078_s0 + $0x38] sm:$0xff]  ;;  %v964_v25 = vld [vmem:[%s1080_s2] sm:$0xff]  ;;  %v969_v26 = vld [vmem:[%s1080_s2 + $0x8] sm:$0xff] }
   0xd   :  { %574 = vmatprep.subr.mxu0 %v57_v5  ;;  %636 = vmatprep.subr.mxu1 %v57_v5  ;;  %v974_v27 = vld [vmem:[%s1080_s2 + $0x10] sm:$0xff]  ;;  %v979_v28 = vld [vmem:[%s1080_s2 + $0x18] sm:$0xff]  ;;  %v984_v29 = vld [vmem:[%s1082_s4] ss:$0 sm:$0xff]  ;;  %s1012_s2 = smov 0  }
   0xe   :  { %575 = vmatpush3.msra.mxu0 %v57_v5  ;;  %652 = vmatpush3.msra.mxu1 %v57_v5  ;;  %v989_v30 = vld [vmem:[%s1083_s5] ss:$0 sm:$0xff] }
   0xf   :  { %576 = vmatprep.subr.mxu0 %v56_v6  ;;  %637 = vmatprep.subr.mxu1 %v56_v6  ;;  %v991_v31 = vld [vmem:[#allocation3] ss:$0 sm:$0xff] }
  0x10   :  { %577 = vmatpush3.msra.mxu0 %v56_v6  ;;  %653 = vmatpush3.msra.mxu1 %v56_v6  ;;  %v523_v32 = vld [vmem:[%s1081_s3] ss:$0 sm:$0xff] }
  0x11   :  { %578 = vmatprep.subr.mxu0 %v55_v7  ;;  %638 = vmatprep.subr.mxu1 %v55_v7 }
  0x12   :  { %579 = vmatpush3.msra.mxu0 %v55_v7  ;;  %654 = vmatpush3.msra.mxu1 %v55_v7 }
  0x13   :  { %580 = vmatprep.subr.mxu0 %v54_v8  ;;  %639 = vmatprep.subr.mxu1 %v54_v8 }
  0x14   :  { %581 = vmatpush3.msra.mxu0 %v54_v8  ;;  %655 = vmatpush3.msra.mxu1 %v54_v8 }
  0x15   :  { %582 = vmatprep.subr.mxu0 %v53_v9  ;;  %640 = vmatprep.subr.mxu1 %v53_v9 }
  0x16   :  { %583 = vmatpush3.msra.mxu0 %v53_v9  ;;  %656 = vmatpush3.msra.mxu1 %v53_v9 }
  0x17   :  { %584 = vmatprep.subr.mxu0 %v52_v10  ;;  %641 = vmatprep.subr.mxu1 %v52_v10 }
  0x18   :  { %585 = vmatpush3.msra.mxu0 %v52_v10  ;;  %657 = vmatpush3.msra.mxu1 %v52_v10 }
  0x19   :  { %586 = vmatprep.subr.mxu0 %v51_v11  ;;  %642 = vmatprep.subr.mxu1 %v51_v11 }
  0x1a   :  { %587 = vmatpush3.msra.mxu0 %v51_v11  ;;  %658 = vmatpush3.msra.mxu1 %v51_v11 }
  0x1b   :  { %588 = vmatprep.subr.mxu0 %v50_v12  ;;  %643 = vmatprep.subr.mxu1 %v50_v12 }
  0x1c   :  { %589 = vmatpush3.msra.mxu0 %v50_v12  ;;  %659 = vmatpush3.msra.mxu1 %v50_v12 }
  0x1d   :  { %590 = vmatprep.subr.mxu0 %v49_v13  ;;  %644 = vmatprep.subr.mxu1 %v49_v13 }
  0x1e   :  { %591 = vmatpush3.msra.mxu0 %v49_v13  ;;  %660 = vmatpush3.msra.mxu1 %v49_v13 }
  0x1f   :  { %592 = vmatprep.subr.mxu0 %v48_v14  ;;  %645 = vmatprep.subr.mxu1 %v48_v14 }
  0x20   :  { %593 = vmatpush3.msra.mxu0 %v48_v14  ;;  %661 = vmatpush3.msra.mxu1 %v48_v14 }
  0x21   :  { %594 = vmatprep.subr.mxu0 %v47_v15  ;;  %646 = vmatprep.subr.mxu1 %v47_v15 }
  0x22   :  { %595 = vmatpush3.msra.mxu0 %v47_v15  ;;  %662 = vmatpush3.msra.mxu1 %v47_v15 }
  0x23   :  { %596 = vmatprep.subr.mxu0 %v46_v16  ;;  %647 = vmatprep.subr.mxu1 %v46_v16 }
  0x24   :  { %597 = vmatpush3.msra.mxu0 %v46_v16  ;;  %663 = vmatpush3.msra.mxu1 %v46_v16 }
  0x25   :  { %598 = vmatprep.mubr.f32.mxu0 %v38_v17  ;;  %604 = vmatprep.mubr.f32.mxu1 %v42_v18 }
  0x26   :  { %599 = vmatmul.mubr.f32.vlgmr.msra.gmra.mxu0 %v39_v19  ;;  %605 = vmatmul.mubr.f32.vlgmr.msra.gmra.mxu1 %v43_v20 }
  0x27   :  { %601 = vmatprep.mubr.f32.mxu0 %v40_v21  ;;  %607 = vmatprep.mubr.f32.mxu1 %v44_v22 }
  0x2a   :  { %602 = vmatmul.mubr.f32.gmra.mxu0 %v41_v23  ;;  %608 = vmatmul.mubr.f32.gmra.mxu1 %v45_v24 }
  0xe6   :  { %v600_v33 = vpop.f32.mrf.mxu0  ;;  %v606_v34 = vpop.f32.mrf.mxu1 }
  0xe7   :  { %v141_v35 = vadd.f32 %v600_v33, %v523_v32  ;;  %v161_v36 = vadd.f32 %v606_v34, %v523_v32 }
  0xe8   :  { %v135_v37 = vpop.f32.mrf.mxu0  ;;  %v155_v38 = vpop.f32.mrf.mxu1 }
  0xe9   :  { %176 = vst.msk [vmem:[#allocation2 + $0x8] sm:$0xff] %vm174_vm0, %v141_v35  ;;  %180 = vst.msk [vmem:[#allocation2 + $0x28] sm:$0xff] %vm174_vm0, %v161_v36  ;;  %v136_v39 = vadd.f32 %v523_v32, %v135_v37  ;;  %v156_v40 = vadd.f32 %v523_v32, %v155_v38 }
  0xea   :  { %v603_v41 = vpop.f32.mrf.mxu0  ;;  %v609_v42 = vpop.f32.mrf.mxu1 }
  0xeb   :  { %175 = vst.msk [vmem:[#allocation2] sm:$0xff] %vm174_vm0, %v136_v39  ;;  %179 = vst.msk [vmem:[#allocation2 + $0x20] sm:$0xff] %vm174_vm0, %v156_v40  ;;  %v151_v43 = vadd.f32 %v603_v41, %v523_v32  ;;  %v171_v44 = vadd.f32 %v609_v42, %v523_v32 }
  0xec   :  { %v145_v45 = vpop.f32.mrf.mxu0  ;;  %v165_v46 = vpop.f32.mrf.mxu1 }
  0xed   :  { %178 = vst.msk [vmem:[#allocation2 + $0x18] sm:$0xff] %vm174_vm0, %v151_v43  ;;  %182 = vst.msk [vmem:[#allocation2 + $0x38] sm:$0xff] %vm174_vm0, %v171_v44  ;;  %v146_v47 = vadd.f32 %v523_v32, %v145_v45  ;;  %v166_v48 = vadd.f32 %v523_v32, %v165_v46 }
  0xef   :  { %177 = vst.msk [vmem:[#allocation2 + $0x10] sm:$0xff] %vm174_vm0, %v146_v47  ;;  %181 = vst.msk [vmem:[#allocation2 + $0x30] sm:$0xff] %vm174_vm0, %v166_v48 }
  0xf0 LB: > { %v819_v53 = vmov 0.0   ;;  %vm820_vm1 = vmmov 0   ;;  %s821_s3 = smov 96   ;;  %vm212_vm2 = vcmask 261120   ;;  %s822_s4 = smov 64   ;;  %v824_v13 = vmov 0   ;;  %s817_s2 = sphi %s1012_s2, %s195_s2   ;;  %v813_v52 = vphi %v1010_v52, %v310_v52   ;;  %v809_v51 = vphi %v1008_v51, %v1091_v51   ;;  %v805_v50 = vphi %v1006_v50, %v1090_v50   ;;  %v801_v49 = vphi %v1004_v49, %v1089_v49  }
  0xf1   : > { %610 = vmatprep.subr.mxu0 %v819_v53  ;;  %618 = vmatprep.mubr.msk.f32.mxu0 %vm820_vm1, %v819_v53  ;;  %s524_s5 = sshll.u32 %s817_s2, 3  ;;  %s823_s12 = smov 32  }
  0xf2   : > { %210 = vrot.lane.b32.xlu0 %v813_v52, %s821_s3  ;;  %611 = vmatpush3.msra.mxu0 %v979_v28  ;;  %s201_s1 = scalar_lea.vmem [#allocation2], %s524_s5  ;;  %s195_s2 = sadd.s32 1, %s817_s2  }
  0xf3   : > { %612 = vmatprep.subr.mxu0 %v819_v53  ;;  %716 = vset.pattern.permute.xlu1 %v824_v13  ;;  %p192_p0 = scmp.ge.s32.totalorder %s195_s2, 8  }
  0xf4   : > { %613 = vmatpush3.msra.mxu0 %v974_v27  ;;  %717 = vset.pattern.permute.xlu0 %v824_v13  ;;  %v825_v37 = vmov (%p192_p0), 0   ;;  %v385_v38 = vld [vmem:[%s1085_s7 + $0x18] sm:$0xff] (%p192_p0)  ;;  %v826_v39 = vmov (%p192_p0), 0.0   ;;  %v384_v40 = vld [vmem:[%s1085_s7 + $0x10] sm:$0xff] (%p192_p0)  ;;  %vm827_vm3 = vmmov (%p192_p0), 0   ;;  %s828_s6 = smov (%p192_p0), 96  }
  0xf5   : > { %614 = vmatprep.subr.mxu0 %v819_v53  ;;  %728 = vset.pattern.permute.xlu0 (%p192_p0), %v825_v37  ;;  %s829_s22 = smov (%p192_p0), [#allocation6]   ;;  %vm474_vm6 = vcmask (%p192_p0), 41984  }
  0xf6   : > { %615 = vmatpush3.msra.mxu0 %v969_v26  ;;  %v202_v58 = vld [vmem:[%s201_s1] sm:$0xff]  ;;  %s492_s23 = sshll.u32 (%p192_p0), %s829_s22, 4  ;;  %s493_s23 = int_to_ptr.vmem [resolvable:$true] %s492_s23 }
  0xf7   : > { %616 = vmatprep.subr.mxu0 %v819_v53  ;;  %v382_v26 = vld [vmem:[%s1085_s7] sm:$0xff] (%p192_p0)  ;;  %s735_s24 = scalar_lea.vmem (%p192_p0), %s493_s23, 32  ;;  %p740_p2 = scmp.lt.s32.totalorder (%p192_p0), %s493_s23, %s493_s23 }
  0xf8   : > { %617 = vmatpush3.msra.mxu0 %v964_v25  ;;  %v383_v25 = vld [vmem:[%s1085_s7 + $0x8] sm:$0xff] (%p192_p0)  ;;  %p736_p1 = scmp.ne.s32.totalorder (%p192_p0), %s493_s23, %s735_s24  ;;  %p741_p3 = scmp.lt.s32.totalorder (%p192_p0), %s735_s24, %s735_s24 }
  0xf9   :  { %621 = vmatprep.subr.mxu0 (%p192_p0), %v826_v39 }
  0xfa   :  { %p742_p4 = por (%p192_p0), %p741_p3, %p740_p2 }
  0xfc   :  { %p743_p5 = pnand (%p192_p0), %p742_p4, %p736_p1 }
 0x164   : > { %v211_v54 = vpop.permute.xlu0 %210 }
 0x165   : > { %619 = vmatmul.mubr.msk.f32.vlgmr.msra.gmra.mxu0 %vm212_vm2, %v211_v54 }
 0x166   :  { %629 = vmatprep.mubr.msk.f32.mxu0 (%p192_p0), %vm827_vm3, %v826_v39  ;;  %622 = vmatpush3.msra.mxu0 (%p192_p0), %v385_v38 }
 0x167   :  { %623 = vmatprep.subr.mxu0 (%p192_p0), %v826_v39 }
 0x168   :  { %624 = vmatpush3.msra.mxu0 (%p192_p0), %v384_v40 }
 0x169   :  { %625 = vmatprep.subr.mxu0 (%p192_p0), %v826_v39 }
 0x16a   :  { %626 = vmatpush3.msra.mxu0 (%p192_p0), %v383_v25 }
 0x16b   :  { %627 = vmatprep.subr.mxu0 (%p192_p0), %v826_v39 }
 0x16c   :  { %628 = vmatpush3.msra.mxu0 (%p192_p0), %v382_v26 }
 0x225   : > { %v281_v55 = vpop.f32.mrf.mxu0 }
 0x226   : > { %v282_v56 = vadd.f32 %v984_v29, %v281_v55 }
 0x227   : > { %v620_v57 = vpop.f32.mrf.mxu0 }
 0x228   : > { %293 = vrot.lane.b32.xlu0 %v282_v56, %s822_s4  ;;  %v285_v59 = vadd.f32 %v282_v56, %v202_v58 }
 0x22a   : > { %v527_v60 = vmul.f32 -1.442695, %v285_v59 }
 0x22c   : > { %718 = vpow2.f32 %v527_v60  ;;  %316 = vrot.lane.b32.xlu0 %v989_v30, %s823_s12 }
 0x239   : > { %v719_v61 = vpop.eup %718 }
 0x23a   : > { %v289_v62 = vadd.f32 1.0, %v719_v61 }
 0x23c   : > { %720 = vrcp.f32 %v289_v62 }
 0x249   : > { %v721_v63 = vpop.eup %720 }
 0x24a   : > { %v303_v5 = vsub.f32 1.0, %v721_v63  ;;  %v309_v8 = vmul.f32 %v813_v52, %v721_v63 }
 0x29a   : > { %v294_v0 = vpop.permute.xlu0 %293 }
 0x29b   : > { %v296_v1 = vmul.f32 %v721_v63, %v294_v0 }
 0x29d   : > { %298 = vrot.lane.b32.xlu1 %v296_v1, %s822_s4 }
 0x29e   : > { %v317_v9 = vpop.permute.xlu0 %316 }
 0x30f   : > { %v299_v2 = vpop.permute.xlu1 %298 }
 0x310   : > { %v301_v3 = vadd.f32 %v299_v2, %v202_v58 }
 0x312   : > { %722 = vtanh.f32 %v301_v3 }
 0x31f   : > { %v723_v4 = vpop.eup %722 }
 0x320   : > { %305 = vrot.lane.b32.xlu1 %v723_v4, %s821_s3 }
 0x392   : > { %v306_v6 = vpop.permute.xlu1 %305 }
 0x393   : > { %v308_v7 = vmul.f32 %v306_v6, %v303_v5 }
 0x395   : > { %v310_v52 = vadd.f32 %v309_v8, %v308_v7  }
 0x397   : > { %v319_v10 = vmul.f32 %v317_v9, %v310_v52 }
 0x399   : > { %321 = vrot.lane.b32.xlu1 %v319_v10, %s821_s3 }
 0x40b   : > { %v322_v11 = vpop.permute.xlu1 %321 }
 0x40c   : > { %v324_v12 = vsel %vm212_vm2, %v322_v11, 0.0 }
 0x40d   : > { %325 = vadd.xlane.f32.xlu0 %v324_v12 }
 0x496   : > { %v326_v14 = vpop.xlane.xlu0 %325 }
 0x497   : > { %v333_v15 = vadd.f32 %v991_v31, %v326_v14 }
 0x499   : > { %v334_v16 = vmax.f32 %v809_v51, %v333_v15  }
 0x49b   : > { %v335_v17 = vsub.f32 %v809_v51, %v334_v16  ;;  %v338_v18 = vsub.f32 %v333_v15, %v334_v16  ;;  %v1091_v51 = vmov %v334_v16 }
 0x49d   : > { %v336_v19 = vmul.f32 1.442695, %v335_v17  ;;  %v339_v20 = vmul.f32 1.442695, %v338_v18 }
 0x49f   : > { %724 = vpow2.f32 %v336_v19 }
 0x4a0   : > { %726 = vpow2.f32 %v339_v20 }
 0x4ac   : > { %v725_v21 = vpop.eup %724 }
 0x4ad   : > { %v341_v22 = vmul.f32 %v805_v50, %v725_v21  ;;  %345 = vperm.xlu1 %716, %v725_v21   ;;  %v727_v23 = vpop.eup %726 }
 0x4af   : > { %v342_v24 = vadd.f32 %v727_v23, %v341_v22  }
 0x4b1   : > { %351 = vperm.xlu1 %716, %v727_v23   ;;  %v1090_v50 = vmov %v342_v24  ;;  %358 = vperm.xlu0 (%p192_p0), %728, %v342_v24  }
 0x528   : > { %v346_v32 = vpop.permute.xlu1 %345 }
 0x529   : > { %v348_v34 = vmul.f32 %v801_v49, %v346_v32 }
 0x52c   : > { %v352_v33 = vpop.permute.xlu1 %351  ;;  %v359_v27 = vpop.permute.xlu0 (%p192_p0), %358 }
 0x52d   : > { %v354_v35 = vmul.f32 %v352_v33, %v310_v52  ;;  %194 = sbr.rel (!%p192_p0) target bundleno = 240 (0xf0), region = 72  ;;  %729 = vrcp.f32 (%p192_p0), %v359_v27  ;;  %v530_v52 = vld [vmem:[%s1086_s8] ss:$0 sm:$0xff] (%p192_p0) }
 0x52f   : > { %v355_v36 = vadd.f32 %v354_v35, %v348_v34  }
 0x531   : > { %v1089_v49 = vmov %v355_v36 }
 0x53a   :  { %v730_v28 = vpop.eup %729 }
 0x53b   :  { %v362_v29 = vmul.f32 %v730_v28, %v355_v36 }
 0x53d   :  { %394 = vrot.lane.b32.xlu0 %v362_v29, %s828_s6  ;;  %v363_v30 = vmul.f32 %v362_v29, %v362_v29 }
 0x53f   :  { %365 = vrot.lane.b32.xlu1 %v363_v30, %s828_s6 }
 0x5af   :  { %v395_v31 = vpop.permute.xlu0 %394 }
 0x5b0   :  { %630 = vmatmul.mubr.msk.f32.vlgmr.msra.gmra.mxu0 %vm212_vm2, %v395_v31 }
 0x5b1   :  { %v366_v41 = vpop.permute.xlu1 %365 }
 0x5b2   :  { %v369_v42 = vsel %vm212_vm2, %v366_v41, 0.0 }
 0x5b3   :  { %370 = vadd.xlane.f32.xlu1 %v369_v42 }
 0x63c   :  { %v371_v43 = vpop.xlane.xlu1 %370 }
 0x63d   :  { %731 = vrsqrt.f32 %v371_v43  ;;  %vm374_vm4 = vcmp.eq.f32.partialorder %v371_v43, inf  ;;  %v377_v46 = vand.u32 2147483648, %v371_v43  ;;  %vm376_vm5 = vcmp.eq.f32.partialorder %v371_v43, 0.0 }
 0x64a   :  { %v732_v44 = vpop.eup %731 }
 0x64b   :  { %v373_v45 = vmul.f32 %v732_v44, %v371_v43 }
 0x64d   :  { %v375_v47 = vsel %vm374_vm4, %v371_v43, %v373_v45 }
 0x64e   :  { %v378_v48 = vsel %vm376_vm5, %v377_v46, %v375_v47 }
 0x64f   :  { %v379_v49 = vmax.f32 %v378_v48, 1e-12 }
 0x651   :  { %733 = vrcp.f32 %v379_v49 }
 0x65e   :  { %v734_v50 = vpop.eup %733 }
 0x65f   :  { %v381_v51 = vmul.f32 %v734_v50, %v362_v29 }
 0x661   :  { %469 = vrot.lane.b32.xlu0 %v381_v51, %s828_s6 }
 0x670   :  { %v464_v53 = vpop.f32.mrf.mxu0 }
 0x671   :  { %v465_v54 = vadd.f32 %v530_v52, %v464_v53 }
 0x672   :  { %v631_v55 = vpop.f32.mrf.mxu0 }
 0x673   :  { %475 = vst.msk [vmem:[#allocation6] sm:$0x3] %vm474_vm6, %v465_v54 }
 0x674   :  { %746 = shalt.err (!%p743_p5)
}
 0x675   :  { %495 = dma.vmem_to_hbm [thread:$0]  %s493_s23, 32, %s1088_s10, [#allocation7]   ;;  %vm472_vm7 = vcmask 254976  }
 0x676   :  { %s830_s8 = smov [#allocation4]  }
 0x677   :  { %s482_s0 = sshll.u32 %s830_s8, 4  ;;  %s483_s0 = int_to_ptr.vmem [resolvable:$true] %s482_s0 }
 0x678   :  { %s755_s27 = scalar_lea.vmem %s483_s0, 32  ;;  %p760_p7 = scmp.lt.s32.totalorder %s483_s0, %s483_s0 }
 0x679   :  { %p756_p6 = scmp.ne.s32.totalorder %s483_s0, %s755_s27  ;;  %p761_p8 = scmp.lt.s32.totalorder %s755_s27, %s755_s27 }
 0x67b   :  { %p762_p9 = por %p761_p8, %p760_p7 }
 0x67d   :  { %p763_p10 = pnand %p762_p9, %p756_p6 }
 0x6d3   :  { %v470_v56 = vpop.permute.xlu0 %469 }
 0x6d4   :  { %473 = vst.msk [vmem:[#allocation4] sm:$0x3] %vm472_vm7, %v470_v56 }
 0x6d5   :  { %766 = shalt.err (!%p763_p10)
}
 0x6d6   :  { %485 = dma.vmem_to_hbm [thread:$0]  %s483_s0, 32, %s1087_s9, [#allocation5]  }
 0x6d7   :  { %795 = dma.done.wait [#allocation5], 32  }
 0x6d8   :  { %796 = vsyncadd [#allocation5], 4294967264 }
 0x6d9   :  { %797 = dma.done.wait [#allocation7], 32  }
 0x6da   :  { %798 = vsyncadd [#allocation7], 4294967264 }
 0x6db   :  { %502 = vsyncpa [#allocation5], 1 }
 0x6dc   :  { %503 = vsyncpa [#allocation7], 1 }

// kernel: attend_discriminate_forward.2
= control target key start
LH: loop header
LB: loop body
LE: loop exit
PB: predicated region body
PF: predicated region fallthrough
CT: control target
= control target key end

     0   :  { %s6457_s19 = smov 0   ;;  %s7945_s0 = inlined_call_operand.vmem [shape: f32[2,256,8], index: 0, kind: input, shape index: {}]   ;;  %s7946_s1 = inlined_call_operand.vmem [shape: f32[3,8,8], index: 1, kind: input, shape index: {}]   ;;  %s7947_s2 = inlined_call_operand.vmem [shape: f32[1,8], index: 2, kind: input, shape index: {}]   ;;  %s7948_s3 = inlined_call_operand.vmem [shape: f32[3,8,8], index: 3, kind: input, shape index: {}]   ;;  %s7949_s4 = inlined_call_operand.vmem [shape: f32[1,8], index: 4, kind: input, shape index: {}]   ;;  %s7950_s5 = inlined_call_operand.vmem [shape: f32[3,8,8], index: 5, kind: input, shape index: {}]   ;;  %s7951_s6 = inlined_call_operand.vmem [shape: f32[1,8], index: 6, kind: input, shape index: {}]   ;;  %s7952_s7 = inlined_call_operand.vmem [shape: f32[3,8,8], index: 7, kind: input, shape index: {}]   ;;  %s7953_s8 = inlined_call_operand.vmem [shape: f32[1,8], index: 8, kind: input, shape index: {}]   ;;  %s7954_s9 = inlined_call_operand.vmem [shape: f32[8,24], index: 9, kind: input, shape index: {}]   ;;  %s7955_s10 = inlined_call_operand.<no memory space> [shape: f32[1,1], index: 10, kind: input, shape index: {}]   ;;  %s7956_s11 = inlined_call_operand.vmem [shape: f32[2,8,16,8], index: 11, kind: output, shape index: {}]  }
   0x1   :  { %v16_v0 = vstv %s7955_s10 }
   0x2   :  { %17 = vst [vmem:[#allocation2] sm:$0x1] %v16_v0 }
   0x3 LB: > { %s5038_s20 = sadd.s32 4294967295, %s6389_s19   ;;  %p5042_p0 = scmp.ge.s32.totalorder %s6389_s19, 1  ;;  %s6389_s19 = sphi %s6457_s19, %s23_s19  }
   0x4   : > { %p339_p1 = scmp.lt.s32.totalorder %s6389_s19, 3 }
   0x6   : > { %p340_p2 = pnand %p5042_p0, %p339_p1 }
   0x7   : > { %p379_p3 = scmp.lt.s32.totalorder (!%p340_p2), %s5038_s20, 1  ;;  %s6391_s10 = smov (!%p340_p2), 120  }
   0x8   : > { %343 = sbr.rel (%p340_p2) target bundleno = 2082 (0x822), region = 64  ;;  %s6392_s23 = smov (!%p340_p2), 112  }
   0xd   : > { %v5047_v1 = vld [vmem:[%s7946_s1 + $0x8] sm:$0xff]  ;;  %v421_v2 = vld [vmem:[%s7946_s1] sm:$0xff]  ;;  %v5104_v3 = vld [vmem:[%s7946_s1 + $0x10] sm:$0xff]  ;;  %s7970_s20 = smov (!%p379_p3, %s5038_s20), 1  ;;  %vm424_vm0 = vcmask 64512   ;;  %vm4052_vm1 = vcmask 130048  }
   0xe   : > { %5749 = vmatprep.subr.mxu0 %v5047_v1  ;;  %5793 = vmatprep.subr.mxu1 %v421_v2  ;;  %s5390_s26 = sshll.u32 %s7970_s20, 8  ;;  %v5134_v34 = vld [vmem:[%s7948_s3 + $0x8] sm:$0xff]  ;;  %v5183_v37 = vld [vmem:[%s7948_s3 + $0x10] sm:$0xff]  ;;  %v6652_v38 = vld [vmem:[%s7948_s3] sm:$0xff]  ;;  %s5391_s24 = sshll.u32 %s7970_s20, 7 }
   0xf   : > { %5750 = vmatpush3.msra.mxu0 %v5047_v1  ;;  %5794 = vmatpush3.msra.mxu1 %v421_v2  ;;  %s6480_s29 = scalar_lea.vmem %s7945_s0, %s5390_s26  ;;  %s7861_s27 = scalar_lea.vmem %s7956_s11, %s5391_s24 }
  0x10   : > { %5837 = vmatprep.subr.mxu0 %v5104_v3  ;;  %v391_v4 = vld [vmem:[%s6480_s29 + $0x10] sm:$0xff]  ;;  %v389_v5 = vld [vmem:[%s6480_s29] sm:$0xff]  ;;  %v392_v6 = vld [vmem:[%s6480_s29 + $0x18] sm:$0xff]  ;;  %5881 = vmatprep.subr.mxu1 %v5134_v34 }
  0x11   : > { %5751 = vmatprep.mubr.msk.f32.mxu0 %vm424_vm0, %v391_v4  ;;  %5795 = vmatprep.mubr.msk.f32.mxu1 %vm424_vm0, %v389_v5  ;;  %v390_v7 = vld [vmem:[%s6480_s29 + $0x8] sm:$0xff]  ;;  %v6489_v8 = vld [vmem:[%s6480_s29 + $0x20] sm:$0xff]  ;;  %v6500_v10 = vld [vmem:[%s6480_s29 + $0x30] sm:$0xff] }
  0x12   : > { %5752 = vmatmul.mubr.msk.f32.vlgmr.msra.gmra.mxu0 %vm424_vm0, %v392_v6  ;;  %5796 = vmatmul.mubr.msk.f32.vlgmr.msra.gmra.mxu1 %vm424_vm0, %v390_v7  ;;  %v6496_v9 = vld [vmem:[%s6480_s29 + $0x28] sm:$0xff]  ;;  %v6510_v11 = vld [vmem:[%s6480_s29 + $0x38] sm:$0xff]  ;;  %v6513_v12 = vld [vmem:[%s6480_s29 + $0x40] sm:$0xff] }
  0x13   : > { %5838 = vmatpush3.msra.mxu0 %v5104_v3  ;;  %5754 = vmatprep.mubr.msk.f32.mxu0 %vm424_vm0, %v6489_v8  ;;  %v6524_v13 = vld [vmem:[%s6480_s29 + $0x48] sm:$0xff]  ;;  %v6527_v14 = vld [vmem:[%s6480_s29 + $0x50] sm:$0xff]  ;;  %v6538_v15 = vld [vmem:[%s6480_s29 + $0x58] sm:$0xff] }
  0x14   : > { %5798 = vmatprep.mubr.msk.f32.mxu1 %vm424_vm0, %v391_v4  ;;  %v6541_v16 = vld [vmem:[%s6480_s29 + $0x60] sm:$0xff]  ;;  %v402_v17 = vld [vmem:[%s6480_s29 + $0x68] sm:$0xff]  ;;  %v403_v18 = vld [vmem:[%s6480_s29 + $0x70] sm:$0xff]  ;;  %5882 = vmatpush3.msra.mxu1 %v5134_v34 }
  0x15   : > { %v404_v19 = vld [vmem:[%s6480_s29 + $0x78] sm:$0xff]  ;;  %v405_v20 = vld [vmem:[%s6480_s29 + $0x80] sm:$0xff]  ;;  %v406_v21 = vld [vmem:[%s6480_s29 + $0x88] sm:$0xff]  ;;  %5957 = vmatprep.subr.mxu0 %v5183_v37  ;;  %5919 = vmatprep.subr.mxu1 %v6652_v38 }
  0x16   : > { %5755 = vmatmul.mubr.msk.f32.gmra.mxu0 %vm424_vm0, %v6496_v9  ;;  %5799 = vmatmul.mubr.msk.f32.gmra.mxu1 %vm424_vm0, %v392_v6  ;;  %v407_v22 = vld [vmem:[%s6480_s29 + $0x90] sm:$0xff]  ;;  %v408_v23 = vld [vmem:[%s6480_s29 + $0x98] sm:$0xff]  ;;  %v409_v24 = vld [vmem:[%s6480_s29 + $0xa0] sm:$0xff] }
  0x17   : > { %5757 = vmatprep.mubr.msk.f32.mxu0 %vm424_vm0, %v6500_v10  ;;  %5801 = vmatprep.mubr.msk.f32.mxu1 %vm424_vm0, %v6489_v8  ;;  %v410_v25 = vld [vmem:[%s6480_s29 + $0xa8] sm:$0xff]  ;;  %v411_v26 = vld [vmem:[%s6480_s29 + $0xb0] sm:$0xff]  ;;  %v412_v27 = vld [vmem:[%s6480_s29 + $0xb8] sm:$0xff] }
  0x18   : > { %v413_v28 = vld [vmem:[%s6480_s29 + $0xc0] sm:$0xff]  ;;  %v414_v29 = vld [vmem:[%s6480_s29 + $0xc8] sm:$0xff]  ;;  %v415_v30 = vld [vmem:[%s6480_s29 + $0xd0] sm:$0xff] }
  0x19   : > { %v416_v31 = vld [vmem:[%s6480_s29 + $0xd8] sm:$0xff]  ;;  %v417_v32 = vld [vmem:[%s6480_s29 + $0xe0] sm:$0xff]  ;;  %v418_v33 = vld [vmem:[%s6480_s29 + $0xe8] sm:$0xff] }
  0x1a   : > { %5758 = vmatmul.mubr.msk.f32.gmra.mxu0 %vm424_vm0, %v6510_v11  ;;  %5802 = vmatmul.mubr.msk.f32.gmra.mxu1 %vm424_vm0, %v6496_v9  ;;  %v419_v35 = vld [vmem:[%s6480_s29 + $0xf0] sm:$0xff]  ;;  %v420_v36 = vld [vmem:[%s6480_s29 + $0xf8] sm:$0xff] }
  0x1b   : > { %5760 = vmatprep.mubr.msk.f32.mxu0 %vm424_vm0, %v6513_v12  ;;  %5804 = vmatprep.mubr.msk.f32.mxu1 %vm424_vm0, %v6500_v10 }
  0x1e   : > { %5761 = vmatmul.mubr.msk.f32.gmra.mxu0 %vm424_vm0, %v6524_v13  ;;  %5805 = vmatmul.mubr.msk.f32.gmra.mxu1 %vm424_vm0, %v6510_v11 }
  0x1f   : > { %5763 = vmatprep.mubr.msk.f32.mxu0 %vm424_vm0, %v6527_v14  ;;  %5807 = vmatprep.mubr.msk.f32.mxu1 %vm424_vm0, %v6513_v12 }
  0x22   : > { %5764 = vmatmul.mubr.msk.f32.gmra.mxu0 %vm424_vm0, %v6538_v15  ;;  %5808 = vmatmul.mubr.msk.f32.gmra.mxu1 %vm424_vm0, %v6524_v13 }
  0x23   : > { %5766 = vmatprep.mubr.msk.f32.mxu0 %vm424_vm0, %v6541_v16  ;;  %5810 = vmatprep.mubr.msk.f32.mxu1 %vm424_vm0, %v6527_v14 }
  0x26   : > { %5767 = vmatmul.mubr.msk.f32.gmra.mxu0 %vm424_vm0, %v402_v17  ;;  %5811 = vmatmul.mubr.msk.f32.gmra.mxu1 %vm424_vm0, %v6538_v15 }
  0x27   : > { %5769 = vmatprep.mubr.msk.f32.mxu0 %vm424_vm0, %v403_v18  ;;  %5813 = vmatprep.mubr.msk.f32.mxu1 %vm424_vm0, %v6541_v16 }
  0x2a   : > { %5770 = vmatmul.mubr.msk.f32.gmra.mxu0 %vm424_vm0, %v404_v19  ;;  %5814 = vmatmul.mubr.msk.f32.gmra.mxu1 %vm424_vm0, %v402_v17 }
  0x2b   : > { %5772 = vmatprep.mubr.msk.f32.mxu0 %vm424_vm0, %v405_v20  ;;  %5816 = vmatprep.mubr.msk.f32.mxu1 %vm424_vm0, %v403_v18 }
  0x2e   : > { %5773 = vmatmul.mubr.msk.f32.gmra.mxu0 %vm424_vm0, %v406_v21  ;;  %5817 = vmatmul.mubr.msk.f32.gmra.mxu1 %vm424_vm0, %v404_v19 }
  0x2f   : > { %5775 = vmatprep.mubr.msk.f32.mxu0 %vm424_vm0, %v407_v22  ;;  %5819 = vmatprep.mubr.msk.f32.mxu1 %vm424_vm0, %v405_v20 }
  0x32   : > { %5776 = vmatmul.mubr.msk.f32.gmra.mxu0 %vm424_vm0, %v408_v23  ;;  %5820 = vmatmul.mubr.msk.f32.gmra.mxu1 %vm424_vm0, %v406_v21 }
  0x33   : > { %5778 = vmatprep.mubr.msk.f32.mxu0 %vm424_vm0, %v409_v24  ;;  %5822 = vmatprep.mubr.msk.f32.mxu1 %vm424_vm0, %v407_v22 }
  0x36   : > { %5779 = vmatmul.mubr.msk.f32.gmra.mxu0 %vm424_vm0, %v410_v25  ;;  %5823 = vmatmul.mubr.msk.f32.gmra.mxu1 %vm424_vm0, %v408_v23 }
  0x37   : > { %5781 = vmatprep.mubr.msk.f32.mxu0 %vm424_vm0, %v411_v26  ;;  %5825 = vmatprep.mubr.msk.f32.mxu1 %vm424_vm0, %v409_v24 }
  0x3a   : > { %5782 = vmatmul.mubr.msk.f32.gmra.mxu0 %vm424_vm0, %v412_v27  ;;  %5826 = vmatmul.mubr.msk.f32.gmra.mxu1 %vm424_vm0, %v410_v25 }
  0x3b   : > { %5784 = vmatprep.mubr.msk.f32.mxu0 %vm424_vm0, %v413_v28  ;;  %5828 = vmatprep.mubr.msk.f32.mxu1 %vm424_vm0, %v411_v26 }
  0x3e   : > { %5785 = vmatmul.mubr.msk.f32.gmra.mxu0 %vm424_vm0, %v414_v29  ;;  %5829 = vmatmul.mubr.msk.f32.gmra.mxu1 %vm424_vm0, %v412_v27 }
  0x3f   : > { %5787 = vmatprep.mubr.msk.f32.mxu0 %vm424_vm0, %v415_v30  ;;  %5831 = vmatprep.mubr.msk.f32.mxu1 %vm424_vm0, %v413_v28 }
  0x42   : > { %5788 = vmatmul.mubr.msk.f32.gmra.mxu0 %vm424_vm0, %v416_v31  ;;  %5832 = vmatmul.mubr.msk.f32.gmra.mxu1 %vm424_vm0, %v414_v29 }
  0x43   : > { %5790 = vmatprep.mubr.msk.f32.mxu0 %vm424_vm0, %v417_v32  ;;  %5834 = vmatprep.mubr.msk.f32.mxu1 %vm424_vm0, %v415_v30 }
  0x46   : > { %5791 = vmatmul.mubr.msk.f32.gmra.mxu0 %vm424_vm0, %v418_v33  ;;  %5835 = vmatmul.mubr.msk.f32.gmra.mxu1 %vm424_vm0, %v416_v31 }
  0x47   : > { %5839 = vmatprep.mubr.msk.f32.mxu0 %vm424_vm0, %v6489_v8 }
  0x4a   : > { %5840 = vmatmul.mubr.msk.f32.vlgmr.msra.gmra.mxu0 %vm424_vm0, %v6496_v9 }
  0x4b   : > { %5842 = vmatprep.mubr.msk.f32.mxu0 %vm424_vm0, %v6500_v10  ;;  %5958 = vmatpush3.msra.mxu0 %v5183_v37 }
  0x4e   : > { %5843 = vmatmul.mubr.msk.f32.gmra.mxu0 %vm424_vm0, %v6510_v11 }
  0x4f   : > { %5845 = vmatprep.mubr.msk.f32.mxu0 %vm424_vm0, %v6513_v12 }
  0x52   : > { %5846 = vmatmul.mubr.msk.f32.gmra.mxu0 %vm424_vm0, %v6524_v13 }
  0x53   : > { %5848 = vmatprep.mubr.msk.f32.mxu0 %vm424_vm0, %v6527_v14 }
  0x56   : > { %5849 = vmatmul.mubr.msk.f32.gmra.mxu0 %vm424_vm0, %v6538_v15 }
  0x57   : > { %5851 = vmatprep.mubr.msk.f32.mxu0 %vm424_vm0, %v6541_v16 }
  0x5a   : > { %5852 = vmatmul.mubr.msk.f32.gmra.mxu0 %vm424_vm0, %v402_v17 }
  0x5b   : > { %5854 = vmatprep.mubr.msk.f32.mxu0 %vm424_vm0, %v403_v18 }
  0x5e   : > { %5855 = vmatmul.mubr.msk.f32.gmra.mxu0 %vm424_vm0, %v404_v19 }
  0x5f   : > { %5857 = vmatprep.mubr.msk.f32.mxu0 %vm424_vm0, %v405_v20 }
  0x62   : > { %5858 = vmatmul.mubr.msk.f32.gmra.mxu0 %vm424_vm0, %v406_v21 }
  0x63   : > { %5860 = vmatprep.mubr.msk.f32.mxu0 %vm424_vm0, %v407_v22 }
  0x66   : > { %5861 = vmatmul.mubr.msk.f32.gmra.mxu0 %vm424_vm0, %v408_v23 }
  0x67   : > { %5863 = vmatprep.mubr.msk.f32.mxu0 %vm424_vm0, %v409_v24 }
  0x6a   : > { %5864 = vmatmul.mubr.msk.f32.gmra.mxu0 %vm424_vm0, %v410_v25 }
  0x6b   : > { %5866 = vmatprep.mubr.msk.f32.mxu0 %vm424_vm0, %v411_v26 }
  0x6e   : > { %5867 = vmatmul.mubr.msk.f32.gmra.mxu0 %vm424_vm0, %v412_v27 }
  0x6f   : > { %5869 = vmatprep.mubr.msk.f32.mxu0 %vm424_vm0, %v413_v28  ;;  %v6720_v28 = vld [vmem:[%s7947_s2] ss:$0 sm:$0xff] }
  0x72   : > { %5870 = vmatmul.mubr.msk.f32.gmra.mxu0 %vm424_vm0, %v414_v29 }
  0x73   : > { %5872 = vmatprep.mubr.msk.f32.mxu0 %vm424_vm0, %v415_v30 }
  0x76   : > { %5873 = vmatmul.mubr.msk.f32.gmra.mxu0 %vm424_vm0, %v416_v31 }
  0x77   : > { %5875 = vmatprep.mubr.msk.f32.mxu0 %vm424_vm0, %v417_v32 }
  0x7a   : > { %5876 = vmatmul.mubr.msk.f32.gmra.mxu0 %vm424_vm0, %v418_v33 }
  0x7b   : > { %5878 = vmatprep.mubr.msk.f32.mxu0 %vm424_vm0, %v419_v35 }
  0x7e   : > { %5879 = vmatmul.mubr.msk.f32.gmra.mxu0 %vm424_vm0, %v420_v36 }
  0xd2   : > { %v6655_v39 = vpop.f32.mrf.mxu0  ;;  %v6657_v40 = vpop.f32.mrf.mxu1 }
  0xd4   : > { %v6659_v41 = vpop.f32.mrf.mxu0  ;;  %v6661_v42 = vpop.f32.mrf.mxu1 }
  0xd6   : > { %v5756_v43 = vpop.f32.mrf.mxu0  ;;  %v5800_v44 = vpop.f32.mrf.mxu1 }
  0xd7   : > { %v802_v21 = vadd.f32 %v5800_v44, %v5756_v43 }
  0xd8   : > { %v585_v45 = vpop.f32.mrf.mxu0  ;;  %v796_v47 = vpop.f32.mrf.mxu1 }
  0xd9   : > { %v797_v23 = vadd.f32 %v796_v47, %v585_v45 }
  0xda   : > { %v5759_v46 = vpop.f32.mrf.mxu0  ;;  %v5803_v50 = vpop.f32.mrf.mxu1 }
  0xdb   : > { %v812_v27 = vadd.f32 %v5803_v50, %v5759_v46 }
  0xdc   : > { %v595_v48 = vpop.f32.mrf.mxu0  ;;  %v806_v53 = vpop.f32.mrf.mxu1 }
  0xdd   : > { %v807_v32 = vadd.f32 %v806_v53, %v595_v48 }
  0xde   : > { %v5762_v49 = vpop.f32.mrf.mxu0  ;;  %v5806_v56 = vpop.f32.mrf.mxu1 }
  0xdf   : > { %v822_v37 = vadd.f32 %v5806_v56, %v5762_v49 }
  0xe0   : > { %v605_v51 = vpop.f32.mrf.mxu0  ;;  %v816_v59 = vpop.f32.mrf.mxu1 }
  0xe1   : > { %v817_v50 = vadd.f32 %v816_v59, %v605_v51 }
  0xe2   : > { %v5765_v52 = vpop.f32.mrf.mxu0  ;;  %v5809_v62 = vpop.f32.mrf.mxu1 }
  0xe3   : > { %v832_v49 = vadd.f32 %v5809_v62, %v5765_v52 }
  0xe4   : > { %v6663_v54 = vpop.f32.mrf.mxu0  ;;  %v826_v1 = vpop.f32.mrf.mxu1 }
  0xe6   : > { %v6665_v55 = vpop.f32.mrf.mxu0  ;;  %v5812_v4 = vpop.f32.mrf.mxu1 }
  0xe8   : > { %v6667_v57 = vpop.f32.mrf.mxu0  ;;  %v6687_v7 = vpop.f32.mrf.mxu1 }
  0xea   : > { %v6669_v58 = vpop.f32.mrf.mxu0  ;;  %v6693_v10 = vpop.f32.mrf.mxu1 }
  0xec   : > { %v6671_v60 = vpop.f32.mrf.mxu0  ;;  %v6699_v13 = vpop.f32.mrf.mxu1 }
  0xee   : > { %v6673_v61 = vpop.f32.mrf.mxu0  ;;  %v6705_v16 = vpop.f32.mrf.mxu1 }
  0xf0   : > { %v6675_v63 = vpop.f32.mrf.mxu0  ;;  %v6711_v19 = vpop.f32.mrf.mxu1 }
  0xf2   : > { %v6677_v0 = vpop.f32.mrf.mxu0  ;;  %v6715_v24 = vpop.f32.mrf.mxu1 }
  0xf4   : > { %v6679_v2 = vpop.f32.mrf.mxu0  ;;  %v6725_v33 = vpop.f32.mrf.mxu1 }
  0xf6   : > { %v6681_v3 = vpop.f32.mrf.mxu0 }
  0xf8   : > { %v6683_v5 = vpop.f32.mrf.mxu0 }
  0xfa   : > { %v6685_v6 = vpop.f32.mrf.mxu0 }
  0xfc   : > { %v6689_v8 = vpop.f32.mrf.mxu0 }
  0xfe   : > { %v6691_v9 = vpop.f32.mrf.mxu0 }
 0x100   : > { %v6695_v11 = vpop.f32.mrf.mxu0 }
 0x102   : > { %v6697_v12 = vpop.f32.mrf.mxu0 }
 0x104   : > { %v6701_v14 = vpop.f32.mrf.mxu0 }
 0x106   : > { %v6703_v15 = vpop.f32.mrf.mxu0 }
 0x108   : > { %v6707_v17 = vpop.f32.mrf.mxu0 }
 0x10a   : > { %v6709_v18 = vpop.f32.mrf.mxu0 }
 0x10c   : > { %v6713_v20 = vpop.f32.mrf.mxu0 }
 0x10e   : > { %v5844_v22 = vpop.f32.mrf.mxu0 }
 0x10f   : > { %v1141_v25 = vadd.f32 %v5844_v22, %v802_v21  ;;  %v6733_v21 = vpop.f32.mrf.mxu1 }
 0x110   : > { %v1009_v26 = vpop.f32.mrf.mxu0 }
 0x111   : > { %v1140_v29 = vadd.f32 %v1009_v26, %v797_v23  ;;  %v6723_v30 = vadd.f32 %v6720_v28, %v1141_v25  ;;  %v827_v26 = vadd.f32 %v826_v1, %v6663_v54 }
 0x112   : > { %v5847_v31 = vpop.f32.mrf.mxu0 }
 0x113   : > { %v6728_v34 = vadd.f32 %v6720_v28, %v1140_v29  ;;  %v1143_v35 = vadd.f32 %v5847_v31, %v812_v27  ;;  %v1204_v45 = vmax.f32 %v6723_v30, 0.0  ;;  %v6749_v27 = vpop.f32.mrf.mxu1  ;;  %v1952_v30 = vld [vmem:[%s7950_s5] sm:$0xff] }
 0x114   : > { %v1019_v36 = vpop.f32.mrf.mxu0  ;;  %6027 = vmatprep.subr.mxu0 %v1952_v30 }
 0x115   : > { %v1203_v43 = vmax.f32 %v6728_v34, 0.0  ;;  %v1142_v44 = vadd.f32 %v1019_v36, %v807_v32  ;;  %v1178_v46 = vadd.f32 %v6720_v28, %v1143_v35  ;;  %v837_v36 = vadd.f32 %v6687_v7, %v6667_v57  ;;  %v6979_v34 = vld [vmem:[%s7950_s5 + $0x10] sm:$0xff] }
 0x116   : > { %v5850_v47 = vpop.f32.mrf.mxu0  ;;  %v852_v57 = vadd.f32 %v6693_v10, %v6669_v58 }
 0x117   : > { %v1177_v48 = vadd.f32 %v6720_v28, %v1142_v44  ;;  %v1145_v53 = vadd.f32 %v5850_v47, %v822_v37  ;;  %5883 = vmatprep.mubr.msk.f32.mxu1 %vm424_vm0, %v1203_v43  ;;  %v6745_v51 = vmax.f32 %v1178_v46, 0.0  ;;  %v6768_v37 = vpop.f32.mrf.mxu1 }
 0x118   : > { %v1029_v22 = vpop.f32.mrf.mxu0  ;;  %5884 = vmatmul.mubr.msk.f32.vlgmr.msra.gmra.mxu1 %vm424_vm0, %v1204_v45 }
 0x119   : > { %v6742_v56 = vmax.f32 %v1177_v48, 0.0  ;;  %v1144_v23 = vadd.f32 %v1029_v22, %v817_v50  ;;  %5920 = vmatpush3.msra.mxu1 %v6652_v38  ;;  %v1180_v59 = vadd.f32 %v6720_v28, %v1145_v53  ;;  %v842_v38 = vadd.f32 %v5812_v4, %v6665_v55  ;;  %v886_v22 = vpop.f32.mrf.mxu1 }
 0x11a   : > { %v5853_v25 = vpop.f32.mrf.mxu0  ;;  %v847_v53 = vadd.f32 %v6699_v13, %v6671_v60  ;;  %v862_v60 = vadd.f32 %v6705_v16, %v6673_v61 }
 0x11b   : > { %v1179_v29 = vadd.f32 %v6720_v28, %v1144_v23  ;;  %v1147_v31 = vadd.f32 %v5853_v25, %v832_v49  ;;  %5886 = vmatprep.mubr.msk.f32.mxu1 %vm424_vm0, %v6742_v56  ;;  %5959 = vmatprep.mubr.msk.f32.mxu0 %vm424_vm0, %v6742_v56  ;;  %v6763_v1 = vmax.f32 %v1180_v59, 0.0 }
 0x11c   : > { %v1039_v52 = vpop.f32.mrf.mxu0  ;;  %5887 = vmatmul.mubr.msk.f32.gmra.mxu1 %vm424_vm0, %v6745_v51  ;;  %5960 = vmatmul.mubr.msk.f32.vlgmr.msra.gmra.mxu0 %vm424_vm0, %v6745_v51 }
 0x11d   : > { %v6761_v54 = vmax.f32 %v1179_v29, 0.0  ;;  %v1146_v62 = vadd.f32 %v1039_v52, %v827_v26  ;;  %v1182_v32 = vadd.f32 %v6720_v28, %v1147_v31  ;;  %v857_v29 = vadd.f32 %v6711_v19, %v6675_v63  ;;  %v5830_v31 = vpop.f32.mrf.mxu1  ;;  %6028 = vmatpush3.msra.mxu0 %v1952_v30 }
 0x11e   : > { %v5856_v35 = vpop.f32.mrf.mxu0  ;;  %v872_v63 = vadd.f32 %v6715_v24, %v6677_v0 }
 0x11f   : > { %v1181_v44 = vadd.f32 %v6720_v28, %v1146_v62  ;;  %v1149_v46 = vadd.f32 %v5856_v35, %v842_v38  ;;  %5889 = vmatprep.mubr.msk.f32.mxu1 %vm424_vm0, %v6761_v54  ;;  %5962 = vmatprep.mubr.msk.f32.mxu0 %vm424_vm0, %v6761_v54  ;;  %v6783_v47 = vmax.f32 %v1182_v32, 0.0 }
 0x120   : > { %v1049_v55 = vpop.f32.mrf.mxu0  ;;  %5890 = vmatmul.mubr.msk.f32.gmra.mxu1 %vm424_vm0, %v6763_v1  ;;  %5963 = vmatmul.mubr.msk.f32.gmra.mxu0 %vm424_vm0, %v6763_v1 }
 0x121   : > { %v6781_v4 = vmax.f32 %v1181_v44, 0.0  ;;  %v1148_v7 = vadd.f32 %v1049_v55, %v837_v36  ;;  %v1184_v50 = vadd.f32 %v6720_v28, %v1149_v46  ;;  %v867_v36 = vadd.f32 %v6725_v33, %v6679_v2  ;;  %v896_v44 = vpop.f32.mrf.mxu1 }
 0x122   : > { %v5859_v48 = vpop.f32.mrf.mxu0  ;;  %v882_v2 = vadd.f32 %v6733_v21, %v6681_v3 }
 0x123   : > { %v1183_v49 = vadd.f32 %v6720_v28, %v1148_v7  ;;  %v1151_v23 = vadd.f32 %v5859_v48, %v852_v57  ;;  %5892 = vmatprep.mubr.msk.f32.mxu1 %vm424_vm0, %v6781_v4  ;;  %5965 = vmatprep.mubr.msk.f32.mxu0 %vm424_vm0, %v6781_v4  ;;  %v6801_v59 = vmax.f32 %v1184_v50, 0.0  ;;  %v877_v48 = vadd.f32 %v6749_v27, %v6683_v5 }
 0x124   : > { %v1059_v58 = vpop.f32.mrf.mxu0  ;;  %5893 = vmatmul.mubr.msk.f32.gmra.mxu1 %vm424_vm0, %v6783_v47  ;;  %5966 = vmatmul.mubr.msk.f32.gmra.mxu0 %vm424_vm0, %v6783_v47  ;;  %v892_v5 = vadd.f32 %v6768_v37, %v6685_v6  ;;  %v902_v37 = vadd.f32 %v5830_v31, %v6691_v9 }
 0x125   : > { %v6799_v10 = vmax.f32 %v1183_v49, 0.0  ;;  %v1150_v13 = vadd.f32 %v1059_v58, %v847_v53  ;;  %v1186_v25 = vadd.f32 %v6720_v28, %v1151_v23  ;;  %v5833_v53 = vpop.f32.mrf.mxu1 }
 0x126   : > { %v5862_v26 = vpop.f32.mrf.mxu0  ;;  %v912_v31 = vadd.f32 %v5833_v53, %v6697_v12 }
 0x127   : > { %v1185_v52 = vadd.f32 %v6720_v28, %v1150_v13  ;;  %v1153_v38 = vadd.f32 %v5862_v26, %v862_v60  ;;  %5895 = vmatprep.mubr.msk.f32.mxu1 %vm424_vm0, %v6799_v10  ;;  %5968 = vmatprep.mubr.msk.f32.mxu0 %vm424_vm0, %v6799_v10  ;;  %v6819_v62 = vmax.f32 %v1186_v25, 0.0  ;;  %v887_v25 = vadd.f32 %v886_v22, %v6689_v8  ;;  %v906_v26 = vpop.f32.mrf.mxu1 }
 0x128   : > { %v1069_v61 = vpop.f32.mrf.mxu0  ;;  %5896 = vmatmul.mubr.msk.f32.gmra.mxu1 %vm424_vm0, %v6801_v59  ;;  %5969 = vmatmul.mubr.msk.f32.gmra.mxu0 %vm424_vm0, %v6801_v59 }
 0x129   : > { %v6817_v16 = vmax.f32 %v1185_v52, 0.0  ;;  %v1152_v19 = vadd.f32 %v1069_v61, %v857_v29  ;;  %v1188_v32 = vadd.f32 %v6720_v28, %v1153_v38 }
 0x12a   : > { %v5865_v35 = vpop.f32.mrf.mxu0 }
 0x12b   : > { %v1187_v46 = vadd.f32 %v6720_v28, %v1152_v19  ;;  %v1155_v55 = vadd.f32 %v5865_v35, %v872_v63  ;;  %5898 = vmatprep.mubr.msk.f32.mxu1 %vm424_vm0, %v6817_v16  ;;  %5971 = vmatprep.mubr.msk.f32.mxu0 %vm424_vm0, %v6817_v16  ;;  %v6837_v57 = vmax.f32 %v1188_v32, 0.0  ;;  %v897_v19 = vadd.f32 %v896_v44, %v6695_v11  ;;  %v5836_v32 = vpop.f32.mrf.mxu1 }
 0x12c   : > { %v1079_v0 = vpop.f32.mrf.mxu0  ;;  %5899 = vmatmul.mubr.msk.f32.gmra.mxu1 %vm424_vm0, %v6819_v62  ;;  %5972 = vmatmul.mubr.msk.f32.gmra.mxu0 %vm424_vm0, %v6819_v62  ;;  %v787_v11 = vadd.f32 %v6661_v42, %v6659_v41  ;;  %v792_v41 = vadd.f32 %v6657_v40, %v6655_v39  ;;  %v922_v12 = vadd.f32 %v5836_v32, %v6703_v15 }
 0x12d   : > { %v6835_v24 = vmax.f32 %v1187_v46, 0.0  ;;  %v1154_v33 = vadd.f32 %v1079_v0, %v867_v36  ;;  %v1190_v7 = vadd.f32 %v6720_v28, %v1155_v55  ;;  %v907_v55 = vadd.f32 %v906_v26, %v6701_v14 }
 0x12e   : > { %v5868_v50 = vpop.f32.mrf.mxu0 }
 0x12f   : > { %v1189_v49 = vadd.f32 %v6720_v28, %v1154_v33  ;;  %v1157_v23 = vadd.f32 %v5868_v50, %v882_v2  ;;  %5901 = vmatprep.mubr.msk.f32.mxu1 %vm424_vm0, %v6835_v24  ;;  %5974 = vmatprep.mubr.msk.f32.mxu0 %vm424_vm0, %v6835_v24  ;;  %v6855_v58 = vmax.f32 %v1190_v7, 0.0  ;;  %v916_v7 = vpop.f32.mrf.mxu1  ;;  %v1138_v50 = vadd.f32 %v6713_v20, %v787_v11 }
 0x130   : > { %v1089_v3 = vpop.f32.mrf.mxu0  ;;  %5902 = vmatmul.mubr.msk.f32.gmra.mxu1 %vm424_vm0, %v6837_v57  ;;  %5975 = vmatmul.mubr.msk.f32.gmra.mxu0 %vm424_vm0, %v6837_v57  ;;  %v917_v53 = vadd.f32 %v916_v7, %v6707_v17 }
 0x131   : > { %v6853_v21 = vmax.f32 %v1189_v49, 0.0  ;;  %v1156_v27 = vadd.f32 %v1089_v3, %v877_v48  ;;  %v1192_v60 = vadd.f32 %v6720_v28, %v1157_v23  ;;  %v1139_v23 = vadd.f32 %v6709_v18, %v792_v41 }
 0x132   : > { %v5871_v13 = vpop.f32.mrf.mxu0  ;;  %v1173_v39 = vadd.f32 %v6720_v28, %v1138_v50 }
 0x133   : > { %v1191_v29 = vadd.f32 %v6720_v28, %v1156_v27  ;;  %v1159_v52 = vadd.f32 %v5871_v13, %v892_v5  ;;  %5904 = vmatprep.mubr.msk.f32.mxu1 %vm424_vm0, %v6853_v21  ;;  %5977 = vmatprep.mubr.msk.f32.mxu0 %vm424_vm0, %v6853_v21  ;;  %v6871_v38 = vmax.f32 %v1192_v60, 0.0  ;;  %v1174_v13 = vadd.f32 %v6720_v28, %v1139_v23 }
 0x134   : > { %v1099_v6 = vpop.f32.mrf.mxu0  ;;  %5905 = vmatmul.mubr.msk.f32.gmra.mxu1 %vm424_vm0, %v6855_v58  ;;  %5978 = vmatmul.mubr.msk.f32.gmra.mxu0 %vm424_vm0, %v6855_v58 }
 0x135   : > { %v6869_v8 = vmax.f32 %v1191_v29, 0.0  ;;  %v1158_v22 = vadd.f32 %v1099_v6, %v887_v25  ;;  %v1194_v61 = vadd.f32 %v6720_v28, %v1159_v52  ;;  %v1201_v29 = vmax.f32 %v1173_v39, 0.0 }
 0x136   : > { %v5874_v63 = vpop.f32.mrf.mxu0 }
 0x137   : > { %v1193_v35 = vadd.f32 %v6720_v28, %v1158_v22  ;;  %v1161_v36 = vadd.f32 %v5874_v63, %v902_v37  ;;  %5907 = vmatprep.mubr.msk.f32.mxu1 %vm424_vm0, %v6869_v8  ;;  %5980 = vmatprep.mubr.msk.f32.mxu0 %vm424_vm0, %v6869_v8  ;;  %v6890_v0 = vmax.f32 %v1194_v61, 0.0  ;;  %v1202_v37 = vmax.f32 %v1174_v13, 0.0 }
 0x138   : > { %v1109_v9 = vpop.f32.mrf.mxu0  ;;  %5908 = vmatmul.mubr.msk.f32.gmra.mxu1 %vm424_vm0, %v6871_v38  ;;  %5981 = vmatmul.mubr.msk.f32.gmra.mxu0 %vm424_vm0, %v6871_v38 }
 0x139   : > { %v6887_v44 = vmax.f32 %v1193_v35, 0.0  ;;  %v1160_v46 = vadd.f32 %v1109_v9, %v897_v19  ;;  %v1196_v2 = vadd.f32 %v6720_v28, %v1161_v36 }
 0x13a   : > { %v5877_v33 = vpop.f32.mrf.mxu0 }
 0x13b   : > { %v1195_v48 = vadd.f32 %v6720_v28, %v1160_v46  ;;  %v1163_v49 = vadd.f32 %v5877_v33, %v912_v31  ;;  %5910 = vmatprep.mubr.msk.f32.mxu1 %vm424_vm0, %v6887_v44  ;;  %5983 = vmatprep.mubr.msk.f32.mxu0 %vm424_vm0, %v6887_v44  ;;  %v1224_v3 = vmax.f32 %v1196_v2, 0.0 }
 0x13c   : > { %v1119_v42 = vpop.f32.mrf.mxu0  ;;  %5911 = vmatmul.mubr.msk.f32.gmra.mxu1 %vm424_vm0, %v6890_v0  ;;  %5984 = vmatmul.mubr.msk.f32.gmra.mxu0 %vm424_vm0, %v6890_v0 }
 0x13d   : > { %v1223_v14 = vmax.f32 %v1195_v48, 0.0  ;;  %v1162_v20 = vadd.f32 %v1119_v42, %v907_v55  ;;  %v1198_v5 = vadd.f32 %v6720_v28, %v1163_v49 }
 0x13e   : > { %v5880_v27 = vpop.f32.mrf.mxu0 }
 0x13f   : > { %v1197_v40 = vadd.f32 %v6720_v28, %v1162_v20  ;;  %v1165_v60 = vadd.f32 %v5880_v27, %v922_v12  ;;  %5913 = vmatprep.mubr.msk.f32.mxu1 %vm424_vm0, %v1223_v14  ;;  %5986 = vmatprep.mubr.msk.f32.mxu0 %vm424_vm0, %v1223_v14  ;;  %v1226_v25 = vmax.f32 %v1198_v5, 0.0 }
 0x140   : > { %v1129_v15 = vpop.f32.mrf.mxu0  ;;  %5914 = vmatmul.mubr.msk.f32.gmra.mxu1 %vm424_vm0, %v1224_v3  ;;  %5987 = vmatmul.mubr.msk.f32.gmra.mxu0 %vm424_vm0, %v1224_v3 }
 0x141   : > { %v1225_v17 = vmax.f32 %v1197_v40, 0.0  ;;  %v1164_v18 = vadd.f32 %v1129_v15, %v917_v53  ;;  %v1200_v26 = vadd.f32 %v6720_v28, %v1165_v60 }
 0x143   : > { %v1199_v52 = vadd.f32 %v6720_v28, %v1164_v18  ;;  %5916 = vmatprep.mubr.msk.f32.mxu1 %vm424_vm0, %v1225_v17  ;;  %5989 = vmatprep.mubr.msk.f32.mxu0 %vm424_vm0, %v1225_v17  ;;  %v1228_v22 = vmax.f32 %v1200_v26, 0.0  ;;  %v5209_v28 = vld [vmem:[%s7950_s5 + $0x8] sm:$0xff] }
 0x144   : > { %5917 = vmatmul.mubr.msk.f32.gmra.mxu1 %vm424_vm0, %v1226_v25  ;;  %5990 = vmatmul.mubr.msk.f32.gmra.mxu0 %vm424_vm0, %v1226_v25 }
 0x145   : > { %v1227_v6 = vmax.f32 %v1199_v52, 0.0  ;;  %5921 = vmatprep.mubr.msk.f32.mxu1 %vm424_vm0, %v1201_v29  ;;  %5995 = vmatprep.subr.mxu1 %v5209_v28 }
 0x147   : > { %5992 = vmatprep.mubr.msk.f32.mxu0 %vm424_vm0, %v1227_v6 }
 0x148   : > { %5922 = vmatmul.mubr.msk.f32.vlgmr.msra.gmra.mxu1 %vm424_vm0, %v1202_v37  ;;  %5993 = vmatmul.mubr.msk.f32.gmra.mxu0 %vm424_vm0, %v1228_v22 }
 0x149   : > { %5924 = vmatprep.mubr.msk.f32.mxu1 %vm424_vm0, %v1203_v43  ;;  %5996 = vmatpush3.msra.mxu1 %v5209_v28 }
 0x14a   : > { %6059 = vmatprep.subr.mxu1 %v6979_v34 }
 0x14c   : > { %5925 = vmatmul.mubr.msk.f32.gmra.mxu1 %vm424_vm0, %v1204_v45 }
 0x14d   : > { %5927 = vmatprep.mubr.msk.f32.mxu1 %vm424_vm0, %v6742_v56 }
 0x150   : > { %5928 = vmatmul.mubr.msk.f32.gmra.mxu1 %vm424_vm0, %v6745_v51 }
 0x151   : > { %5930 = vmatprep.mubr.msk.f32.mxu1 %vm424_vm0, %v6761_v54 }
 0x154   : > { %5931 = vmatmul.mubr.msk.f32.gmra.mxu1 %vm424_vm0, %v6763_v1 }
 0x155   : > { %5933 = vmatprep.mubr.msk.f32.mxu1 %vm424_vm0, %v6781_v4 }
 0x158   : > { %5934 = vmatmul.mubr.msk.f32.gmra.mxu1 %vm424_vm0, %v6783_v47 }
 0x159   : > { %5936 = vmatprep.mubr.msk.f32.mxu1 %vm424_vm0, %v6799_v10 }
 0x15c   : > { %5937 = vmatmul.mubr.msk.f32.gmra.mxu1 %vm424_vm0, %v6801_v59 }
 0x15d   : > { %5939 = vmatprep.mubr.msk.f32.mxu1 %vm424_vm0, %v6817_v16 }
 0x160   : > { %5940 = vmatmul.mubr.msk.f32.gmra.mxu1 %vm424_vm0, %v6819_v62 }
 0x161   : > { %5942 = vmatprep.mubr.msk.f32.mxu1 %vm424_vm0, %v6835_v24 }
 0x164   : > { %5943 = vmatmul.mubr.msk.f32.gmra.mxu1 %vm424_vm0, %v6837_v57 }
 0x165   : > { %5945 = vmatprep.mubr.msk.f32.mxu1 %vm424_vm0, %v6853_v21 }
 0x168   : > { %5946 = vmatmul.mubr.msk.f32.gmra.mxu1 %vm424_vm0, %v6855_v58 }
 0x169   : > { %5948 = vmatprep.mubr.msk.f32.mxu1 %vm424_vm0, %v6869_v8 }
 0x16c   : > { %5949 = vmatmul.mubr.msk.f32.gmra.mxu1 %vm424_vm0, %v6871_v38 }
 0x16d   : > { %5951 = vmatprep.mubr.msk.f32.mxu1 %vm424_vm0, %v6887_v44 }
 0x170   : > { %5952 = vmatmul.mubr.msk.f32.gmra.mxu1 %vm424_vm0, %v6890_v0 }
 0x171   : > { %5954 = vmatprep.mubr.msk.f32.mxu1 %vm424_vm0, %v1223_v14  ;;  %v7027_v14 = vld [vmem:[%s7949_s4] ss:$0 sm:$0xff] }
 0x174   : > { %5955 = vmatmul.mubr.msk.f32.gmra.mxu1 %vm424_vm0, %v1224_v3 }
 0x1d8   : > { %v5885_v43 = vpop.f32.mrf.mxu1 }
 0x1da   : > { %v1370_v45 = vpop.f32.mrf.mxu1 }
 0x1dc   : > { %v5888_v56 = vpop.f32.mrf.mxu1  ;;  %v5961_v51 = vpop.f32.mrf.mxu0 }
 0x1de   : > { %v1380_v54 = vpop.f32.mrf.mxu1  ;;  %v1754_v1 = vpop.f32.mrf.mxu0 }
 0x1e0   : > { %v5891_v4 = vpop.f32.mrf.mxu1  ;;  %v5964_v10 = vpop.f32.mrf.mxu0 }
 0x1e2   : > { %v1390_v47 = vpop.f32.mrf.mxu1  ;;  %v1764_v62 = vpop.f32.mrf.mxu0 }
 0x1e4   : > { %v5894_v59 = vpop.f32.mrf.mxu1  ;;  %v5967_v21 = vpop.f32.mrf.mxu0 }
 0x1e6   : > { %v6982_v16 = vpop.f32.mrf.mxu1  ;;  %v1774_v38 = vpop.f32.mrf.mxu0 }
 0x1e8   : > { %v6984_v24 = vpop.f32.mrf.mxu1  ;;  %v5970_v19 = vpop.f32.mrf.mxu0 }
 0x1ea   : > { %v6986_v57 = vpop.f32.mrf.mxu1  ;;  %v1784_v36 = vpop.f32.mrf.mxu0 }
 0x1ec   : > { %v6988_v58 = vpop.f32.mrf.mxu1  ;;  %v7004_v31 = vpop.f32.mrf.mxu0 }
 0x1ee   : > { %v6990_v8 = vpop.f32.mrf.mxu1  ;;  %v7010_v55 = vpop.f32.mrf.mxu0 }
 0x1f0   : > { %v6992_v61 = vpop.f32.mrf.mxu1  ;;  %v7016_v33 = vpop.f32.mrf.mxu0 }
 0x1f2   : > { %v6994_v63 = vpop.f32.mrf.mxu1  ;;  %v7022_v48 = vpop.f32.mrf.mxu0 }
 0x1f4   : > { %v6996_v32 = vpop.f32.mrf.mxu1  ;;  %v7029_v53 = vpop.f32.mrf.mxu0 }
 0x1f6   : > { %v6998_v35 = vpop.f32.mrf.mxu1  ;;  %v7033_v17 = vpop.f32.mrf.mxu0 }
 0x1f8   : > { %v7000_v9 = vpop.f32.mrf.mxu1  ;;  %v7038_v30 = vpop.f32.mrf.mxu0 }
 0x1fa   : > { %v7002_v11 = vpop.f32.mrf.mxu1 }
 0x1fc   : > { %v7006_v44 = vpop.f32.mrf.mxu1 }
 0x1fe   : > { %v7008_v46 = vpop.f32.mrf.mxu1 }
 0x200   : > { %v7012_v0 = vpop.f32.mrf.mxu1 }
 0x202   : > { %v7014_v2 = vpop.f32.mrf.mxu1 }
 0x204   : > { %v7018_v7 = vpop.f32.mrf.mxu1 }
 0x206   : > { %v7020_v50 = vpop.f32.mrf.mxu1 }
 0x208   : > { %v5923_v49 = vpop.f32.mrf.mxu1 }
 0x209   : > { %v1567_v41 = vadd.f32 %v5923_v49, %v5885_v43 }
 0x20a   : > { %v1561_v42 = vpop.f32.mrf.mxu1 }
 0x20b   : > { %v1874_v12 = vadd.f32 %v5961_v51, %v1567_v41  ;;  %v1562_v20 = vadd.f32 %v1561_v42, %v1370_v45 }
 0x20c   : > { %v5926_v23 = vpop.f32.mrf.mxu1 }
 0x20d   : > { %v1873_v3 = vadd.f32 %v1754_v1, %v1562_v20  ;;  %v1577_v5 = vadd.f32 %v5926_v23, %v5888_v56  ;;  %v1905_v27 = vadd.f32 %v7027_v14, %v1874_v12 }
 0x20e   : > { %v1571_v39 = vpop.f32.mrf.mxu1 }
 0x20f   : > { %v1904_v40 = vadd.f32 %v7027_v14, %v1873_v3  ;;  %v1876_v60 = vadd.f32 %v5964_v10, %v1577_v5  ;;  %v1572_v15 = vadd.f32 %v1571_v39, %v1380_v54  ;;  %v1929_v29 = vmax.f32 %v1905_v27, 0.0 }
 0x210   : > { %v5929_v18 = vpop.f32.mrf.mxu1 }
 0x211   : > { %v1928_v13 = vmax.f32 %v1904_v40, 0.0  ;;  %v1875_v25 = vadd.f32 %v1764_v62, %v1572_v15  ;;  %v1587_v26 = vadd.f32 %v5929_v18, %v5891_v4  ;;  %v1907_v52 = vadd.f32 %v7027_v14, %v1876_v60 }
 0x212   : > { %v1581_v6 = vpop.f32.mrf.mxu1 }
 0x213   : > { %v1906_v37 = vadd.f32 %v7027_v14, %v1875_v25  ;;  %v1878_v22 = vadd.f32 %v5967_v21, %v1587_v26  ;;  %v1582_v28 = vadd.f32 %v1581_v6, %v1390_v47  ;;  %6029 = vmatprep.mubr.msk.f32.mxu0 %vm424_vm0, %v1928_v13  ;;  %v1931_v54 = vmax.f32 %v1907_v52, 0.0  ;;  %v7046_v47 = vpop.f32.mrf.mxu0 }
 0x214   : > { %v5932_v43 = vpop.f32.mrf.mxu1  ;;  %6030 = vmatmul.mubr.msk.f32.vlgmr.msra.gmra.mxu0 %vm424_vm0, %v1929_v29 }
 0x215   : > { %v1930_v45 = vmax.f32 %v1906_v37, 0.0  ;;  %v1877_v56 = vadd.f32 %v1774_v38, %v1582_v28  ;;  %v1597_v51 = vadd.f32 %v5932_v43, %v5894_v59  ;;  %v1909_v1 = vadd.f32 %v7027_v14, %v1878_v22 }
 0x216   : > { %v1591_v4 = vpop.f32.mrf.mxu1 }
 0x217   : > { %v1908_v10 = vadd.f32 %v7027_v14, %v1877_v56  ;;  %v1880_v62 = vadd.f32 %v5970_v19, %v1597_v51  ;;  %v1592_v21 = vadd.f32 %v1591_v4, %v6982_v16  ;;  %5997 = vmatprep.mubr.msk.f32.mxu1 %vm424_vm0, %v1930_v45  ;;  %6032 = vmatprep.mubr.msk.f32.mxu0 %vm424_vm0, %v1930_v45  ;;  %v7054_v19 = vmax.f32 %v1909_v1, 0.0 }
 0x218   : > { %v5935_v49 = vpop.f32.mrf.mxu1  ;;  %5998 = vmatmul.mubr.msk.f32.vlgmr.msra.gmra.mxu1 %vm424_vm0, %v1931_v54  ;;  %6033 = vmatmul.mubr.msk.f32.gmra.mxu0 %vm424_vm0, %v1931_v54 }
 0x219   : > { %v7050_v59 = vmax.f32 %v1908_v10, 0.0  ;;  %v1879_v38 = vadd.f32 %v1784_v36, %v1592_v21  ;;  %v1607_v41 = vadd.f32 %v5935_v49, %v6984_v24  ;;  %6060 = vmatpush3.msra.mxu1 %v6979_v34  ;;  %v1911_v16 = vadd.f32 %v7027_v14, %v1880_v62  ;;  %v5985_v24 = vpop.f32.mrf.mxu0 }
 0x21a   : > { %v1601_v42 = vpop.f32.mrf.mxu1 }
 0x21b   : > { %v1910_v12 = vadd.f32 %v7027_v14, %v1879_v38  ;;  %v1882_v20 = vadd.f32 %v7004_v31, %v1607_v41  ;;  %v1602_v23 = vadd.f32 %v1601_v42, %v6986_v57  ;;  %6000 = vmatprep.mubr.msk.f32.mxu1 %vm424_vm0, %v7050_v59  ;;  %6035 = vmatprep.mubr.msk.f32.mxu0 %vm424_vm0, %v7050_v59  ;;  %v7072_v3 = vmax.f32 %v1911_v16, 0.0 }
 0x21c   : > { %v5938_v36 = vpop.f32.mrf.mxu1  ;;  %6001 = vmatmul.mubr.msk.f32.gmra.mxu1 %vm424_vm0, %v7054_v19  ;;  %6036 = vmatmul.mubr.msk.f32.gmra.mxu0 %vm424_vm0, %v7054_v19 }
 0x21d   : > { %v7068_v34 = vmax.f32 %v1910_v12, 0.0  ;;  %v1881_v31 = vadd.f32 %v7010_v55, %v1602_v23  ;;  %v1617_v57 = vadd.f32 %v5938_v36, %v6988_v58  ;;  %v1913_v5 = vadd.f32 %v7027_v14, %v1882_v20  ;;  %v1834_v55 = vpop.f32.mrf.mxu0 }
 0x21e   : > { %v1611_v27 = vpop.f32.mrf.mxu1 }
 0x21f   : > { %v1912_v39 = vadd.f32 %v7027_v14, %v1881_v31  ;;  %v1884_v40 = vadd.f32 %v7016_v33, %v1617_v57  ;;  %v1612_v60 = vadd.f32 %v1611_v27, %v6990_v8  ;;  %6003 = vmatprep.mubr.msk.f32.mxu1 %vm424_vm0, %v7068_v34  ;;  %6038 = vmatprep.mubr.msk.f32.mxu0 %vm424_vm0, %v7068_v34  ;;  %v7090_v18 = vmax.f32 %v1913_v5, 0.0 }
 0x220   : > { %v5941_v15 = vpop.f32.mrf.mxu1  ;;  %6004 = vmatmul.mubr.msk.f32.gmra.mxu1 %vm424_vm0, %v7072_v3  ;;  %6039 = vmatmul.mubr.msk.f32.gmra.mxu0 %vm424_vm0, %v7072_v3 }
 0x221   : > { %v7086_v58 = vmax.f32 %v1912_v39, 0.0  ;;  %v1883_v33 = vadd.f32 %v7022_v48, %v1612_v60  ;;  %v1627_v8 = vadd.f32 %v5941_v15, %v6992_v61  ;;  %v1915_v13 = vadd.f32 %v7027_v14, %v1884_v40  ;;  %v5988_v48 = vpop.f32.mrf.mxu0 }
 0x222   : > { %v1621_v25 = vpop.f32.mrf.mxu1 }
 0x223   : > { %v1914_v26 = vadd.f32 %v7027_v14, %v1883_v33  ;;  %v1886_v29 = vadd.f32 %v7029_v53, %v1627_v8  ;;  %v1622_v52 = vadd.f32 %v1621_v25, %v6994_v63  ;;  %6006 = vmatprep.mubr.msk.f32.mxu1 %vm424_vm0, %v7086_v58  ;;  %6041 = vmatprep.mubr.msk.f32.mxu0 %vm424_vm0, %v7086_v58  ;;  %v7108_v37 = vmax.f32 %v1915_v13, 0.0 }
 0x224   : > { %v5944_v6 = vpop.f32.mrf.mxu1  ;;  %6007 = vmatmul.mubr.msk.f32.gmra.mxu1 %vm424_vm0, %v7090_v18  ;;  %6042 = vmatmul.mubr.msk.f32.gmra.mxu0 %vm424_vm0, %v7090_v18 }
 0x225   : > { %v7104_v61 = vmax.f32 %v1914_v26, 0.0  ;;  %v1885_v53 = vadd.f32 %v7033_v17, %v1622_v52  ;;  %v1637_v63 = vadd.f32 %v5944_v6, %v6996_v32  ;;  %v1917_v22 = vadd.f32 %v7027_v14, %v1886_v29  ;;  %v1844_v17 = vpop.f32.mrf.mxu0 }
 0x226   : > { %v1631_v28 = vpop.f32.mrf.mxu1 }
 0x227   : > { %v1916_v43 = vadd.f32 %v7027_v14, %v1885_v53  ;;  %v1888_v45 = vadd.f32 %v7038_v30, %v1637_v63  ;;  %v1632_v56 = vadd.f32 %v1631_v28, %v6998_v35  ;;  %6009 = vmatprep.mubr.msk.f32.mxu1 %vm424_vm0, %v7104_v61  ;;  %6044 = vmatprep.mubr.msk.f32.mxu0 %vm424_vm0, %v7104_v61  ;;  %v7126_v54 = vmax.f32 %v1917_v22, 0.0  ;;  %v5991_v49 = vpop.f32.mrf.mxu0 }
 0x228   : > { %v5947_v51 = vpop.f32.mrf.mxu1  ;;  %6010 = vmatmul.mubr.msk.f32.gmra.mxu1 %vm424_vm0, %v7108_v37  ;;  %6045 = vmatmul.mubr.msk.f32.gmra.mxu0 %vm424_vm0, %v7108_v37 }
 0x229   : > { %v7122_v32 = vmax.f32 %v1916_v43, 0.0  ;;  %v1887_v30 = vadd.f32 %v7046_v47, %v1632_v56  ;;  %v1647_v35 = vadd.f32 %v5947_v51, %v7000_v9  ;;  %v1919_v1 = vadd.f32 %v7027_v14, %v1888_v45 }
 0x22a   : > { %v1641_v4 = vpop.f32.mrf.mxu1 }
 0x22b   : > { %v1918_v10 = vadd.f32 %v7027_v14, %v1887_v30  ;;  %v1890_v62 = vadd.f32 %v5985_v24, %v1647_v35  ;;  %v1642_v21 = vadd.f32 %v1641_v4, %v7002_v11  ;;  %6012 = vmatprep.mubr.msk.f32.mxu1 %vm424_vm0, %v7122_v32  ;;  %6047 = vmatprep.mubr.msk.f32.mxu0 %vm424_vm0, %v7122_v32  ;;  %v1943_v16 = vmax.f32 %v1919_v1, 0.0  ;;  %v1854_v24 = vpop.f32.mrf.mxu0 }
 0x22c   : > { %v5950_v47 = vpop.f32.mrf.mxu1  ;;  %6013 = vmatmul.mubr.msk.f32.gmra.mxu1 %vm424_vm0, %v7126_v54  ;;  %6048 = vmatmul.mubr.msk.f32.gmra.mxu0 %vm424_vm0, %v7126_v54 }
 0x22d   : > { %v1942_v9 = vmax.f32 %v1918_v10, 0.0  ;;  %v1889_v38 = vadd.f32 %v1834_v55, %v1642_v21  ;;  %v1657_v41 = vadd.f32 %v5950_v47, %v7006_v44  ;;  %v1921_v11 = vadd.f32 %v7027_v14, %v1890_v62  ;;  %v5994_v55 = vpop.f32.mrf.mxu0 }
 0x22e   : > { %v1651_v42 = vpop.f32.mrf.mxu1 }
 0x22f   : > { %v1920_v12 = vadd.f32 %v7027_v14, %v1889_v38  ;;  %v1892_v20 = vadd.f32 %v5988_v48, %v1657_v41  ;;  %v1652_v23 = vadd.f32 %v1651_v42, %v7008_v46  ;;  %6015 = vmatprep.mubr.msk.f32.mxu1 %vm424_vm0, %v1942_v9  ;;  %6050 = vmatprep.mubr.msk.f32.mxu0 %vm424_vm0, %v1942_v9  ;;  %v1945_v5 = vmax.f32 %v1921_v11, 0.0  ;;  %v1864_v48 = vpop.f32.mrf.mxu0 }
 0x230   : > { %v5953_v36 = vpop.f32.mrf.mxu1  ;;  %6016 = vmatmul.mubr.msk.f32.gmra.mxu1 %vm424_vm0, %v1943_v16  ;;  %6051 = vmatmul.mubr.msk.f32.gmra.mxu0 %vm424_vm0, %v1943_v16 }
 0x231   : > { %v1944_v44 = vmax.f32 %v1920_v12, 0.0  ;;  %v1891_v31 = vadd.f32 %v1844_v17, %v1652_v23  ;;  %v1667_v57 = vadd.f32 %v5953_v36, %v7012_v0  ;;  %v1923_v27 = vadd.f32 %v7027_v14, %v1892_v20 }
 0x232   : > { %v1661_v39 = vpop.f32.mrf.mxu1 }
 0x233   : > { %v1922_v46 = vadd.f32 %v7027_v14, %v1891_v31  ;;  %v1894_v40 = vadd.f32 %v5991_v49, %v1667_v57  ;;  %v1662_v60 = vadd.f32 %v1661_v39, %v7014_v2  ;;  %6018 = vmatprep.mubr.msk.f32.mxu1 %vm424_vm0, %v1944_v44  ;;  %6053 = vmatprep.mubr.msk.f32.mxu0 %vm424_vm0, %v1944_v44  ;;  %v1947_v13 = vmax.f32 %v1923_v27, 0.0 }
 0x234   : > { %v5956_v15 = vpop.f32.mrf.mxu1  ;;  %6019 = vmatmul.mubr.msk.f32.gmra.mxu1 %vm424_vm0, %v1945_v5  ;;  %6054 = vmatmul.mubr.msk.f32.gmra.mxu0 %vm424_vm0, %v1945_v5 }
 0x235   : > { %v1946_v0 = vmax.f32 %v1922_v46, 0.0  ;;  %v1893_v33 = vadd.f32 %v1854_v24, %v1662_v60  ;;  %v1677_v8 = vadd.f32 %v5956_v15, %v7018_v7  ;;  %v1925_v25 = vadd.f32 %v7027_v14, %v1894_v40  ;;  %v7242_v60 = vld [vmem:[%s7951_s6] ss:$0 sm:$0xff] }
 0x236   : > { %v1671_v26 = vpop.f32.mrf.mxu1 }
 0x237   : > { %v1924_v2 = vadd.f32 %v7027_v14, %v1893_v33  ;;  %v1896_v29 = vadd.f32 %v5994_v55, %v1677_v8  ;;  %v1672_v52 = vadd.f32 %v1671_v26, %v7020_v50  ;;  %6021 = vmatprep.mubr.msk.f32.mxu1 %vm424_vm0, %v1946_v0  ;;  %6056 = vmatprep.mubr.msk.f32.mxu0 %vm424_vm0, %v1946_v0  ;;  %v1949_v63 = vmax.f32 %v1925_v25, 0.0 }
 0x238   : > { %6022 = vmatmul.mubr.msk.f32.gmra.mxu1 %vm424_vm0, %v1947_v13  ;;  %6057 = vmatmul.mubr.msk.f32.gmra.mxu0 %vm424_vm0, %v1947_v13 }
 0x239   : > { %v1948_v6 = vmax.f32 %v1924_v2, 0.0  ;;  %v1927_v7 = vadd.f32 %v7027_v14, %v1896_v29  ;;  %v1895_v53 = vadd.f32 %v1864_v48, %v1672_v52 }
 0x23b   : > { %v1926_v22 = vadd.f32 %v7027_v14, %v1895_v53  ;;  %6024 = vmatprep.mubr.msk.f32.mxu1 %vm424_vm0, %v1948_v6  ;;  %v1951_v14 = vmax.f32 %v1927_v7, 0.0 }
 0x23c   : > { %6025 = vmatmul.mubr.msk.f32.gmra.mxu1 %vm424_vm0, %v1949_v63 }
 0x23d   : > { %6061 = vmatprep.mubr.msk.f32.mxu1 %vm424_vm0, %v7050_v59  ;;  %v1950_v50 = vmax.f32 %v1926_v22, 0.0  ;;  %v5272_v59 = vld [vmem:[%s7952_s7 + $0x8] sm:$0xff] }
 0x23e   : > { %6091 = vmatprep.subr.mxu0 %v5272_v59 }
 0x23f   : > { %6092 = vmatpush3.msra.mxu0 %v5272_v59 }
 0x240   : > { %6062 = vmatmul.mubr.msk.f32.vlgmr.msra.gmra.mxu1 %vm424_vm0, %v7054_v19  ;;  %v5305_v19 = vld [vmem:[%s7952_s7 + $0x10] sm:$0xff] }
 0x241   : > { %6064 = vmatprep.mubr.msk.f32.mxu1 %vm424_vm0, %v7068_v34  ;;  %6143 = vmatprep.subr.mxu1 %v5305_v19  ;;  %v7206_v34 = vld [vmem:[%s7952_s7] sm:$0xff] }
 0x242   : > { %6144 = vmatpush3.msra.mxu1 %v5305_v19  ;;  %6117 = vmatprep.subr.mxu0 %v7206_v34 }
 0x244   : > { %6065 = vmatmul.mubr.msk.f32.gmra.mxu1 %vm424_vm0, %v7072_v3 }
 0x245   : > { %6067 = vmatprep.mubr.msk.f32.mxu1 %vm424_vm0, %v7086_v58 }
 0x248   : > { %6068 = vmatmul.mubr.msk.f32.gmra.mxu1 %vm424_vm0, %v7090_v18 }
 0x249   : > { %6070 = vmatprep.mubr.msk.f32.mxu1 %vm424_vm0, %v7104_v61 }
 0x24c   : > { %6071 = vmatmul.mubr.msk.f32.gmra.mxu1 %vm424_vm0, %v7108_v37 }
 0x24d   : > { %6073 = vmatprep.mubr.msk.f32.mxu1 %vm424_vm0, %v7122_v32 }
 0x250   : > { %6074 = vmatmul.mubr.msk.f32.gmra.mxu1 %vm424_vm0, %v7126_v54 }
 0x251   : > { %6076 = vmatprep.mubr.msk.f32.mxu1 %vm424_vm0, %v1942_v9 }
 0x254   : > { %6077 = vmatmul.mubr.msk.f32.gmra.mxu1 %vm424_vm0, %v1943_v16 }
 0x255   : > { %6079 = vmatprep.mubr.msk.f32.mxu1 %vm424_vm0, %v1944_v44 }
 0x258   : > { %6080 = vmatmul.mubr.msk.f32.gmra.mxu1 %vm424_vm0, %v1945_v5 }
 0x259   : > { %6082 = vmatprep.mubr.msk.f32.mxu1 %vm424_vm0, %v1946_v0 }
 0x25c   : > { %6083 = vmatmul.mubr.msk.f32.gmra.mxu1 %vm424_vm0, %v1947_v13 }
 0x25d   : > { %6085 = vmatprep.mubr.msk.f32.mxu1 %vm424_vm0, %v1948_v6 }
 0x260   : > { %6086 = vmatmul.mubr.msk.f32.gmra.mxu1 %vm424_vm0, %v1949_v63 }
 0x261   : > { %6088 = vmatprep.mubr.msk.f32.mxu1 %vm424_vm0, %v1950_v50 }
 0x264   : > { %6089 = vmatmul.mubr.msk.f32.gmra.mxu1 %vm424_vm0, %v1951_v14 }
 0x2d4   : > { %v7209_v3 = vpop.f32.mrf.mxu0 }
 0x2d6   : > { %v7215_v61 = vpop.f32.mrf.mxu0 }
 0x2d8   : > { %v7211_v58 = vpop.f32.mrf.mxu1  ;;  %v6034_v43 = vpop.f32.mrf.mxu0 }
 0x2da   : > { %v7213_v18 = vpop.f32.mrf.mxu1  ;;  %v2262_v17 = vpop.f32.mrf.mxu0 }
 0x2dc   : > { %v6002_v37 = vpop.f32.mrf.mxu1  ;;  %v6037_v30 = vpop.f32.mrf.mxu0 }
 0x2dd   : > { %v2268_v44 = vadd.f32 %v6034_v43, %v6002_v37 }
 0x2de   : > { %v2091_v28 = vpop.f32.mrf.mxu1  ;;  %v2272_v1 = vpop.f32.mrf.mxu0 }
 0x2df   : > { %v2263_v5 = vadd.f32 %v2262_v17, %v2091_v28 }
 0x2e0   : > { %v6005_v45 = vpop.f32.mrf.mxu1  ;;  %v6040_v62 = vpop.f32.mrf.mxu0 }
 0x2e1   : > { %v2278_v46 = vadd.f32 %v6037_v30, %v6005_v45 }
 0x2e2   : > { %v2101_v56 = vpop.f32.mrf.mxu1  ;;  %v2282_v47 = vpop.f32.mrf.mxu0 }
 0x2e3   : > { %v2273_v33 = vadd.f32 %v2272_v1, %v2101_v56 }
 0x2e4   : > { %v6008_v51 = vpop.f32.mrf.mxu1  ;;  %v6043_v41 = vpop.f32.mrf.mxu0 }
 0x2e5   : > { %v2288_v26 = vadd.f32 %v6040_v62, %v6008_v51 }
 0x2e6   : > { %v2111_v32 = vpop.f32.mrf.mxu1  ;;  %v2292_v42 = vpop.f32.mrf.mxu0 }
 0x2e7   : > { %v2283_v53 = vadd.f32 %v2282_v47, %v2111_v32 }
 0x2e8   : > { %v6011_v35 = vpop.f32.mrf.mxu1  ;;  %v6046_v23 = vpop.f32.mrf.mxu0 }
 0x2e9   : > { %v2298_v14 = vadd.f32 %v6043_v41, %v6011_v35 }
 0x2ea   : > { %v2121_v54 = vpop.f32.mrf.mxu1  ;;  %v2302_v31 = vpop.f32.mrf.mxu0 }
 0x2eb   : > { %v2293_v56 = vadd.f32 %v2292_v42, %v2121_v54 }
 0x2ec   : > { %v6014_v4 = vpop.f32.mrf.mxu1  ;;  %v6049_v40 = vpop.f32.mrf.mxu0 }
 0x2ee   : > { %v7217_v10 = vpop.f32.mrf.mxu1  ;;  %v2312_v2 = vpop.f32.mrf.mxu0 }
 0x2ef   : > { %v2303_v41 = vadd.f32 %v2302_v31, %v7217_v10 }
 0x2f0   : > { %v7219_v21 = vpop.f32.mrf.mxu1  ;;  %v6052_v59 = vpop.f32.mrf.mxu0 }
 0x2f2   : > { %v7221_v49 = vpop.f32.mrf.mxu1  ;;  %v2322_v30 = vpop.f32.mrf.mxu0 }
 0x2f4   : > { %v7223_v9 = vpop.f32.mrf.mxu1 }
 0x2f6   : > { %v7225_v38 = vpop.f32.mrf.mxu1 }
 0x2f8   : > { %v7227_v16 = vpop.f32.mrf.mxu1 }
 0x2fa   : > { %v7229_v11 = vpop.f32.mrf.mxu1 }
 0x2fc   : > { %v7231_v12 = vpop.f32.mrf.mxu1 }
 0x2fe   : > { %v7233_v20 = vpop.f32.mrf.mxu1 }
 0x300   : > { %v7235_v24 = vpop.f32.mrf.mxu1 }
 0x302   : > { %v7237_v36 = vpop.f32.mrf.mxu1 }
 0x304   : > { %v6066_v57 = vpop.f32.mrf.mxu1 }
 0x305   : > { %v2527_v27 = vadd.f32 %v6066_v57, %v2268_v44  ;;  %v6055_v57 = vpop.f32.mrf.mxu0 }
 0x306   : > { %v2435_v39 = vpop.f32.mrf.mxu1 }
 0x307   : > { %v2526_v55 = vadd.f32 %v2435_v39, %v2263_v5  ;;  %v7245_v15 = vadd.f32 %v7242_v60, %v2527_v27 }
 0x308   : > { %v6069_v0 = vpop.f32.mrf.mxu1 }
 0x309   : > { %v7248_v8 = vadd.f32 %v7242_v60, %v2526_v55  ;;  %v2529_v13 = vadd.f32 %v6069_v0, %v2278_v46  ;;  %v2574_v48 = vmax.f32 %v7245_v15, 0.0  ;;  %v2313_v46 = vadd.f32 %v2312_v2, %v7221_v49 }
 0x30a   : > { %v2445_v25 = vpop.f32.mrf.mxu1 }
 0x30b   : > { %v2573_v29 = vmax.f32 %v7248_v8, 0.0  ;;  %v2528_v52 = vadd.f32 %v2445_v25, %v2273_v33  ;;  %v2556_v6 = vadd.f32 %v7242_v60, %v2529_v13  ;;  %v2332_v33 = vpop.f32.mrf.mxu0 }
 0x30c   : > { %v6072_v7 = vpop.f32.mrf.mxu1 }
 0x30d   : > { %v2555_v63 = vadd.f32 %v7242_v60, %v2528_v52  ;;  %v2531_v22 = vadd.f32 %v6072_v7, %v2288_v26  ;;  %6093 = vmatprep.mubr.msk.f32.mxu0 %vm424_vm0, %v2573_v29  ;;  %v7263_v28 = vmax.f32 %v2556_v6, 0.0  ;;  %v2323_v52 = vadd.f32 %v2322_v30, %v7225_v38 }
 0x30e   : > { %v2455_v50 = vpop.f32.mrf.mxu1  ;;  %6094 = vmatmul.mubr.msk.f32.vlgmr.msra.gmra.mxu0 %vm424_vm0, %v2574_v48  ;;  %v2338_v38 = vadd.f32 %v6055_v57, %v7227_v16 }
 0x30f   : > { %v7260_v19 = vmax.f32 %v2555_v63, 0.0  ;;  %v2530_v37 = vadd.f32 %v2455_v50, %v2283_v53  ;;  %6118 = vmatpush3.msra.mxu0 %v7206_v34  ;;  %v2558_v43 = vadd.f32 %v7242_v60, %v2531_v22  ;;  %v2308_v34 = vadd.f32 %v6046_v23, %v6014_v4  ;;  %v6058_v63 = vpop.f32.mrf.mxu0 }
 0x310   : > { %v6075_v45 = vpop.f32.mrf.mxu1  ;;  %v2318_v23 = vadd.f32 %v6049_v40, %v7219_v21  ;;  %v2328_v40 = vadd.f32 %v6052_v59, %v7223_v9  ;;  %v2253_v53 = vadd.f32 %v7215_v61, %v7213_v18  ;;  %v2258_v18 = vadd.f32 %v7209_v3, %v7211_v58 }
 0x311   : > { %v2557_v17 = vadd.f32 %v7242_v60, %v2530_v37  ;;  %v2533_v51 = vadd.f32 %v6075_v45, %v2298_v14  ;;  %6096 = vmatprep.mubr.msk.f32.mxu0 %vm424_vm0, %v7260_v19  ;;  %6145 = vmatprep.mubr.msk.f32.mxu1 %vm424_vm0, %v7260_v19  ;;  %v7277_v1 = vmax.f32 %v2558_v43, 0.0  ;;  %v2333_v14 = vadd.f32 %v2332_v33, %v7229_v11  ;;  %v2342_v16 = vpop.f32.mrf.mxu0 }
 0x312   : > { %v2465_v32 = vpop.f32.mrf.mxu1  ;;  %6097 = vmatmul.mubr.msk.f32.gmra.mxu0 %vm424_vm0, %v7263_v28  ;;  %6146 = vmatmul.mubr.msk.f32.vlgmr.msra.gmra.mxu1 %vm424_vm0, %v7263_v28  ;;  %v2524_v45 = vadd.f32 %v7237_v36, %v2253_v53  ;;  %v2348_v11 = vadd.f32 %v6058_v63, %v7231_v12  ;;  %v7400_v63 = vld [vmem:[%s7953_s8] ss:$0 sm:$0xff] }
 0x313   : > { %v7275_v35 = vmax.f32 %v2557_v17, 0.0  ;;  %v2532_v54 = vadd.f32 %v2465_v32, %v2293_v56  ;;  %v2560_v62 = vadd.f32 %v7242_v60, %v2533_v51  ;;  %v2343_v32 = vadd.f32 %v2342_v16, %v7233_v20 }
 0x314   : > { %v6078_v47 = vpop.f32.mrf.mxu1  ;;  %v2551_v3 = vadd.f32 %v7242_v60, %v2524_v45 }
 0x315   : > { %v2559_v42 = vadd.f32 %v7242_v60, %v2532_v54  ;;  %v2535_v44 = vadd.f32 %v6078_v47, %v2308_v34  ;;  %6099 = vmatprep.mubr.msk.f32.mxu0 %vm424_vm0, %v7275_v35  ;;  %6148 = vmatprep.mubr.msk.f32.mxu1 %vm424_vm0, %v7275_v35  ;;  %v7293_v5 = vmax.f32 %v2560_v62, 0.0  ;;  %v2525_v34 = vadd.f32 %v7235_v24, %v2258_v18 }
 0x316   : > { %v2475_v4 = vpop.f32.mrf.mxu1  ;;  %6100 = vmatmul.mubr.msk.f32.gmra.mxu0 %vm424_vm0, %v7277_v1  ;;  %6149 = vmatmul.mubr.msk.f32.gmra.mxu1 %vm424_vm0, %v7277_v1 }
 0x317   : > { %v7291_v10 = vmax.f32 %v2559_v42, 0.0  ;;  %v2534_v31 = vadd.f32 %v2475_v4, %v2303_v41  ;;  %v2562_v27 = vadd.f32 %v7242_v60, %v2535_v44  ;;  %v2552_v41 = vadd.f32 %v7242_v60, %v2525_v34 }
 0x318   : > { %v6081_v39 = vpop.f32.mrf.mxu1  ;;  %v2571_v4 = vmax.f32 %v2551_v3, 0.0 }
 0x319   : > { %v2561_v55 = vadd.f32 %v7242_v60, %v2534_v31  ;;  %v2537_v0 = vadd.f32 %v6081_v39, %v2318_v23  ;;  %6102 = vmatprep.mubr.msk.f32.mxu0 %vm424_vm0, %v7291_v10  ;;  %6151 = vmatprep.mubr.msk.f32.mxu1 %vm424_vm0, %v7291_v10  ;;  %v7309_v25 = vmax.f32 %v2562_v27, 0.0  ;;  %v2572_v31 = vmax.f32 %v2552_v41, 0.0 }
 0x31a   : > { %v2485_v21 = vpop.f32.mrf.mxu1  ;;  %6103 = vmatmul.mubr.msk.f32.gmra.mxu0 %vm424_vm0, %v7293_v5  ;;  %6152 = vmatmul.mubr.msk.f32.gmra.mxu1 %vm424_vm0, %v7293_v5 }
 0x31b   : > { %v7307_v49 = vmax.f32 %v2561_v55, 0.0  ;;  %v2536_v13 = vadd.f32 %v2485_v21, %v2313_v46  ;;  %v2564_v26 = vadd.f32 %v7242_v60, %v2537_v0 }
 0x31c   : > { %v6084_v2 = vpop.f32.mrf.mxu1 }
 0x31d   : > { %v2563_v6 = vadd.f32 %v7242_v60, %v2536_v13  ;;  %v2539_v7 = vadd.f32 %v6084_v2, %v2328_v40  ;;  %6105 = vmatprep.mubr.msk.f32.mxu0 %vm424_vm0, %v7307_v49  ;;  %6154 = vmatprep.mubr.msk.f32.mxu1 %vm424_vm0, %v7307_v49  ;;  %v2584_v59 = vmax.f32 %v2564_v26, 0.0 }
 0x31e   : > { %v2495_v9 = vpop.f32.mrf.mxu1  ;;  %6106 = vmatmul.mubr.msk.f32.gmra.mxu0 %vm424_vm0, %v7309_v25  ;;  %6155 = vmatmul.mubr.msk.f32.gmra.mxu1 %vm424_vm0, %v7309_v25 }
 0x31f   : > { %v2583_v22 = vmax.f32 %v2563_v6, 0.0  ;;  %v2538_v50 = vadd.f32 %v2495_v9, %v2323_v52  ;;  %v2566_v37 = vadd.f32 %v7242_v60, %v2539_v7 }
 0x320   : > { %v6087_v43 = vpop.f32.mrf.mxu1 }
 0x321   : > { %v2565_v56 = vadd.f32 %v7242_v60, %v2538_v50  ;;  %v2541_v17 = vadd.f32 %v6087_v43, %v2338_v38  ;;  %6108 = vmatprep.mubr.msk.f32.mxu0 %vm424_vm0, %v2583_v22  ;;  %6157 = vmatprep.mubr.msk.f32.mxu1 %vm424_vm0, %v2583_v22  ;;  %v2586_v30 = vmax.f32 %v2566_v37, 0.0 }
 0x322   : > { %v2505_v61 = vpop.f32.mrf.mxu1  ;;  %6109 = vmatmul.mubr.msk.f32.gmra.mxu0 %vm424_vm0, %v2584_v59  ;;  %6158 = vmatmul.mubr.msk.f32.gmra.mxu1 %vm424_vm0, %v2584_v59 }
 0x323   : > { %v2585_v51 = vmax.f32 %v2565_v56, 0.0  ;;  %v2540_v36 = vadd.f32 %v2505_v61, %v2333_v14  ;;  %v2568_v54 = vadd.f32 %v7242_v60, %v2541_v17 }
 0x324   : > { %v6090_v62 = vpop.f32.mrf.mxu1 }
 0x325   : > { %v2567_v58 = vadd.f32 %v7242_v60, %v2540_v36  ;;  %v2543_v47 = vadd.f32 %v6090_v62, %v2348_v11  ;;  %6111 = vmatprep.mubr.msk.f32.mxu0 %vm424_vm0, %v2585_v51  ;;  %6160 = vmatprep.mubr.msk.f32.mxu1 %vm424_vm0, %v2585_v51  ;;  %v2588_v42 = vmax.f32 %v2568_v54, 0.0 }
 0x326   : > { %v2515_v12 = vpop.f32.mrf.mxu1  ;;  %6112 = vmatmul.mubr.msk.f32.gmra.mxu0 %vm424_vm0, %v2586_v30  ;;  %6161 = vmatmul.mubr.msk.f32.gmra.mxu1 %vm424_vm0, %v2586_v30 }
 0x327   : > { %v2587_v20 = vmax.f32 %v2567_v58, 0.0  ;;  %v2542_v24 = vadd.f32 %v2515_v12, %v2343_v32  ;;  %v2570_v44 = vadd.f32 %v7242_v60, %v2543_v47 }
 0x329   : > { %v2569_v23 = vadd.f32 %v7242_v60, %v2542_v24  ;;  %6114 = vmatprep.mubr.msk.f32.mxu0 %vm424_vm0, %v2587_v20  ;;  %6163 = vmatprep.mubr.msk.f32.mxu1 %vm424_vm0, %v2587_v20  ;;  %v2590_v27 = vmax.f32 %v2570_v44, 0.0  ;;  %v3146_v60 = vld [vmem:[%s7954_s9] sm:$0xff] }
 0x32a   : > { %6115 = vmatmul.mubr.msk.f32.gmra.mxu0 %vm424_vm0, %v2588_v42  ;;  %6164 = vmatmul.mubr.msk.f32.gmra.mxu1 %vm424_vm0, %v2588_v42 }
 0x32b   : > { %v2589_v57 = vmax.f32 %v2569_v23, 0.0  ;;  %6119 = vmatprep.mubr.msk.f32.mxu0 %vm424_vm0, %v2571_v4  ;;  %6169 = vmatprep.subr.mxu0 %v3146_v60 }
 0x32d   : > { %6166 = vmatprep.mubr.msk.f32.mxu1 %vm424_vm0, %v2589_v57 }
 0x32e   : > { %6120 = vmatmul.mubr.msk.f32.vlgmr.msra.gmra.mxu0 %vm424_vm0, %v2572_v31  ;;  %6167 = vmatmul.mubr.msk.f32.gmra.mxu1 %vm424_vm0, %v2590_v27 }
 0x32f   : > { %6122 = vmatprep.mubr.msk.f32.mxu0 %vm424_vm0, %v2573_v29  ;;  %6170 = vmatpush3.msra.mxu0 %v3146_v60 }
 0x332   : > { %6123 = vmatmul.mubr.msk.f32.gmra.mxu0 %vm424_vm0, %v2574_v48 }
 0x333   : > { %6125 = vmatprep.mubr.msk.f32.mxu0 %vm424_vm0, %v7260_v19 }
 0x336   : > { %6126 = vmatmul.mubr.msk.f32.gmra.mxu0 %vm424_vm0, %v7263_v28 }
 0x337   : > { %6128 = vmatprep.mubr.msk.f32.mxu0 %vm424_vm0, %v7275_v35 }
 0x33a   : > { %6129 = vmatmul.mubr.msk.f32.gmra.mxu0 %vm424_vm0, %v7277_v1 }
 0x33b   : > { %6131 = vmatprep.mubr.msk.f32.mxu0 %vm424_vm0, %v7291_v10 }
 0x33e   : > { %6132 = vmatmul.mubr.msk.f32.gmra.mxu0 %vm424_vm0, %v7293_v5 }
 0x33f   : > { %6134 = vmatprep.mubr.msk.f32.mxu0 %vm424_vm0, %v7307_v49 }
 0x342   : > { %6135 = vmatmul.mubr.msk.f32.gmra.mxu0 %vm424_vm0, %v7309_v25 }
 0x343   : > { %6137 = vmatprep.mubr.msk.f32.mxu0 %vm424_vm0, %v2583_v22 }
 0x346   : > { %6138 = vmatmul.mubr.msk.f32.gmra.mxu0 %vm424_vm0, %v2584_v59 }
 0x347   : > { %6140 = vmatprep.mubr.msk.f32.mxu0 %vm424_vm0, %v2585_v51 }
 0x34a   : > { %6141 = vmatmul.mubr.msk.f32.gmra.mxu0 %vm424_vm0, %v2586_v30 }
 0x3ce   : > { %v6095_v15 = vpop.f32.mrf.mxu0 }
 0x3d0   : > { %v2708_v8 = vpop.f32.mrf.mxu0 }
 0x3d2   : > { %v6098_v29 = vpop.f32.mrf.mxu0  ;;  %v6147_v48 = vpop.f32.mrf.mxu1 }
 0x3d4   : > { %v2718_v19 = vpop.f32.mrf.mxu0  ;;  %v3012_v28 = vpop.f32.mrf.mxu1 }
 0x3d6   : > { %v6101_v35 = vpop.f32.mrf.mxu0  ;;  %v6150_v10 = vpop.f32.mrf.mxu1 }
 0x3d8   : > { %v2728_v1 = vpop.f32.mrf.mxu0  ;;  %v3022_v46 = vpop.f32.mrf.mxu1 }
 0x3da   : > { %v6104_v5 = vpop.f32.mrf.mxu0  ;;  %v6153_v21 = vpop.f32.mrf.mxu1 }
 0x3dc   : > { %v2738_v39 = vpop.f32.mrf.mxu0  ;;  %v3032_v49 = vpop.f32.mrf.mxu1 }
 0x3de   : > { %v6107_v55 = vpop.f32.mrf.mxu0  ;;  %v6156_v26 = vpop.f32.mrf.mxu1 }
 0x3e0   : > { %v2748_v0 = vpop.f32.mrf.mxu0  ;;  %v3042_v6 = vpop.f32.mrf.mxu1 }
 0x3e2   : > { %v7385_v40 = vpop.f32.mrf.mxu0  ;;  %v6159_v50 = vpop.f32.mrf.mxu1 }
 0x3e4   : > { %v7387_v33 = vpop.f32.mrf.mxu0  ;;  %v3052_v61 = vpop.f32.mrf.mxu1 }
 0x3e6   : > { %v7389_v13 = vpop.f32.mrf.mxu0  ;;  %v6162_v58 = vpop.f32.mrf.mxu1 }
 0x3e8   : > { %v7391_v25 = vpop.f32.mrf.mxu0  ;;  %v3062_v31 = vpop.f32.mrf.mxu1 }
 0x3ea   : > { %v7393_v2 = vpop.f32.mrf.mxu0 }
 0x3ec   : > { %v7395_v52 = vpop.f32.mrf.mxu0 }
 0x3ee   : > { %v6121_v7 = vpop.f32.mrf.mxu0 }
 0x3ef   : > { %v2865_v9 = vadd.f32 %v6121_v7, %v6095_v15 }
 0x3f0   : > { %v2859_v53 = vpop.f32.mrf.mxu0 }
 0x3f1   : > { %v3092_v38 = vadd.f32 %v6147_v48, %v2865_v9  ;;  %v2860_v22 = vadd.f32 %v2859_v53, %v2708_v8 }
 0x3f2   : > { %v6124_v14 = vpop.f32.mrf.mxu0 }
 0x3f3   : > { %v3091_v59 = vadd.f32 %v3012_v28, %v2860_v22  ;;  %v2875_v37 = vadd.f32 %v6124_v14, %v6098_v29  ;;  %v7403_v43 = vadd.f32 %v7400_v63, %v3092_v38 }
 0x3f4   : > { %v2869_v45 = vpop.f32.mrf.mxu0 }
 0x3f5   : > { %v7406_v56 = vadd.f32 %v7400_v63, %v3091_v59  ;;  %v3094_v17 = vadd.f32 %v6150_v10, %v2875_v37  ;;  %v2870_v18 = vadd.f32 %v2869_v45, %v2718_v19  ;;  %v3131_v32 = vmax.f32 %v7403_v43, 0.0  ;;  %v6165_v10 = vpop.f32.mrf.mxu1 }
 0x3f6   : > { %v6127_v16 = vpop.f32.mrf.mxu0 }
 0x3f7   : > { %v3130_v11 = vmax.f32 %v7406_v56, 0.0  ;;  %v3093_v51 = vadd.f32 %v3022_v46, %v2870_v18  ;;  %v2885_v36 = vadd.f32 %v6127_v16, %v6101_v35  ;;  %v7411_v34 = vadd.f32 %v7400_v63, %v3094_v17  ;;  %v3072_v9 = vpop.f32.mrf.mxu1 }
 0x3f8   : > { %v2879_v30 = vpop.f32.mrf.mxu0 }
 0x3f9   : > { %v7414_v54 = vadd.f32 %v7400_v63, %v3093_v51  ;;  %v3096_v62 = vadd.f32 %v6153_v21, %v2885_v36  ;;  %v2880_v3 = vadd.f32 %v2879_v30, %v2728_v1  ;;  %6171 = vmatprep.mubr.msk.f32.mxu0 %vm424_vm0, %v3130_v11  ;;  %v3133_v41 = vmax.f32 %v7411_v34, 0.0  ;;  %v6168_v17 = vpop.f32.mrf.mxu1 }
 0x3fa   : > { %v6130_v47 = vpop.f32.mrf.mxu0  ;;  %6172 = vmatmul.mubr.msk.f32.vlgmr.msra.gmra.mxu0 %vm424_vm0, %v3131_v32 }
 0x3fb   : > { %v3132_v12 = vmax.f32 %v7414_v54, 0.0  ;;  %v3095_v20 = vadd.f32 %v3032_v49, %v2880_v3  ;;  %v2895_v24 = vadd.f32 %v6130_v47, %v6104_v5  ;;  %v7425_v42 = vadd.f32 %v7400_v63, %v3096_v62 }
 0x3fc   : > { %v2889_v44 = vpop.f32.mrf.mxu0 }
 0x3fd   : > { %v7428_v4 = vadd.f32 %v7400_v63, %v3095_v20  ;;  %v3098_v23 = vadd.f32 %v6156_v26, %v2895_v24  ;;  %v2890_v57 = vadd.f32 %v2889_v44, %v2738_v39  ;;  %6174 = vmatprep.mubr.msk.f32.mxu0 %vm424_vm0, %v3132_v12  ;;  %v3135_v29 = vmax.f32 %v7425_v42, 0.0 }
 0x3fe   : > { %v6133_v27 = vpop.f32.mrf.mxu0  ;;  %6175 = vmatmul.mubr.msk.f32.gmra.mxu0 %vm424_vm0, %v3133_v41 }
 0x3ff   : > { %v3134_v60 = vmax.f32 %v7428_v4, 0.0  ;;  %v3097_v15 = vadd.f32 %v3042_v6, %v2890_v57  ;;  %v2905_v8 = vadd.f32 %v6133_v27, %v6107_v55  ;;  %v7439_v48 = vadd.f32 %v7400_v63, %v3098_v23 }
 0x400   : > { %v2899_v19 = vpop.f32.mrf.mxu0 }
 0x401   : > { %v7442_v28 = vadd.f32 %v7400_v63, %v3097_v15  ;;  %v3100_v35 = vadd.f32 %v6159_v50, %v2905_v8  ;;  %v2900_v1 = vadd.f32 %v2899_v19, %v2748_v0  ;;  %6177 = vmatprep.mubr.msk.f32.mxu0 %vm424_vm0, %v3134_v60  ;;  %v3137_v21 = vmax.f32 %v7439_v48, 0.0 }
 0x402   : > { %v6136_v5 = vpop.f32.mrf.mxu0  ;;  %6178 = vmatmul.mubr.msk.f32.gmra.mxu0 %vm424_vm0, %v3135_v29 }
 0x403   : > { %v3136_v39 = vmax.f32 %v7442_v28, 0.0  ;;  %v3099_v46 = vadd.f32 %v3052_v61, %v2900_v1  ;;  %v2915_v55 = vadd.f32 %v6136_v5, %v7385_v40  ;;  %v7454_v49 = vadd.f32 %v7400_v63, %v3100_v35 }
 0x404   : > { %v2909_v0 = vpop.f32.mrf.mxu0 }
 0x405   : > { %v7457_v26 = vadd.f32 %v7400_v63, %v3099_v46  ;;  %v3102_v6 = vadd.f32 %v6162_v58, %v2915_v55  ;;  %v2910_v7 = vadd.f32 %v2909_v0, %v7387_v33  ;;  %6180 = vmatprep.mubr.msk.f32.mxu0 %vm424_vm0, %v3136_v39  ;;  %v3139_v50 = vmax.f32 %v7454_v49, 0.0  ;;  %v3082_v58 = vpop.f32.mrf.mxu1 }
 0x406   : > { %v6139_v53 = vpop.f32.mrf.mxu0  ;;  %6181 = vmatmul.mubr.msk.f32.gmra.mxu0 %vm424_vm0, %v3137_v21 }
 0x407   : > { %v3138_v40 = vmax.f32 %v7457_v26, 0.0  ;;  %v3101_v38 = vadd.f32 %v3062_v31, %v2910_v7  ;;  %v2925_v22 = vadd.f32 %v6139_v53, %v7389_v13  ;;  %v7470_v14 = vadd.f32 %v7400_v63, %v3102_v6 }
 0x408   : > { %v2919_v33 = vpop.f32.mrf.mxu0 }
 0x409   : > { %v7473_v59 = vadd.f32 %v7400_v63, %v3101_v38  ;;  %v3104_v37 = vadd.f32 %v6165_v10, %v2925_v22  ;;  %v2920_v45 = vadd.f32 %v2919_v33, %v7391_v25  ;;  %6183 = vmatprep.mubr.msk.f32.mxu0 %vm424_vm0, %v3138_v40  ;;  %v7962_v51 = vmax.f32 %v7470_v14, 0.0 }
 0x40a   : > { %v6142_v18 = vpop.f32.mrf.mxu0  ;;  %6184 = vmatmul.mubr.msk.f32.gmra.mxu0 %vm424_vm0, %v3139_v50 }
 0x40b   : > { %v7960_v13 = vmax.f32 %v7473_v59, 0.0  ;;  %v3103_v61 = vadd.f32 %v3072_v9, %v2920_v45  ;;  %v2935_v16 = vadd.f32 %v6142_v18, %v7393_v2  ;;  %v7486_v36 = vadd.f32 %v7400_v63, %v3104_v37 }
 0x40c   : > { %v2929_v25 = vpop.f32.mrf.mxu0 }
 0x40d   : > { %v7489_v30 = vadd.f32 %v7400_v63, %v3103_v61  ;;  %v3106_v62 = vadd.f32 %v6168_v17, %v2935_v16  ;;  %v2930_v3 = vadd.f32 %v2929_v25, %v7395_v52  ;;  %6186 = vmatprep.mubr.msk.f32.mxu0 %vm424_vm0, %v7960_v13  ;;  %v7961_v20 = vmax.f32 %v7486_v36, 0.0 }
 0x40e   : > { %6187 = vmatmul.mubr.msk.f32.gmra.mxu0 %vm424_vm0, %v7962_v51 }
 0x40f   : > { %v7959_v2 = vmax.f32 %v7489_v30, 0.0  ;;  %v3105_v47 = vadd.f32 %v3082_v58, %v2930_v3  ;;  %v7501_v24 = vadd.f32 %v7400_v63, %v3106_v62 }
 0x411   : > { %v7504_v44 = vadd.f32 %v7400_v63, %v3105_v47  ;;  %6189 = vmatprep.mubr.msk.f32.mxu0 %vm424_vm0, %v7959_v2  ;;  %v7958_v23 = vmax.f32 %v7501_v24, 0.0 }
 0x412   : > { %6190 = vmatmul.mubr.msk.f32.gmra.mxu0 %vm424_vm0, %v7961_v20 }
 0x413   : > { %v7957_v52 = vmax.f32 %v7504_v44, 0.0 }
 0x415   : > { %6192 = vmatprep.mubr.msk.f32.mxu0 %vm424_vm0, %v7957_v52 }
 0x416   : > { %6193 = vmatmul.mubr.msk.f32.gmra.mxu0 %vm424_vm0, %v7958_v23 }
 0x4ba   : > { %v6173_v63 = vpop.f32.mrf.mxu0 }
 0x4bb   : > { %6195 = vmatprep.subr.msk.mxu1 %vm424_vm0, %v6173_v63 }
 0x4bc   : > { %v3261_v57 = vpop.f32.mrf.mxu0  ;;  %6196 = vmatpush3.xpose.msk.msra.mxu1 %vm424_vm0, %v6173_v63 }
 0x4bd   : > { %3342 = vrot.lane.b32.xlu0 %v3261_v57, %s6391_s10  ;;  %6197 = vmatprep.subr.msk.mxu1 %vm424_vm0, %v3261_v57 }
 0x4be   : > { %v6176_v31 = vpop.f32.mrf.mxu0 }
 0x4c0   : > { %v3271_v27 = vpop.f32.mrf.mxu0  ;;  %6198 = vmatpush3.xpose.msk.msra.mxu1 %vm424_vm0, %v3261_v57 }
 0x4c1   : > { %3344 = vrot.lane.b32.xlu0 %v6173_v63, %s6391_s10  ;;  %6202 = vmatprep.subr.msk.mxu1 %vm424_vm0, %v6176_v31 }
 0x4c2   : > { %3431 = vrot.lane.b32.xlu1 %v3271_v27, %s6391_s10  ;;  %v6179_v15 = vpop.f32.mrf.mxu0 }
 0x4c4   : > { %v3281_v8 = vpop.f32.mrf.mxu0 }
 0x4c5   : > { %3520 = vrot.lane.b32.xlu0 %v3281_v8, %s6391_s10 }
 0x4c6   : > { %3433 = vrot.lane.b32.xlu1 %v6176_v31, %s6391_s10  ;;  %v7530_v19 = vpop.f32.mrf.mxu0 }
 0x4c8   : > { %v7532_v35 = vpop.f32.mrf.mxu0 }
 0x4c9   : > { %3609 = vrot.lane.b32.xlu0 %v7532_v35, %s6391_s10 }
 0x4ca   : > { %3522 = vrot.lane.b32.xlu1 %v6179_v15, %s6391_s10  ;;  %v6185_v1 = vpop.f32.mrf.mxu0 }
 0x4cb   : > { %6223 = vmatprep.subr.msk.mxu0 %vm424_vm0, %v6185_v1 }
 0x4cc   : > { %v7538_v10 = vpop.f32.mrf.mxu0  ;;  %6224 = vmatpush3.xpose.msk.msra.mxu0 %vm424_vm0, %v6185_v1 }
 0x4cd   : > { %3700 = vrot.lane.b32.xlu0 %v6185_v1, %s6391_s10  ;;  %6225 = vmatprep.subr.msk.mxu0 %vm424_vm0, %v7538_v10 }
 0x4ce   : > { %3611 = vrot.lane.b32.xlu1 %v7530_v19, %s6391_s10  ;;  %v7546_v5 = vpop.f32.mrf.mxu0 }
 0x4d0   : > { %v7548_v46 = vpop.f32.mrf.mxu0  ;;  %6226 = vmatpush3.xpose.msk.msra.mxu0 %vm424_vm0, %v7538_v10 }
 0x4d1   : > { %3698 = vrot.lane.b32.xlu0 %v7538_v10, %s6391_s10 }
 0x4d2   : > { %3789 = vrot.lane.b32.xlu1 %v7546_v5, %s6391_s10  ;;  %v7556_v55 = vpop.f32.mrf.mxu0 }
 0x4d3   : > { %6237 = vmatprep.subr.msk.mxu0 %vm424_vm0, %v7556_v55 }
 0x4d4   : > { %v7560_v0 = vpop.f32.mrf.mxu0 }
 0x4d5   : > { %3876 = vrot.lane.b32.xlu0 %v7560_v0, %s6391_s10 }
 0x4d6   : > { %3787 = vrot.lane.b32.xlu1 %v7548_v46, %s6391_s10  ;;  %v7566_v6 = vpop.f32.mrf.mxu0 }
 0x4d8   : > { %v7568_v7 = vpop.f32.mrf.mxu0 }
 0x4d9   : > { %3878 = vrot.lane.b32.xlu0 %v7556_v55, %s6391_s10 }
 0x4da   : > { %3965 = vrot.lane.b32.xlu1 %v7568_v7, %s6391_s10 }
 0x4dd   : > { %4319 = vrot.lane.b32.xlu0 %v6176_v31, %s6392_s23 }
 0x4de   : > { %3967 = vrot.lane.b32.xlu1 %v7566_v6, %s6391_s10 }
 0x4e1   : > { %4406 = vrot.lane.b32.xlu0 %v6179_v15, %s6392_s23 }
 0x4e2   : > { %4232 = vrot.lane.b32.xlu1 %v6173_v63, %s6392_s23 }
 0x4e5   : > { %4404 = vrot.lane.b32.xlu0 %v3281_v8, %s6392_s23 }
 0x4e6   : > { %4230 = vrot.lane.b32.xlu1 %v3261_v57, %s6392_s23 }
 0x4e9   : > { %4580 = vrot.lane.b32.xlu0 %v6185_v1, %s6392_s23 }
 0x4ea   : > { %4317 = vrot.lane.b32.xlu1 %v3271_v27, %s6392_s23 }
 0x4ee   : > { %4493 = vrot.lane.b32.xlu1 %v7530_v19, %s6392_s23 }
 0x4f2   : > { %4491 = vrot.lane.b32.xlu1 %v7532_v35, %s6392_s23 }
 0x4f6   : > { %4667 = vrot.lane.b32.xlu1 %v7546_v5, %s6392_s23 }
 0x52f   : > { %v3343_v9 = vpop.permute.xlu0 %3342 }
 0x530   : > { %6199 = vmatprep.mubr.msk.f32.mxu1 %vm424_vm0, %v3343_v9 }
 0x533   : > { %v3345_v53 = vpop.permute.xlu0 %3344 }
 0x534   : > { %v3432_v38 = vpop.permute.xlu1 %3431  ;;  %6200 = vmatmul.mubr.msk.f32.vlgmr.msra.gmra.mxu1 %vm424_vm0, %v3345_v53 }
 0x535   : > { %6203 = vmatpush3.xpose.msk.msra.mxu1 %vm424_vm0, %v6176_v31  ;;  %6206 = vmatprep.mubr.msk.f32.mxu1 %vm424_vm0, %v3432_v38 }
 0x536   : > { %6204 = vmatprep.subr.msk.mxu1 %vm424_vm0, %v3271_v27 }
 0x537   : > { %v3521_v22 = vpop.permute.xlu0 %3520 }
 0x538   : > { %v3434_v33 = vpop.permute.xlu1 %3433 }
 0x539   : > { %6205 = vmatpush3.xpose.msk.msra.mxu1 %vm424_vm0, %v3271_v27 }
 0x53a   : > { %6209 = vmatprep.subr.msk.mxu1 %vm424_vm0, %v6179_v15 }
 0x53b   : > { %v3610_v37 = vpop.permute.xlu0 %3609 }
 0x53c   : > { %6207 = vmatmul.mubr.msk.f32.vlgmr.msra.gmra.mxu1 %vm424_vm0, %v3434_v33  ;;  %v3523_v45 = vpop.permute.xlu1 %3522 }
 0x53d   : > { %6210 = vmatpush3.xpose.msk.msra.mxu1 %vm424_vm0, %v6179_v15  ;;  %6213 = vmatprep.mubr.msk.f32.mxu1 %vm424_vm0, %v3521_v22 }
 0x53e   : > { %6211 = vmatprep.subr.msk.mxu1 %vm424_vm0, %v3281_v8 }
 0x53f   : > { %v3701_v17 = vpop.permute.xlu0 %3700 }
 0x540   : > { %v3612_v18 = vpop.permute.xlu1 %3611 }
 0x541   : > { %6212 = vmatpush3.xpose.msk.msra.mxu1 %vm424_vm0, %v3281_v8 }
 0x542   : > { %6216 = vmatprep.subr.msk.mxu1 %vm424_vm0, %v7530_v19 }
 0x543   : > { %v3699_v61 = vpop.permute.xlu0 %3698 }
 0x544   : > { %6214 = vmatmul.mubr.msk.f32.vlgmr.msra.gmra.mxu1 %vm424_vm0, %v3523_v45  ;;  %v3790_v16 = vpop.permute.xlu1 %3789  ;;  %6227 = vmatprep.mubr.msk.f32.mxu0 %vm424_vm0, %v3699_v61 }
 0x545   : > { %6217 = vmatpush3.xpose.msk.msra.mxu1 %vm424_vm0, %v7530_v19  ;;  %6220 = vmatprep.mubr.msk.f32.mxu1 %vm424_vm0, %v3610_v37 }
 0x546   : > { %6218 = vmatprep.subr.msk.mxu1 %vm424_vm0, %v7532_v35  ;;  %6228 = vmatmul.mubr.msk.f32.vlgmr.msra.gmra.mxu0 %vm424_vm0, %v3701_v17 }
 0x547   : > { %6238 = vmatpush3.xpose.msk.msra.mxu0 %vm424_vm0, %v7556_v55  ;;  %v3877_v25 = vpop.permute.xlu0 %3876 }
 0x548   : > { %6239 = vmatprep.subr.msk.mxu0 %vm424_vm0, %v7560_v0  ;;  %v3788_v62 = vpop.permute.xlu1 %3787  ;;  %6241 = vmatprep.mubr.msk.f32.mxu0 %vm424_vm0, %v3877_v25 }
 0x549   : > { %6219 = vmatpush3.xpose.msk.msra.mxu1 %vm424_vm0, %v7532_v35 }
 0x54a   : > { %6230 = vmatprep.subr.msk.mxu1 %vm424_vm0, %v7546_v5 }
 0x54b   : > { %6240 = vmatpush3.xpose.msk.msra.mxu0 %vm424_vm0, %v7560_v0  ;;  %v3879_v3 = vpop.permute.xlu0 %3878 }
 0x54c   : > { %6221 = vmatmul.mubr.msk.f32.vlgmr.msra.gmra.mxu1 %vm424_vm0, %v3612_v18  ;;  %v3966_v58 = vpop.permute.xlu1 %3965 }
 0x54d   : > { %6231 = vmatpush3.xpose.msk.msra.mxu1 %vm424_vm0, %v7546_v5  ;;  %6234 = vmatprep.mubr.msk.f32.mxu1 %vm424_vm0, %v3788_v62 }
 0x54e   : > { %6242 = vmatmul.mubr.msk.f32.vlgmr.msra.gmra.mxu0 %vm424_vm0, %v3879_v3  ;;  %6232 = vmatprep.subr.msk.mxu1 %vm424_vm0, %v7548_v46 }
 0x54f   : > { %v4320_v63 = vpop.permute.xlu0 %4319 }
 0x550   : > { %v3968_v47 = vpop.permute.xlu1 %3967 }
 0x551   : > { %6233 = vmatpush3.xpose.msk.msra.mxu1 %vm424_vm0, %v7548_v46 }
 0x552   : > { %6244 = vmatprep.subr.msk.mxu1 %vm424_vm0, %v7566_v6 }
 0x553   : > { %v7641_v27 = vpop.permute.xlu0 %4406 }
 0x554   : > { %6235 = vmatmul.mubr.msk.f32.vlgmr.msra.gmra.mxu1 %vm424_vm0, %v3790_v16  ;;  %v4233_v57 = vpop.permute.xlu1 %4232 }
 0x555   : > { %6245 = vmatpush3.xpose.msk.msra.mxu1 %vm424_vm0, %v7566_v6  ;;  %6248 = vmatprep.mubr.msk.f32.mxu1 %vm424_vm0, %v3966_v58 }
 0x556   : > { %6251 = vmatprep.subr.mxu0 %v4233_v57  ;;  %6246 = vmatprep.subr.msk.mxu1 %vm424_vm0, %v7568_v7 }
 0x557   : > { %6252 = vmatpush3.msra.mxu0 %v4233_v57 }
 0x558   : > { %v4231_v31 = vpop.permute.xlu1 %4230 }
 0x559   : > { %6247 = vmatpush3.xpose.msk.msra.mxu1 %vm424_vm0, %v7568_v7  ;;  %6253 = vmatprep.subr.mxu0 %v4231_v31 }
 0x55a   : > { %6254 = vmatpush3.msra.mxu0 %v4231_v31  ;;  %6258 = vmatprep.subr.mxu1 %v4320_v63 }
 0x55b   : > { %6265 = vmatprep.subr.mxu0 %v7641_v27 }
 0x55c   : > { %v4318_v15 = vpop.permute.xlu1 %4317  ;;  %6249 = vmatmul.mubr.msk.f32.vlgmr.msra.gmra.mxu1 %vm424_vm0, %v3968_v47 }
 0x55d   : > { %6259 = vmatpush3.msra.mxu1 %v4320_v63 }
 0x55e   : > { %6260 = vmatprep.subr.mxu1 %v4318_v15 }
 0x55f   : > { %6261 = vmatpush3.msra.mxu1 %v4318_v15 }
 0x560   : > { %v7645_v8 = vpop.permute.xlu1 %4493 }
 0x561   : > { %6272 = vmatprep.subr.mxu1 %v7645_v8 }
 0x5f4   : > { %v6201_v19 = vpop.f32.mrf.mxu1 }
 0x5f5   : > { %v4056_v35 = vsel %vm4052_vm1, %v6201_v19, -inf }
 0x5f6   : > { %v3420_v1 = vpop.f32.mrf.mxu1  ;;  %4057 = vmax.xlane.f32.xlu0 %v4056_v35 }
 0x5f7   : > { %v4053_v5 = vsel %vm4052_vm1, %v3420_v1, -inf }
 0x5fa   : > { %4054 = vmax.xlane.f32.xlu0 %v4053_v5 }
 0x5fc   : > { %v6208_v9 = vpop.f32.mrf.mxu1 }
 0x5fd   : > { %v4062_v53 = vsel %vm4052_vm1, %v6208_v9, -inf }
 0x5fe   : > { %v3509_v38 = vpop.f32.mrf.mxu1  ;;  %4063 = vmax.xlane.f32.xlu0 %v4062_v53 }
 0x5ff   : > { %v4059_v22 = vsel %vm4052_vm1, %v3509_v38, -inf }
 0x600   : > { %4060 = vmax.xlane.f32.xlu1 %v4059_v22 }
 0x604   : > { %v7652_v33 = vpop.f32.mrf.mxu1 }
 0x605   : > { %v4068_v37 = vsel %vm4052_vm1, %v7652_v33, -inf }
 0x606   : > { %4069 = vmax.xlane.f32.xlu1 %v4068_v37  ;;  %v7656_v45 = vpop.f32.mrf.mxu0  ;;  %v7660_v18 = vpop.f32.mrf.mxu1 }
 0x607   : > { %v4080_v17 = vsel %vm4052_vm1, %v7656_v45, -inf  ;;  %v4065_v25 = vsel %vm4052_vm1, %v7660_v18, -inf }
 0x608   : > { %v7668_v62 = vpop.f32.mrf.mxu0 }
 0x609   : > { %v4077_v47 = vsel %vm4052_vm1, %v7668_v62, -inf }
 0x60a   : > { %4081 = vmax.xlane.f32.xlu1 %v4080_v17 }
 0x60c   : > { %v7662_v61 = vpop.f32.mrf.mxu1 }
 0x60d   : > { %v4074_v16 = vsel %vm4052_vm1, %v7662_v61, -inf }
 0x60e   : > { %v7670_v3 = vpop.f32.mrf.mxu1  ;;  %4075 = vmax.xlane.f32.xlu0 %v4074_v16  ;;  %4066 = vmax.xlane.f32.xlu1 %v4065_v25  ;;  %v7676_v63 = vpop.f32.mrf.mxu0 }
 0x60f   : > { %v4071_v58 = vsel %vm4052_vm1, %v7670_v3, -inf  ;;  %v4092_v15 = vsel %vm4052_vm1, %v7676_v63, -inf }
 0x610   : > { %v7684_v35 = vpop.f32.mrf.mxu0 }
 0x611   : > { %v4089_v22 = vsel %vm4052_vm1, %v7684_v35, -inf }
 0x612   : > { %4072 = vmax.xlane.f32.xlu0 %v4071_v58  ;;  %4078 = vmax.xlane.f32.xlu1 %v4077_v47  ;;  %v7708_v58 = vpop.permute.xlu0 %4404 }
 0x614   : > { %v7678_v57 = vpop.f32.mrf.mxu1 }
 0x615   : > { %v4086_v31 = vsel %vm4052_vm1, %v7678_v57, -inf }
 0x616   : > { %v7686_v5 = vpop.f32.mrf.mxu1  ;;  %4087 = vmax.xlane.f32.xlu0 %v4086_v31  ;;  %4093 = vmax.xlane.f32.xlu1 %v4092_v15  ;;  %v7710_v47 = vpop.permute.xlu0 %4580 }
 0x617   : > { %v4083_v53 = vsel %vm4052_vm1, %v7686_v5, -inf  ;;  %v7712_v31 = vpop.permute.xlu1 %4491 }
 0x61a   : > { %4084 = vmax.xlane.f32.xlu0 %v4083_v53  ;;  %4090 = vmax.xlane.f32.xlu1 %v4089_v22 }
 0x61c   : > { %v7692_v37 = vpop.f32.mrf.mxu1 }
 0x61d   : > { %v4098_v17 = vsel %vm4052_vm1, %v7692_v37, -inf }
 0x61e   : > { %4099 = vmax.xlane.f32.xlu0 %v4098_v17  ;;  %v7696_v16 = vpop.f32.mrf.mxu1 }
 0x61f   : > { %v4095_v25 = vsel %vm4052_vm1, %v7696_v16, -inf }
 0x622   : > { %4096 = vmax.xlane.f32.xlu0 %v4095_v25  ;;  %v7714_v25 = vpop.permute.xlu1 %4667 }
 0x62b   : > { %4665 = vrot.lane.b32.xlu1 %v7548_v46, %s6392_s23 }
 0x62f   : > { %4841 = vrot.lane.b32.xlu1 %v7566_v6, %s6392_s23 }
 0x638   : > { %4578 = vrot.lane.b32.xlu0 %v7538_v10, %s6392_s23 }
 0x63c   : > { %4754 = vrot.lane.b32.xlu0 %v7556_v55, %s6392_s23 }
 0x67f   : > { %v4058_v15 = vpop.xlane.xlu0 %4057 }
 0x680   : > { %v4102_v53 = vsub.f32 %v6201_v19, %v4058_v15 }
 0x682   : > { %v4119_v22 = vmul.f32 1.442695, %v4102_v53 }
 0x683   : > { %v4055_v17 = vpop.xlane.xlu0 %4054 }
 0x684   : > { %6319 = vpow2.f32 %v4119_v22  ;;  %v4101_v46 = vsub.f32 %v3420_v1, %v4055_v17 }
 0x686   : > { %v4117_v6 = vmul.f32 1.442695, %v4101_v46 }
 0x687   : > { %v4064_v52 = vpop.xlane.xlu0 %4063 }
 0x688   : > { %6321 = vpow2.f32 %v4117_v6  ;;  %v4104_v10 = vsub.f32 %v6208_v9, %v4064_v52 }
 0x689   : > { %v4061_v23 = vpop.xlane.xlu1 %4060 }
 0x68a   : > { %v4123_v55 = vmul.f32 1.442695, %v4104_v10  ;;  %v4103_v2 = vsub.f32 %v3509_v38, %v4061_v23 }
 0x68c   : > { %6323 = vpow2.f32 %v4123_v55  ;;  %v4121_v13 = vmul.f32 1.442695, %v4103_v2 }
 0x68e   : > { %6325 = vpow2.f32 %v4121_v13 }
 0x68f   : > { %v4070_v20 = vpop.xlane.xlu1 %4069 }
 0x690   : > { %v4106_v51 = vsub.f32 %v7652_v33, %v4070_v20 }
 0x691   : > { %v7717_v19 = vpop.eup %6319 }
 0x692   : > { %v4127_v15 = vmul.f32 1.442695, %v4106_v51  ;;  %v4152_v1 = vsel %vm4052_vm1, %v7717_v19, 0.0 }
 0x693   : > { %v4082_v53 = vpop.xlane.xlu1 %4081  ;;  %4153 = vadd.xlane.f32.xlu1 %v4152_v1 }
 0x694   : > { %6327 = vpow2.f32 %v4127_v15  ;;  %v4110_v52 = vsub.f32 %v7656_v45, %v4082_v53 }
 0x695   : > { %v7722_v9 = vpop.eup %6321 }
 0x696   : > { %v4135_v23 = vmul.f32 1.442695, %v4110_v52  ;;  %v4149_v13 = vsel %vm4052_vm1, %v7722_v9, 0.0 }
 0x697   : > { %v4076_v2 = vpop.xlane.xlu0 %4075  ;;  %v4067_v38 = vpop.xlane.xlu1 %4066  ;;  %4150 = vadd.xlane.f32.xlu1 %v4149_v13 }
 0x698   : > { %6329 = vpow2.f32 %v4135_v23  ;;  %v4108_v51 = vsub.f32 %v7662_v61, %v4076_v2  ;;  %v4105_v20 = vsub.f32 %v7660_v18, %v4067_v38 }
 0x699   : > { %v7728_v33 = vpop.eup %6323 }
 0x69a   : > { %v4131_v22 = vmul.f32 1.442695, %v4108_v51  ;;  %v4125_v17 = vmul.f32 1.442695, %v4105_v20  ;;  %v4158_v45 = vsel %vm4052_vm1, %v7728_v33, 0.0 }
 0x69b   : > { %v7732_v46 = vpop.eup %6325  ;;  %v4073_v6 = vpop.xlane.xlu0 %4072  ;;  %4159 = vadd.xlane.f32.xlu0 %v4158_v45 }
 0x69c   : > { %v4079_v10 = vpop.xlane.xlu1 %4078  ;;  %6331 = vpow2.f32 %v4131_v22  ;;  %v4107_v55 = vsub.f32 %v7670_v3, %v4073_v6  ;;  %v4155_v1 = vsel %vm4052_vm1, %v7732_v46, 0.0 }
 0x69d   : > { %v4109_v15 = vsub.f32 %v7668_v62, %v4079_v10  ;;  %6333 = vpow2.f32 %v4125_v17 }
 0x69e   : > { %v4129_v61 = vmul.f32 1.442695, %v4107_v55 }
 0x69f   : > { %v4133_v18 = vmul.f32 1.442695, %v4109_v15  ;;  %v4088_v53 = vpop.xlane.xlu0 %4087  ;;  %4156 = vadd.xlane.f32.xlu0 %v4155_v1 }
 0x6a0   : > { %v4094_v52 = vpop.xlane.xlu1 %4093  ;;  %6335 = vpow2.f32 %v4129_v61  ;;  %v4112_v23 = vsub.f32 %v7678_v57, %v4088_v53 }
 0x6a1   : > { %v4114_v13 = vsub.f32 %v7676_v63, %v4094_v52  ;;  %v7740_v2 = vpop.eup %6327  ;;  %6337 = vpow2.f32 %v4133_v18 }
 0x6a2   : > { %v4139_v3 = vmul.f32 1.442695, %v4112_v23  ;;  %v4164_v62 = vsel %vm4052_vm1, %v7740_v2, 0.0 }
 0x6a3   : > { %v4143_v38 = vmul.f32 1.442695, %v4114_v13  ;;  %v4085_v51 = vpop.xlane.xlu0 %4084  ;;  %4165 = vadd.xlane.f32.xlu1 %v4164_v62 }
 0x6a4   : > { %v4091_v20 = vpop.xlane.xlu1 %4090  ;;  %6339 = vpow2.f32 %v4139_v3  ;;  %v4111_v22 = vsub.f32 %v7686_v5, %v4085_v51 }
 0x6a5   : > { %v4113_v17 = vsub.f32 %v7684_v35, %v4091_v20  ;;  %v7746_v45 = vpop.eup %6329  ;;  %6341 = vpow2.f32 %v4143_v38 }
 0x6a6   : > { %v4137_v63 = vmul.f32 1.442695, %v4111_v22  ;;  %v4176_v6 = vsel %vm4052_vm1, %v7746_v45, 0.0 }
 0x6a7   : > { %v4141_v57 = vmul.f32 1.442695, %v4113_v17  ;;  %v4100_v10 = vpop.xlane.xlu0 %4099  ;;  %4177 = vadd.xlane.f32.xlu1 %v4176_v6 }
 0x6a8   : > { %6343 = vpow2.f32 %v4137_v63  ;;  %v4116_v55 = vsub.f32 %v7692_v37, %v4100_v10 }
 0x6a9   : > { %v7751_v15 = vpop.eup %6331  ;;  %6345 = vpow2.f32 %v4141_v57 }
 0x6aa   : > { %v7753_v61 = vpop.eup %6333  ;;  %v4147_v5 = vmul.f32 1.442695, %v4116_v55  ;;  %v4170_v35 = vsel %vm4052_vm1, %v7751_v15, 0.0 }
 0x6ab   : > { %4171 = vadd.xlane.f32.xlu0 %v4170_v35  ;;  %v4097_v18 = vpop.xlane.xlu0 %4096  ;;  %v4161_v1 = vsel %vm4052_vm1, %v7753_v61, 0.0  ;;  %v6393_v35 = vmov 0  }
 0x6ac   : > { %6347 = vpow2.f32 %v4147_v5  ;;  %v4115_v53 = vsub.f32 %v7696_v16, %v4097_v18  ;;  %4162 = vadd.xlane.f32.xlu1 %v4161_v1  ;;  %v5387_v5 = vld [vmem:[#allocation2] ss:$0 sm:$0xff]  ;;  %6318 = vset.pattern.permute.xlu0 %v6393_v35  ;;  %v7796_v18 = vpop.permute.xlu1 %4665 }
 0x6ad   : > { %v7760_v52 = vpop.eup %6335 }
 0x6ae   : > { %v7762_v37 = vpop.eup %6337  ;;  %v4145_v23 = vmul.f32 1.442695, %v4115_v53  ;;  %v4167_v13 = vsel %vm4052_vm1, %v7760_v52, 0.0 }
 0x6af   : > { %4168 = vadd.xlane.f32.xlu0 %v4167_v13  ;;  %v4173_v3 = vsel %vm4052_vm1, %v7762_v37, 0.0  ;;  %v7800_v53 = vpop.permute.xlu0 %4578 }
 0x6b0   : > { %6349 = vpow2.f32 %v4145_v23  ;;  %4174 = vadd.xlane.f32.xlu1 %v4173_v3  ;;  %v7798_v1 = vpop.permute.xlu1 %4841 }
 0x6b1   : > { %v7768_v38 = vpop.eup %6339 }
 0x6b2   : > { %v7770_v62 = vpop.eup %6341  ;;  %v4182_v16 = vsel %vm4052_vm1, %v7768_v38, 0.0 }
 0x6b3   : > { %4183 = vadd.xlane.f32.xlu0 %v4182_v16  ;;  %v4188_v51 = vsel %vm4052_vm1, %v7770_v62, 0.0  ;;  %v7802_v13 = vpop.permute.xlu0 %4754 }
 0x6b4   : > { %4189 = vadd.xlane.f32.xlu1 %v4188_v51 }
 0x6b5   : > { %v7776_v20 = vpop.eup %6343 }
 0x6b6   : > { %v7778_v22 = vpop.eup %6345  ;;  %v4179_v17 = vsel %vm4052_vm1, %v7776_v20, 0.0 }
 0x6b7   : > { %4180 = vadd.xlane.f32.xlu0 %v4179_v17  ;;  %v4185_v63 = vsel %vm4052_vm1, %v7778_v22, 0.0 }
 0x6b8   : > { %4186 = vadd.xlane.f32.xlu1 %v4185_v63 }
 0x6b9   : > { %v7784_v57 = vpop.eup %6347 }
 0x6ba   : > { %v4194_v6 = vsel %vm4052_vm1, %v7784_v57, 0.0 }
 0x6bb   : > { %4195 = vadd.xlane.f32.xlu0 %v4194_v6 }
 0x6bd   : > { %v7788_v10 = vpop.eup %6349 }
 0x6be   : > { %v4191_v55 = vsel %vm4052_vm1, %v7788_v10, 0.0 }
 0x6bf   : > { %4192 = vadd.xlane.f32.xlu0 %v4191_v55 }
 0x6c9   : > { %4839 = vrot.lane.b32.xlu1 %v7568_v7, %s6392_s23 }
 0x6d5   : > { %4752 = vrot.lane.b32.xlu0 %v7560_v0, %s6392_s23 }
 0x6d9   : > { %4932 = vperm.xlu0 %6318, %v5387_v5  }
 0x71c   : > { %v4154_v23 = vpop.xlane.xlu1 %4153 }
 0x71d   : > { %6351 = vrcp.f32 %v4154_v23 }
 0x720   : > { %v4151_v3 = vpop.xlane.xlu1 %4150 }
 0x721   : > { %6353 = vrcp.f32 %v4151_v3 }
 0x724   : > { %v4160_v7 = vpop.xlane.xlu0 %4159 }
 0x725   : > { %6355 = vrcp.f32 %v4160_v7 }
 0x728   : > { %v4157_v16 = vpop.xlane.xlu0 %4156 }
 0x729   : > { %6357 = vrcp.f32 %v4157_v16 }
 0x72a   : > { %v6352_v51 = vpop.eup %6351 }
 0x72b   : > { %v4200_v6 = vmul.f32 %v6352_v51, %v7717_v19 }
 0x72c   : > { %v4166_v0 = vpop.xlane.xlu1 %4165 }
 0x72d   : > { %6359 = vrcp.f32 %v4166_v0 }
 0x72e   : > { %v6354_v17 = vpop.eup %6353 }
 0x72f   : > { %v4198_v63 = vmul.f32 %v6354_v17, %v7722_v9 }
 0x730   : > { %v4178_v55 = vpop.xlane.xlu1 %4177 }
 0x731   : > { %6255 = vmatprep.mubr.msk.f32.mxu0 %vm4052_vm1, %v4198_v63 }
 0x732   : > { %6256 = vmatmul.mubr.msk.f32.vlgmr.msra.gmra.mxu0 %vm4052_vm1, %v4200_v6  ;;  %v6356_v35 = vpop.eup %6355 }
 0x733   : > { %6266 = vmatpush3.msra.mxu0 %v7641_v27  ;;  %v4204_v9 = vmul.f32 %v6356_v35, %v7728_v33 }
 0x734   : > { %v4172_v5 = vpop.xlane.xlu0 %4171  ;;  %6267 = vmatprep.subr.mxu0 %v7708_v58 }
 0x735   : > { %v4163_v23 = vpop.xlane.xlu1 %4162  ;;  %6268 = vmatpush3.msra.mxu0 %v7708_v58 }
 0x736   : > { %v6358_v3 = vpop.eup %6357  ;;  %6361 = vrcp.f32 %v4163_v23  ;;  %6279 = vmatprep.subr.mxu0 %v7710_v47 }
 0x737   : > { %6363 = vrcp.f32 %v4178_v55  ;;  %v4202_v19 = vmul.f32 %v6358_v3, %v7732_v46 }
 0x738   : > { %6365 = vrcp.f32 %v4172_v5  ;;  %v4169_v7 = vpop.xlane.xlu0 %4168 }
 0x739   : > { %6367 = vrcp.f32 %v4169_v7  ;;  %v4175_v27 = vpop.xlane.xlu1 %4174  ;;  %6262 = vmatprep.mubr.msk.f32.mxu1 %vm4052_vm1, %v4202_v19 }
 0x73a   : > { %6369 = vrcp.f32 %v4175_v27  ;;  %6263 = vmatmul.mubr.msk.f32.vlgmr.msra.gmra.mxu1 %vm4052_vm1, %v4204_v9  ;;  %v6360_v0 = vpop.eup %6359 }
 0x73b   : > { %6273 = vmatpush3.msra.mxu1 %v7645_v8  ;;  %v4208_v55 = vmul.f32 %v6360_v0, %v7740_v2 }
 0x73c   : > { %6274 = vmatprep.subr.mxu1 %v7712_v31  ;;  %v4184_v58 = vpop.xlane.xlu0 %4183 }
 0x73d   : > { %v4190_v16 = vpop.xlane.xlu1 %4189  ;;  %6275 = vmatpush3.msra.mxu1 %v7712_v31  ;;  %6371 = vrcp.f32 %v4184_v58 }
 0x73e   : > { %6286 = vmatprep.subr.mxu1 %v7714_v25  ;;  %6373 = vrcp.f32 %v4190_v16 }
 0x740   : > { %v4181_v33 = vpop.xlane.xlu0 %4180 }
 0x741   : > { %6375 = vrcp.f32 %v4181_v33  ;;  %v4187_v46 = vpop.xlane.xlu1 %4186 }
 0x742   : > { %6377 = vrcp.f32 %v4187_v46 }
 0x743   : > { %v6362_v51 = vpop.eup %6361 }
 0x744   : > { %v6364_v17 = vpop.eup %6363  ;;  %v4196_v63 = vpop.xlane.xlu0 %4195  ;;  %v4206_v8 = vmul.f32 %v6362_v51, %v7753_v61 }
 0x745   : > { %v6366_v6 = vpop.eup %6365  ;;  %6379 = vrcp.f32 %v4196_v63  ;;  %v4216_v2 = vmul.f32 %v6364_v17, %v7746_v45 }
 0x746   : > { %v6368_v5 = vpop.eup %6367  ;;  %6269 = vmatprep.mubr.msk.f32.mxu0 %vm4052_vm1, %v4206_v8  ;;  %v4212_v19 = vmul.f32 %v6366_v6, %v7751_v15 }
 0x747   : > { %v6370_v31 = vpop.eup %6369  ;;  %6270 = vmatmul.mubr.msk.f32.vlgmr.msra.gmra.mxu0 %vm4052_vm1, %v4208_v55  ;;  %v4210_v35 = vmul.f32 %v6368_v5, %v7760_v52 }
 0x748   : > { %6280 = vmatpush3.msra.mxu0 %v7710_v47  ;;  %v4193_v23 = vpop.xlane.xlu0 %4192  ;;  %v4214_v3 = vmul.f32 %v6370_v31, %v7762_v37 }
 0x749   : > { %6281 = vmatprep.subr.mxu0 %v7800_v53  ;;  %6381 = vrcp.f32 %v4193_v23  ;;  %6276 = vmatprep.mubr.msk.f32.mxu1 %vm4052_vm1, %v4210_v35  ;;  %v7964_v23 = vmax.f32 %v7486_v36, 0.0 }
 0x74a   : > { %6282 = vmatpush3.msra.mxu0 %v7800_v53  ;;  %6283 = vmatprep.mubr.msk.f32.mxu0 %vm4052_vm1, %v4214_v3  ;;  %v6372_v47 = vpop.eup %6371 }
 0x74b   : > { %6293 = vmatprep.subr.mxu0 %v7802_v13  ;;  %6277 = vmatmul.mubr.msk.f32.vlgmr.msra.gmra.mxu1 %vm4052_vm1, %v4212_v19  ;;  %v6374_v61 = vpop.eup %6373  ;;  %v4220_v53 = vmul.f32 %v6372_v47, %v7768_v38 }
 0x74c   : > { %6284 = vmatmul.mubr.msk.f32.vlgmr.msra.gmra.mxu0 %vm4052_vm1, %v4216_v2  ;;  %6287 = vmatpush3.msra.mxu1 %v7714_v25  ;;  %v4753_v15 = vpop.permute.xlu0 %4752  ;;  %v4224_v9 = vmul.f32 %v6374_v61, %v7770_v62  ;;  %v7965_v2 = vmax.f32 %v7473_v59, 0.0  ;;  %v7968_v59 = vmax.f32 %v7504_v44, 0.0 }
 0x74d   : > { %6294 = vmatpush3.msra.mxu0 %v7802_v13  ;;  %6288 = vmatprep.subr.mxu1 %v7796_v18 }
 0x74e   : > { %v6376_v45 = vpop.eup %6375  ;;  %6289 = vmatpush3.msra.mxu1 %v7796_v18  ;;  %6295 = vmatprep.subr.mxu0 %v4753_v15  ;;  %v4840_v18 = vpop.permute.xlu1 %4839 }
 0x74f   : > { %v6378_v52 = vpop.eup %6377  ;;  %6300 = vmatprep.subr.mxu1 %v7798_v1  ;;  %6296 = vmatpush3.msra.mxu0 %v4753_v15  ;;  %v4218_v37 = vmul.f32 %v6376_v45, %v7776_v20 }
 0x750   : > { %v4222_v25 = vmul.f32 %v6378_v52, %v7778_v22  ;;  %v7967_v52 = vmax.f32 %v7501_v24, 0.0 }
 0x751   : > { %6290 = vmatprep.mubr.msk.f32.mxu1 %vm4052_vm1, %v4218_v37 }
 0x752   : > { %6297 = vmatprep.mubr.msk.f32.mxu0 %vm4052_vm1, %v4222_v25  ;;  %6291 = vmatmul.mubr.msk.f32.vlgmr.msra.gmra.mxu1 %vm4052_vm1, %v4220_v53  ;;  %v6380_v20 = vpop.eup %6379 }
 0x753   : > { %6298 = vmatmul.mubr.msk.f32.vlgmr.msra.gmra.mxu0 %vm4052_vm1, %v4224_v9  ;;  %6301 = vmatpush3.msra.mxu1 %v7798_v1  ;;  %v4228_v62 = vmul.f32 %v6380_v20, %v7784_v57 }
 0x754   : > { %6302 = vmatprep.subr.mxu1 %v4840_v18  ;;  %v7854_v13 = vpop.permute.xlu0 %4932 }
 0x755   : > { %6303 = vmatpush3.msra.mxu1 %v4840_v18 }
 0x756   : > { %v6382_v38 = vpop.eup %6381 }
 0x757   : > { %v4226_v22 = vmul.f32 %v6382_v38, %v7788_v10 }
 0x759   : > { %6304 = vmatprep.mubr.msk.f32.mxu1 %vm4052_vm1, %v4226_v22 }
 0x75a   : > { %6305 = vmatmul.mubr.msk.f32.vlgmr.msra.gmra.mxu1 %vm4052_vm1, %v4228_v62 }
 0x7f2   : > { %v6257_v7 = vpop.f32.mrf.mxu0 }
 0x7f3   : > { %v4936_v27 = vmul.f32 %v6257_v7, %v7854_v13 }
 0x7f4   : > { %v4308_v57 = vpop.f32.mrf.mxu0 }
 0x7f5   : > { %v4952_v10 = vadd.f32 %v4936_v27, %v3131_v32  ;;  %v4935_v1 = vmul.f32 %v7854_v13, %v4308_v57 }
 0x7f7   : > { %4968 = vst.msk [vmem:[%s7861_s27 + $0x8] sm:$0xff] %vm424_vm0, %v4952_v10  ;;  %v4951_v58 = vadd.f32 %v4935_v1, %v3130_v11 }
 0x7f9   : > { %4967 = vst.msk [vmem:[%s7861_s27] sm:$0xff] %vm424_vm0, %v4951_v58 }
 0x7fa   : > { %v6264_v16 = vpop.f32.mrf.mxu1 }
 0x7fb   : > { %v4938_v33 = vmul.f32 %v6264_v16, %v7854_v13 }
 0x7fc   : > { %v4395_v46 = vpop.f32.mrf.mxu1 }
 0x7fd   : > { %v4954_v0 = vadd.f32 %v4938_v33, %v3133_v41  ;;  %v4937_v43 = vmul.f32 %v7854_v13, %v4395_v46 }
 0x7ff   : > { %4970 = vst.msk [vmem:[%s7861_s27 + $0x18] sm:$0xff] %vm424_vm0, %v4954_v0  ;;  %v4953_v32 = vadd.f32 %v4937_v43, %v3132_v12 }
 0x801   : > { %4969 = vst.msk [vmem:[%s7861_s27 + $0x10] sm:$0xff] %vm424_vm0, %v4953_v32 }
 0x807   : > { %v6271_v56 = vpop.f32.mrf.mxu0 }
 0x808   : > { %v4940_v11 = vmul.f32 %v6271_v56, %v7854_v13 }
 0x809   : > { %v4482_v51 = vpop.f32.mrf.mxu0 }
 0x80a   : > { %v4956_v17 = vadd.f32 %v4940_v11, %v3135_v29  ;;  %v4939_v34 = vmul.f32 %v7854_v13, %v4482_v51 }
 0x80b   : > { %v6278_v41 = vpop.f32.mrf.mxu1 }
 0x80c   : > { %4972 = vst.msk [vmem:[%s7861_s27 + $0x28] sm:$0xff] %vm424_vm0, %v4956_v17  ;;  %v4955_v54 = vadd.f32 %v4939_v34, %v3134_v60  ;;  %v4942_v12 = vmul.f32 %v6278_v41, %v7854_v13  ;;  %v6285_v63 = vpop.f32.mrf.mxu0 }
 0x80d   : > { %v4944_v8 = vmul.f32 %v6285_v63, %v7854_v13  ;;  %v4569_v6 = vpop.f32.mrf.mxu1 }
 0x80e   : > { %4971 = vst.msk [vmem:[%s7861_s27 + $0x20] sm:$0xff] %vm424_vm0, %v4955_v54  ;;  %v4958_v42 = vadd.f32 %v4942_v12, %v3137_v21  ;;  %v4941_v29 = vmul.f32 %v7854_v13, %v4569_v6  ;;  %v4656_v55 = vpop.f32.mrf.mxu0 }
 0x80f   : > { %v4960_v4 = vadd.f32 %v4944_v8, %v3139_v50  ;;  %v4943_v60 = vmul.f32 %v7854_v13, %v4656_v55 }
 0x810   : > { %4974 = vst.msk [vmem:[%s7861_s27 + $0x38] sm:$0xff] %vm424_vm0, %v4958_v42  ;;  %v4957_v5 = vadd.f32 %v4941_v29, %v3136_v39  ;;  %v7963_v39 = vmax.f32 %v7470_v14, 0.0  ;;  %v7966_v14 = vmax.f32 %v7489_v30, 0.0 }
 0x811   : > { %4976 = vst.msk [vmem:[%s7861_s27 + $0x48] sm:$0xff] %vm424_vm0, %v4960_v4  ;;  %v4959_v48 = vadd.f32 %v4943_v60, %v3138_v40 }
 0x812   : > { %4973 = vst.msk [vmem:[%s7861_s27 + $0x30] sm:$0xff] %vm424_vm0, %v4957_v5  ;;  %v6292_v21 = vpop.f32.mrf.mxu1 }
 0x813   : > { %4975 = vst.msk [vmem:[%s7861_s27 + $0x40] sm:$0xff] %vm424_vm0, %v4959_v48  ;;  %v4946_v49 = vmul.f32 %v6292_v21, %v7854_v13  ;;  %v6299_v50 = vpop.f32.mrf.mxu0 }
 0x814   : > { %v4948_v28 = vmul.f32 %v6299_v50, %v7854_v13  ;;  %v4743_v31 = vpop.f32.mrf.mxu1 }
 0x815   : > { %v4962_v35 = vadd.f32 %v4946_v49, %v7963_v39  ;;  %v4945_v26 = vmul.f32 %v7854_v13, %v4743_v31  ;;  %v4830_v40 = vpop.f32.mrf.mxu0 }
 0x816   : > { %v4964_v3 = vadd.f32 %v4948_v28, %v7964_v23  ;;  %v4947_v19 = vmul.f32 %v7854_v13, %v4830_v40 }
 0x817   : > { %4978 = vst.msk [vmem:[%s7861_s27 + $0x58] sm:$0xff] %vm424_vm0, %v4962_v35  ;;  %v4961_v47 = vadd.f32 %v4945_v26, %v7965_v2 }
 0x818   : > { %4980 = vst.msk [vmem:[%s7861_s27 + $0x68] sm:$0xff] %vm424_vm0, %v4964_v3  ;;  %v4963_v15 = vadd.f32 %v4947_v19, %v7966_v14 }
 0x819   : > { %4977 = vst.msk [vmem:[%s7861_s27 + $0x50] sm:$0xff] %vm424_vm0, %v4961_v47 }
 0x81a   : > { %4979 = vst.msk [vmem:[%s7861_s27 + $0x60] sm:$0xff] %vm424_vm0, %v4963_v15  ;;  %v6306_v61 = vpop.f32.mrf.mxu1 }
 0x81b   : > { %v4950_v36 = vmul.f32 %v6306_v61, %v7854_v13 }
 0x81c   : > { %v4917_v45 = vpop.f32.mrf.mxu1 }
 0x81d   : > { %v4966_v37 = vadd.f32 %v4950_v36, %v7967_v52  ;;  %v4949_v53 = vmul.f32 %v7854_v13, %v4917_v45 }
 0x81f   : > { %4982 = vst.msk [vmem:[%s7861_s27 + $0x78] sm:$0xff] %vm424_vm0, %v4966_v37  ;;  %v4965_v25 = vadd.f32 %v4949_v53, %v7968_v59 }
 0x821   : > { %4981 = vst.msk [vmem:[%s7861_s27 + $0x70] sm:$0xff] %vm424_vm0, %v4965_v25 }
 0x822 PF: > { %s23_s19 = sadd.s32 1, %s6389_s19  }
 0x823   : > { %p20_p4 = scmp.ge.s32.totalorder %s23_s19, 4  }
 0x825   :  { %22 = sbr.rel (!%p20_p4) target bundleno = 3 (0x3), region = 102 }

</bundles_post_ra>
